<compile_context>
chip_gen: v7x
topology: tpu7x:2x2x1
jax: 0.10.0
libtpu: 0.0.40
codegen_flags: <defaults>
</compile_context>

<pallas_src>
import math
import functools

import jax
import jax.numpy as jnp
from jax.experimental import pallas as pl
from jax.experimental.pallas import tpu as pltpu


def _round_up(n, m):
    return ((n + m - 1) // m) * m


def siren_kernel(x_ref, wt_ref, b_ref, o_ref, *, sin_dtype):
    # x_ref:  (tm, in)    input row tile (f32 or bf16)
    # wt_ref: (in, out)   resident pre-transposed, w0-scaled weight
    # b_ref:  (1, out)    w0-scaled bias row (f32)
    # o_ref:  (tm, out)   output tile (f32 or bf16)
    z = jnp.dot(x_ref[...], wt_ref[...], preferred_element_type=jnp.float32)
    z = z + b_ref[...]                      # f32 broadcast (1, out) over rows
    if sin_dtype is not None and sin_dtype != jnp.float32:
        z = z.astype(sin_dtype)             # bf16 sin: VALU relief on v6e/v7x
    o_ref[...] = jnp.sin(z).astype(o_ref.dtype)


def prepare_siren_params(weight, bias, w0=1.0):
    """One-time parameter preparation (do NOT redo this per call):
    sin(w0 * (x @ W^T + b)) == sin(x @ (w0*W)^T + w0*b).
    weight: [out, in] (PyTorch layout), bias: [out].
    Returns (wt_scaled [in, out], bias_scaled [out])."""
    wt_scaled = (w0 * weight).T
    bias_scaled = w0 * bias
    return jnp.asarray(wt_scaled), jnp.asarray(bias_scaled)


def _choose_row_tile(N, tm, gran, in_features, out_features, x_bytes, out_bytes,
                     vmem_budget, target_steps=8):
    """Pick the row tile: as big as possible (amortize ~0.35us/grid-step, get to
    HBM roofline) while (a) staying inside a VMEM budget that fits v5e's 16 MiB
    scoped default and (b) keeping >= ~target_steps grid steps so v7x's two
    TensorCores and the double-buffer pipeline both have work."""
    tm = max(gran, (tm // gran) * gran)
    tm = min(tm, _round_up(N, gran))                 # never bigger than N
    # VMEM estimate (lane dim padded to 128): double-buffered x and out tiles
    # plus worst-case double-buffered resident weight/bias blocks.
    lanes_in = _round_up(in_features, 128)
    lanes_out = _round_up(out_features, 128)
    resident = 2 * (lanes_in * lanes_out * x_bytes + lanes_out * 4)
    per_row = 2 * (lanes_in * x_bytes + lanes_out * out_bytes)
    budget_rows = max(gran, (vmem_budget - resident) // per_row)
    tm = min(tm, max(gran, (budget_rows // gran) * gran))
    # Keep several grid steps, but floor the tile at 256 rows so tiny tiles
    # don't become per-step-overhead bound.
    floor = min(256, _round_up(N, gran))
    steps_cap = max(floor, _round_up(pl.cdiv(N, target_steps), gran))
    tm = min(tm, steps_cap)
    return max(gran, tm)


def siren_layer(x, wt_scaled, bias_scaled, *, tm=1024,
                compute_dtype=jnp.bfloat16, out_dtype=None, sin_dtype=None,
                single_buffer_resident=False,
                vmem_budget_bytes=12 * 1024 * 1024):
    """x: [N, in], wt_scaled: [in, out] (pre-transposed, w0-folded),
    bias_scaled: [out] (w0-folded). Returns [N, out] = sin(x @ wt + b).

    compute_dtype: MXU input dtype (bf16 default; valid on v5e/v6e/v7x),
                   accumulation / bias / (by default) sin stay f32.
    out_dtype:     output store dtype (None -> x.dtype; bf16 halves the write).
    sin_dtype:     evaluate sin in this dtype (bf16 helps v6e/v7x VALU slot).
    single_buffer_resident: pl.Buffered(1) on the invariant weight/bias blocks
                   (v7x VMEM headroom for large weights; needs recent jax)."""
    N, in_features = x.shape
    in_w, out_features = wt_scaled.shape
    assert in_w == in_features, "weight/input feature mismatch"

    out_dtype = x.dtype if out_dtype is None else out_dtype
    b2 = bias_scaled.reshape(1, out_features).astype(jnp.float32)

    if compute_dtype is not None:
        x_c = x.astype(compute_dtype)
        wt_c = wt_scaled.astype(compute_dtype)
    else:
        x_c, wt_c = x, wt_scaled

    x_bytes = jnp.dtype(x_c.dtype).itemsize
    o_bytes = jnp.dtype(out_dtype).itemsize
    gran = 16 if x_bytes < 4 else 8          # sublane granularity of the row tile
    tm_eff = _choose_row_tile(N, tm, gran, in_features, out_features,
                              x_bytes, o_bytes, vmem_budget_bytes)

    # Ragged N handled by Pallas: last block's extra input rows are read but the
    # corresponding output rows are masked out of the store (no pad / no slice).
    grid = (pl.cdiv(N, tm_eff),)

    if single_buffer_resident:
        wt_spec = pl.BlockSpec((in_features, out_features), lambda i: (0, 0),
                               pipeline_mode=pl.Buffered(1))
        b_spec = pl.BlockSpec((1, out_features), lambda i: (0, 0),
                              pipeline_mode=pl.Buffered(1))
    else:
        wt_spec = pl.BlockSpec((in_features, out_features), lambda i: (0, 0))
        b_spec = pl.BlockSpec((1, out_features), lambda i: (0, 0))

    out = pl.pallas_call(
        functools.partial(siren_kernel, sin_dtype=sin_dtype),
        out_shape=jax.ShapeDtypeStruct((N, out_features), out_dtype),
        grid_spec=pltpu.PrefetchScalarGridSpec(
            num_scalar_prefetch=0,
            grid=grid,
            in_specs=[
                pl.BlockSpec((tm_eff, in_features), lambda i: (i, 0)),
                wt_spec,
                b_spec,
            ],
            out_specs=pl.BlockSpec((tm_eff, out_features), lambda i: (i, 0)),
        ),
        compiler_params=pltpu.CompilerParams(
            dimension_semantics=("parallel",),   # row tiles split across TCs
            vmem_limit_bytes=32 * 1024 * 1024,   # >= v5e default, fits v7x
        ),
    )(x_c, wt_c, b2)
    return out


def init_siren_params(key, in_features, out_features, w0=1.0, is_first=False):
    """Mirror SirenLayer.init_weights + nn.Linear default bias init."""
    kw, kb = jax.random.split(key)
    if is_first:
        w_bound = 1.0 / in_features
    else:
        w_bound = math.sqrt(6.0 / in_features) / w0
    weight = jax.random.uniform(
        kw, (out_features, in_features), jnp.float32, -w_bound, w_bound)
    # nn.Linear default bias init: U(-1/sqrt(in), 1/sqrt(in))
    b_bound = 1.0 / math.sqrt(in_features)
    bias = jax.random.uniform(
        kb, (out_features,), jnp.float32, -b_bound, b_bound)
    return weight, bias


# TODO(synk): for a full SIREN MLP, fuse consecutive layers into one pallas_call
# (keep the (tm, hidden) activation in VMEM scratch, sin + next matmul in-kernel)
# to avoid re-reading/re-writing the activation from HBM per layer.

if __name__ == "__main__":
    key = jax.random.PRNGKey(0)
    k_x, k_p = jax.random.split(key)

    N = 520              # deliberately ragged (not a multiple of the row tile)
    in_features = 32
    out_features = 128   # lane-dense output (multiple of 128)
    w0 = 30.0
    is_first = True

    x = jax.random.normal(k_x, (N, in_features), jnp.float32)
    weight, bias = init_siren_params(k_p, in_features, out_features,
                                     w0=w0, is_first=is_first)

    # One-time param prep: fold w0, pre-transpose.
    wt_s, b_s = prepare_siren_params(weight, bias, w0=w0)

    # Reference in plain JAX (high-precision matmul for a clean comparison).
    ref = jnp.sin(w0 * (jnp.dot(x, weight.T,
                                precision=jax.lax.Precision.HIGHEST) + bias))

    # 1) f32 compute path: tight check.
    out_f32 = jax.block_until_ready(siren_layer(x, wt_s, b_s, compute_dtype=None))
    assert out_f32.shape == (N, out_features)
    assert jnp.allclose(out_f32, ref, atol=1e-4, rtol=1e-4), \
        float(jnp.max(jnp.abs(out_f32 - ref)))

    # 2) Default path: bf16 inputs/weights, f32 accumulate/bias/sin, f32 out.
    #    Loose check: sin-argument error scales as |w0*z| * 2^-8 with w0=30.
    out_bf = jax.block_until_ready(siren_layer(x, wt_s, b_s))
    assert out_bf.shape == (N, out_features) and out_bf.dtype == x.dtype
    assert jnp.allclose(out_bf, ref, atol=2e-1)

    # 3) Fully bf16 I/O path: bf16 compute + bf16 sin + bf16 output store
    #    (halves the largest HBM stream; sin in bf16 relieves the v6e/v7x VALU).
    out_bf_io = jax.block_until_ready(
        siren_layer(x, wt_s, b_s, out_dtype=jnp.bfloat16, sin_dtype=jnp.bfloat16))
    assert out_bf_io.shape == (N, out_features)
    assert out_bf_io.dtype == jnp.bfloat16
    assert jnp.allclose(out_bf_io.astype(jnp.float32), ref, atol=3e-1)

    # 4) Optional v7x VMEM-headroom mode: single-buffer the invariant weight/bias
    #    blocks.  Guarded so older jax without BlockSpec(pipeline_mode=...) still
    #    runs the verified default paths above.
    try:
        out_sb = jax.block_until_ready(
            siren_layer(x, wt_s, b_s, compute_dtype=None,
                        single_buffer_resident=True))
        assert jnp.allclose(out_sb, ref, atol=1e-4, rtol=1e-4)
    except Exception:
        pass  # pipeline_mode / Buffered(1) unsupported here; defaults already OK

    print("KERNEL_OK")
</pallas_src>

<mosaic_0001>
module attributes {stable_mosaic.version = 11 : i64} {
  func.func @siren_kernel(%arg0: i32, %arg1: memref<256x32xf32, #tpu.memory_space<vmem>>, %arg2: memref<32x128xf32, #tpu.memory_space<vmem>>, %arg3: memref<1x128xf32, #tpu.memory_space<vmem>>, %arg4: memref<256x128xf32, #tpu.memory_space<vmem>>) attributes {dimension_semantics = [#tpu.dimension_semantics<parallel>], iteration_bounds = array<i64: 3>, scalar_prefetch = 0 : i64, scratch_operands = 0 : i64, tpu.core_type = #tpu.core_type<tc>, window_params = [{transform_indices = @transform_0, window_bounds = array<i64: 256, 32>}, {pipeline_mode = #tpu.pipeline_mode<synchronous>, transform_indices = @transform_1, window_bounds = array<i64: 32, 128>}, {pipeline_mode = #tpu.pipeline_mode<synchronous>, transform_indices = @transform_2, window_bounds = array<i64: 1, 128>}, {transform_indices = @transform_3, window_bounds = array<i64: 256, 128>}]} {
    %c0 = arith.constant 0 : index
    %c0_0 = arith.constant 0 : index
    %0 = vector.load %arg1[%c0, %c0_0] : memref<256x32xf32, #tpu.memory_space<vmem>>, vector<256x32xf32>
    %c0_1 = arith.constant 0 : index
    %c0_2 = arith.constant 0 : index
    %1 = vector.load %arg2[%c0_1, %c0_2] : memref<32x128xf32, #tpu.memory_space<vmem>>, vector<32x128xf32>
    %cst = arith.constant dense<0.000000e+00> : vector<256x128xf32>
    %2 = tpu.matmul %0, %1, %cst {dimension_numbers = #tpu.dot_dimension_numbers<[1], [0], [0], [1], [0, 0, 1, 1], [], []>} : vector<256x32xf32>, vector<32x128xf32>, vector<256x128xf32> -> vector<256x128xf32>
    %c0_3 = arith.constant 0 : index
    %c0_4 = arith.constant 0 : index
    %3 = vector.load %arg3[%c0_3, %c0_4] : memref<1x128xf32, #tpu.memory_space<vmem>>, vector<1x128xf32>
    %4 = vector.broadcast %3 : vector<1x128xf32> to vector<256x128xf32>
    %5 = arith.addf %2, %4 : vector<256x128xf32>
    %6 = math.sin %5 : vector<256x128xf32>
    %c0_5 = arith.constant 0 : index
    %c0_6 = arith.constant 0 : index
    %7 = vector.load %arg4[%c0_5, %c0_6] : memref<256x128xf32, #tpu.memory_space<vmem>>, vector<256x128xf32>
    tpu.vector_store %arg4[%c0_5, %c0_6], %6 {strides = array<i32>} : memref<256x128xf32, #tpu.memory_space<vmem>>, vector<256x128xf32>,
    return
  }
  func.func @transform_0(%arg0: i32) -> (i32, i32) {
    %c0_i32 = arith.constant 0 : i32
    %c0_i32_0 = arith.constant 0 : i32
    return %arg0, %c0_i32 : i32, i32
  }
  func.func @transform_1(%arg0: i32) -> (i32, i32) {
    %c0_i32 = arith.constant 0 : i32
    %c0_i32_0 = arith.constant 0 : i32
    %c0_i32_1 = arith.constant 0 : i32
    return %c0_i32, %c0_i32_0 : i32, i32
  }
  func.func @transform_2(%arg0: i32) -> (i32, i32) {
    %c0_i32 = arith.constant 0 : i32
    %c0_i32_0 = arith.constant 0 : i32
    %c0_i32_1 = arith.constant 0 : i32
    return %c0_i32, %c0_i32_0 : i32, i32
  }
  func.func @transform_3(%arg0: i32) -> (i32, i32) {
    %c0_i32 = arith.constant 0 : i32
    %c0_i32_0 = arith.constant 0 : i32
    return %arg0, %c0_i32 : i32, i32
  }
}

</mosaic_0001>

<bundles_post_ra>
// kernel: tpu_custom_call.1
= control target key start
LH: loop header
LB: loop body
LE: loop exit
PB: predicated region body
PF: predicated region fallthrough
CT: control target
= control target key end

     0   :  { %8 = vsyncpa [#allocation3], 0  ;;  %s7554_s0 = inlined_call_operand.vmem [shape: f32[520,32], index: 0, kind: input, shape index: {}]   ;;  %s7555_s1 = inlined_call_operand.vmem [shape: f32[32,128], index: 1, kind: input, shape index: {}]   ;;  %s7556_s2 = inlined_call_operand.vmem [shape: f32[1,128], index: 2, kind: input, shape index: {}]   ;;  %s7557_s3 = inlined_call_operand.hbm [shape: f32[520,128], index: 3, kind: output, shape index: {}]  }
   0x1   :  { %10 = vsyncpa [#allocation3 + $0x1], 0  ;;  %s4685_s12 = smov 0   ;;  %s4687_s13 = smov 0  }
   0x2   :  { %s4689_s14 = smov 0   ;;  %s4691_s15 = smov 0  }
   0x3 LB: > { %s4706_s16 = sadd.s32 4294967295, %s4654_s15   ;;  %s4003_s17 = sadd.s32 4294967294, %s4654_s15   ;;  %s4654_s15 = sphi %s4691_s15, %s7623_s15   ;;  %s4650_s14 = sphi %s4689_s14, %s7622_s14   ;;  %s4646_s13 = sphi %s4687_s13, %s7621_s13   ;;  %s4642_s12 = sphi %s4685_s12, %s7620_s12  }
   0x4   : > { %s4710_s18 = sadd.s32 1, %s4654_s15   ;;  %s91_s19 = sadd.s32 1, %s4650_s14 }
   0x5   : > { %s88_s20 = ssub.s32 %s4654_s15, %s4710_s18  ;;  %p101_p0 = scmp.ne.s32.totalorder %s4650_s14, %s4646_s13 }
   0x6   : > { %p89_p1 = scmp.eq.s32.totalorder %s88_s20, 0  ;;  %p102_p2 = scmp.eq.s32.totalorder %s4706_s16, 2 }
   0x7   : > { %p107_p3 = scmp.ne.s32.totalorder %s4646_s13, %s4642_s12  ;;  %p108_p4 = scmp.eq.s32.totalorder %s4003_s17, 2 }
   0x8   : > { %s4721_s21 = scalar_select %p89_p1, %s4650_s14, %s91_s19  }
   0x9   : > { %p4723_p5 = por %p102_p2, %p101_p0  ;;  %p4727_p6 = por %p108_p4, %p107_p3 }
   0xa   : > { %p4006_p7 = scmp.ge.s32.totalorder %s4654_s15, 1  ;;  %p149_p8 = scmp.lt.s32.totalorder %s4654_s15, 4 }
   0xc   : > { %p150_p9 = pnand %p4006_p7, %p149_p8 }
   0xd   : > { %v228_v0 = vld [vmem:[%s7555_s1] sm:$0xff] (!%p150_p9)  ;;  %v229_v1 = vld [vmem:[%s7555_s1 + $0x8] sm:$0xff] (!%p150_p9)  ;;  %v230_v2 = vld [vmem:[%s7555_s1 + $0x10] sm:$0xff] (!%p150_p9)  ;;  %s4743_s30 = sshll.u32 (!%p150_p9), %s4706_s16, 5  ;;  %vm239_vm0 = vcmask (!%p150_p9), 261120   ;;  %s174_s11 = sand.u32 (!%p150_p9), 1, %s4646_s13  }
   0xe   : > { %153 = sbr.rel (%p150_p9) target bundleno = 1098 (0x44a), region = 32  ;;  %v4273_v3 = vpack.c.bf16 (!%p150_p9), %v229_v1, %v228_v0  ;;  %v231_v4 = vld [vmem:[%s7555_s1 + $0x18] sm:$0xff] (!%p150_p9)  ;;  %p182_p10 = scmp.lt.s32.totalorder (!%p150_p9), %s4743_s30, 64  ;;  %v4823_v38 = vld [vmem:[%s7556_s2] ss:$0 sm:$0xff] (!%p150_p9) }
   0xf   : > { %v4277_v5 = vpack.c.bf16 (!%p150_p9), %v231_v4, %v230_v2  ;;  %s4007_s20 = sshll.u32 (!%p150_p9), %s174_s11, 8  ;;  %s7493_s9 = scalar_lea.sflag (!%p150_p9), [#allocation3], %s174_s11 }
  0x10   : > { %4274 = vmatprep.subr.bf16.mxu0 (!%p150_p9), %v4273_v3  ;;  %4281 = vmatprep.subr.bf16.mxu1 (!%p150_p9), %v4273_v3  ;;  %s5140_s24 = scalar_lea.vmem (!%p150_p9), [#allocation2], %s4007_s20 }
  0x11   : > { %4276 = vmatpush3.bf16.msra.mxu0 (!%p150_p9), %v4273_v3  ;;  %4283 = vmatpush3.bf16.msra.mxu1 (!%p150_p9), %v4273_v3 }
  0x12   : > { %4278 = vmatprep.subr.bf16.mxu0 (!%p150_p9), %v4277_v5  ;;  %4282 = vmatprep.subr.bf16.mxu1 (!%p150_p9), %v4277_v5 }
  0x15   : > { %s183_s6 = scalar_select %p182_p10, %s4743_s30, 64  ;;  %4280 = vmatpush3.bf16.msra.mxu0 %v4277_v5  ;;  %4284 = vmatpush3.bf16.msra.mxu1 %v4277_v5 }
  0x17   : > { %s4009_s7 = sshll.u32 %s183_s6, 3 }
  0x18   : > { %s4753_s10 = scalar_lea.vmem %s7554_s0, %s4009_s7 }
  0x19   : > { %v196_v6 = vld [vmem:[%s4753_s10] sm:$0xff]  ;;  %v197_v8 = vld [vmem:[%s4753_s10 + $0x8] sm:$0xff]  ;;  %v198_v10 = vld [vmem:[%s4753_s10 + $0x10] sm:$0xff] }
  0x1a   : > { %v212_v7 = vld [vmem:[%s4753_s10 + $0x80] sm:$0xff]  ;;  %v213_v9 = vld [vmem:[%s4753_s10 + $0x88] sm:$0xff]  ;;  %4225 = vmatprep.mubr.msk.f32.mxu0 %vm239_vm0, %v196_v6  ;;  %v214_v11 = vld [vmem:[%s4753_s10 + $0x90] sm:$0xff] }
  0x1b   : > { %4249 = vmatprep.mubr.msk.f32.mxu1 %vm239_vm0, %v212_v7  ;;  %4226 = vmatmul.mubr.msk.f32.vlgmr.msra.gmra.mrb[0].mxu0 %vm239_vm0, %v197_v8  ;;  %v199_v12 = vld [vmem:[%s4753_s10 + $0x18] sm:$0xff]  ;;  %v200_v14 = vld [vmem:[%s4753_s10 + $0x20] sm:$0xff]  ;;  %v201_v16 = vld [vmem:[%s4753_s10 + $0x28] sm:$0xff] }
  0x1c   : > { %4250 = vmatmul.mubr.msk.f32.vlgmr.msra.gmra.mrb[0].mxu1 %vm239_vm0, %v213_v9  ;;  %4228 = vmatprep.mubr.msk.f32.mxu0 %vm239_vm0, %v198_v10  ;;  %v215_v13 = vld [vmem:[%s4753_s10 + $0x98] sm:$0xff]  ;;  %v216_v15 = vld [vmem:[%s4753_s10 + $0xa0] sm:$0xff]  ;;  %v217_v17 = vld [vmem:[%s4753_s10 + $0xa8] sm:$0xff] }
  0x1d   : > { %4252 = vmatprep.mubr.msk.f32.mxu1 %vm239_vm0, %v214_v11  ;;  %v202_v18 = vld [vmem:[%s4753_s10 + $0x30] sm:$0xff]  ;;  %v203_v20 = vld [vmem:[%s4753_s10 + $0x38] sm:$0xff]  ;;  %v204_v22 = vld [vmem:[%s4753_s10 + $0x40] sm:$0xff] }
  0x1e   : > { %v218_v19 = vld [vmem:[%s4753_s10 + $0xb0] sm:$0xff]  ;;  %v219_v21 = vld [vmem:[%s4753_s10 + $0xb8] sm:$0xff]  ;;  %v220_v23 = vld [vmem:[%s4753_s10 + $0xc0] sm:$0xff] }
  0x1f   : > { %4229 = vmatmul.mubr.msk.f32.gmra.mrb[2].mxu0 %vm239_vm0, %v199_v12  ;;  %v205_v24 = vld [vmem:[%s4753_s10 + $0x48] sm:$0xff]  ;;  %v206_v26 = vld [vmem:[%s4753_s10 + $0x50] sm:$0xff]  ;;  %v207_v28 = vld [vmem:[%s4753_s10 + $0x58] sm:$0xff] }
  0x20   : > { %4253 = vmatmul.mubr.msk.f32.gmra.mrb[2].mxu1 %vm239_vm0, %v215_v13  ;;  %4231 = vmatprep.mubr.msk.f32.mxu0 %vm239_vm0, %v200_v14  ;;  %v221_v25 = vld [vmem:[%s4753_s10 + $0xc8] sm:$0xff]  ;;  %v222_v27 = vld [vmem:[%s4753_s10 + $0xd0] sm:$0xff]  ;;  %v223_v29 = vld [vmem:[%s4753_s10 + $0xd8] sm:$0xff] }
  0x21   : > { %4255 = vmatprep.mubr.msk.f32.mxu1 %vm239_vm0, %v216_v15  ;;  %v208_v30 = vld [vmem:[%s4753_s10 + $0x60] sm:$0xff]  ;;  %v209_v32 = vld [vmem:[%s4753_s10 + $0x68] sm:$0xff]  ;;  %v210_v34 = vld [vmem:[%s4753_s10 + $0x70] sm:$0xff]  ;;  %v4656_v15 = vmov 683565275  }
  0x22   : > { %v224_v31 = vld [vmem:[%s4753_s10 + $0xe0] sm:$0xff]  ;;  %v225_v33 = vld [vmem:[%s4753_s10 + $0xe8] sm:$0xff]  ;;  %v226_v35 = vld [vmem:[%s4753_s10 + $0xf0] sm:$0xff] }
  0x23   : > { %4232 = vmatmul.mubr.msk.f32.gmra.mrb[4].mxu0 %vm239_vm0, %v201_v16  ;;  %v211_v36 = vld [vmem:[%s4753_s10 + $0x78] sm:$0xff] }
  0x24   : > { %4256 = vmatmul.mubr.msk.f32.gmra.mrb[4].mxu1 %vm239_vm0, %v217_v17  ;;  %4234 = vmatprep.mubr.msk.f32.mxu0 %vm239_vm0, %v202_v18  ;;  %v227_v37 = vld [vmem:[%s4753_s10 + $0xf8] sm:$0xff]  ;;  %s3930_s10 = ssub.s32 (%p4723_p5), 65, %s4743_s30 }
  0x25   : > { %4258 = vmatprep.mubr.msk.f32.mxu1 %vm239_vm0, %v218_v19  ;;  %v4657_v19 = vmov 2475754826   ;;  %p3931_p11 = scmp.lt.s32.totalorder (%p4723_p5), %s3930_s10, 32 }
  0x27   : > { %4235 = vmatmul.mubr.msk.f32.gmra.mrb[6].mxu0 %vm239_vm0, %v203_v20 }
  0x28   : > { %4259 = vmatmul.mubr.msk.f32.gmra.mrb[6].mxu1 %vm239_vm0, %v219_v21  ;;  %4237 = vmatprep.mubr.msk.f32.mxu0 %vm239_vm0, %v204_v22  ;;  %v4658_v21 = vmov 2131351028  }
  0x29   : > { %4261 = vmatprep.mubr.msk.f32.mxu1 %vm239_vm0, %v220_v23  ;;  %v4659_v23 = vmov 2102212464  }
  0x2b   : > { %4238 = vmatmul.mubr.msk.f32.gmra.mrb[8].mxu0 %vm239_vm0, %v205_v24 }
  0x2c   : > { %4262 = vmatmul.mubr.msk.f32.gmra.mrb[8].mxu1 %vm239_vm0, %v221_v25  ;;  %4240 = vmatprep.mubr.msk.f32.mxu0 %vm239_vm0, %v206_v26  ;;  %v4660_v25 = vmov 920167782  }
  0x2d   : > { %4264 = vmatprep.mubr.msk.f32.mxu1 %vm239_vm0, %v222_v27 }
  0x2f   : > { %4241 = vmatmul.mubr.msk.f32.gmra.mrb[10].mxu0 %vm239_vm0, %v207_v28 }
  0x30   : > { %4265 = vmatmul.mubr.msk.f32.gmra.mrb[10].mxu1 %vm239_vm0, %v223_v29  ;;  %4243 = vmatprep.mubr.msk.f32.mxu0 %vm239_vm0, %v208_v30 }
  0x31   : > { %4267 = vmatprep.mubr.msk.f32.mxu1 %vm239_vm0, %v224_v31 }
  0x33   : > { %4244 = vmatmul.mubr.msk.f32.gmra.mrb[12].mxu0 %vm239_vm0, %v209_v32  ;;  %v4661_v32 = vmov 1326507024  }
  0x34   : > { %4268 = vmatmul.mubr.msk.f32.gmra.mrb[12].mxu1 %vm239_vm0, %v225_v33  ;;  %4246 = vmatprep.mubr.msk.f32.mxu0 %vm239_vm0, %v210_v34 }
  0x35   : > { %4270 = vmatprep.mubr.msk.f32.mxu1 %vm239_vm0, %v226_v35 }
  0x37   : > { %4247 = vmatmul.mubr.msk.f32.gmra.mrb[14].mxu0 %vm239_vm0, %v211_v36 }
  0x38   : > { %4271 = vmatmul.mubr.msk.f32.gmra.mrb[14].mxu1 %vm239_vm0, %v227_v37 }
  0xee   : > { %v4227_v39 = vpop.f32.mrb[0].mxu0 }
  0xef   : > { %v4251_v40 = vpop.f32.mrb[0].mxu1  ;;  %v4826_v41 = vadd.f32 %v4227_v39, %v4823_v38  ;;  %v402_v43 = vpop.f32.mrb[1].mxu0 }
  0xf0   : > { %v4829_v42 = vadd.f32 %v4251_v40, %v4823_v38  ;;  %v482_v44 = vpop.f32.mrb[1].mxu1  ;;  %v4832_v45 = vadd.f32 %v4823_v38, %v402_v43 }
  0xf1   : > { %v665_v46 = vand.u32 2147483647, %v4826_v41  ;;  %v668_v47 = vand.u32 2139095040, %v4826_v41  ;;  %v4850_v63 = vadd.f32 %v4823_v38, %v482_v44  ;;  %vm667_vm14 = vcmp.lt.s32.totalorder %v4826_v41, 0 }
  0xf2   : > { %v2329_v48 = vand.u32 2147483647, %v4829_v42  ;;  %v2332_v49 = vand.u32 2139095040, %v4829_v42  ;;  %v4838_v50 = vpop.f32.mrb[2].mxu0  ;;  %v564_v56 = vand.u32 2139095040, %v4832_v45 }
  0xf3   : > { %v4840_v51 = vpop.f32.mrb[2].mxu1  ;;  %v669_v52 = vshrl.u32 %v668_v47, 23  ;;  %v672_v53 = vand.u32 8388607, %v665_v46  ;;  %v4847_v58 = vpop.f32.mrb[3].mxu0  ;;  %v2228_v13 = vand.u32 2139095040, %v4850_v63 }
  0xf4   : > { %v2333_v54 = vshrl.u32 %v2332_v49, 23  ;;  %v2336_v55 = vand.u32 8388607, %v2329_v48  ;;  %v565_v60 = vshrl.u32 %v564_v56, 23  ;;  %v561_v2 = vand.u32 2147483647, %v4832_v45 }
  0xf5   : > { %v4047_v57 = vadd.s32 4294967169, %v669_v52  ;;  %v673_v61 = vor.u32 8388608, %v672_v53  ;;  %v4853_v4 = vpop.f32.mrb[3].mxu1  ;;  %vm4953_vm15 = vcmp.le.f32.partialorder %v665_v46, 0.7853982 }
  0xf6   : > { %v4111_v59 = vadd.s32 4294967169, %v2333_v54  ;;  %v2337_v0 = vor.u32 8388608, %v2336_v55  ;;  %v4043_v3 = vadd.s32 4294967169, %v565_v60  ;;  %v4861_v11 = vand.u32 8388607, %v561_v2 }
  0xf7   : > { %v675_v62 = vadd.s32 1, %v4047_v57  ;;  %v4855_v8 = vshll.u32 %v673_v61, 8 }
  0xf8   : > { %v2339_v1 = vadd.s32 1, %v4111_v59  ;;  %v4857_v10 = vshll.u32 %v2337_v0, 8  ;;  %v4863_v12 = vadd.s32 1, %v4043_v3 }
  0xf9   : > { %vm676_vm1 = vcmp.gt.s32.totalorder %v675_v62, 0 }
  0xfa   : > { %v677_v5 = vsel %vm676_vm1, %v675_v62, 0  ;;  %vm2340_vm2 = vcmp.gt.s32.totalorder %v2339_v1, 0  ;;  %vm572_vm7 = vcmp.gt.s32.totalorder %v4863_v12, 0 }
  0xfb   : > { %v678_v6 = vshrl.u32 %v677_v5, 5  ;;  %v679_v7 = vand.u32 31, %v677_v5  ;;  %v2341_v9 = vsel %vm2340_vm2, %v2339_v1, 0 }
  0xfc   : > { %v4867_v17 = vshrl.u32 %v2341_v9, 5  ;;  %v2343_v18 = vand.u32 31, %v2341_v9 }
  0xfd   : > { %v680_v14 = vsub.s32 32, %v679_v7  ;;  %v682_v16 = vshll.u32 %v4656_v15, %v679_v7  ;;  %v685_v20 = vshll.u32 %v4657_v19, %v679_v7  ;;  %v688_v22 = vshll.u32 %v4658_v21, %v679_v7 }
  0xfe   : > { %v691_v24 = vshll.u32 %v4659_v23, %v679_v7  ;;  %v694_v26 = vshll.u32 %v4660_v25, %v679_v7  ;;  %vm697_vm3 = vcmp.lt.s32.totalorder %v678_v6, 1  ;;  %vm698_vm4 = vcmp.lt.s32.totalorder %v678_v6, 2 }
  0xff   : > { %v683_v27 = vshrl.u32 %v4657_v19, %v680_v14  ;;  %v686_v28 = vshrl.u32 %v4658_v21, %v680_v14  ;;  %v689_v29 = vshrl.u32 %v4659_v23, %v680_v14  ;;  %v681_v30 = vshrl.u32 %v4656_v15, %v680_v14 }
 0x100   : > { %v692_v31 = vshrl.u32 %v4660_v25, %v680_v14  ;;  %v695_v33 = vshrl.u32 %v4661_v32, %v680_v14  ;;  %v2344_v37 = vsub.s32 32, %v2343_v18  ;;  %vm699_vm5 = vcmp.lt.s32.totalorder %v678_v6, 3 }
 0x101   : > { %v684_v34 = vor.u32 %v683_v27, %v682_v16  ;;  %v687_v35 = vor.u32 %v686_v28, %v685_v20  ;;  %v690_v36 = vor.u32 %v689_v29, %v688_v22  ;;  %vm700_vm6 = vcmp.lt.s32.totalorder %v678_v6, 4 }
 0x102   : > { %v693_v39 = vor.u32 %v692_v31, %v691_v24  ;;  %v696_v40 = vor.u32 %v695_v33, %v694_v26  ;;  %v2346_v55 = vshll.u32 %v4656_v15, %v2343_v18  ;;  %v2347_v59 = vshrl.u32 %v4657_v19, %v2344_v37 }
 0x103   : > { %v701_v43 = vsel %vm697_vm3, %v681_v30, %v684_v34  ;;  %v702_v44 = vsel %vm700_vm6, %v690_v36, 2102212464  ;;  %v705_v47 = vsel %vm697_vm3, %v684_v34, %v687_v35  ;;  %v709_v49 = vsel %vm697_vm3, %v687_v35, %v690_v36 }
 0x104   : > { %v703_v52 = vsel %vm699_vm5, %v687_v35, %v702_v44  ;;  %v706_v53 = vsel %vm700_vm6, %v693_v39, 920167782  ;;  %v710_v54 = vsel %vm700_vm6, %v696_v40, 1326507024  ;;  %v2349_v60 = vshll.u32 %v4657_v19, %v2343_v18 }
 0x105   : > { %v707_v56 = vsel %vm699_vm5, %v690_v36, %v706_v53  ;;  %v711_v57 = vsel %vm699_vm5, %v693_v39, %v710_v54  ;;  %v704_v61 = vsel %vm698_vm4, %v701_v43, %v703_v52  ;;  %v2350_v1 = vshrl.u32 %v4658_v21, %v2344_v37 }
 0x106   : > { %v708_v62 = vsel %vm698_vm4, %v705_v47, %v707_v56  ;;  %v712_v0 = vsel %vm698_vm4, %v709_v49, %v711_v57  ;;  %v2348_v14 = vor.u32 %v2347_v59, %v2346_v55  ;;  %v2352_v20 = vshll.u32 %v4658_v21, %v2343_v18 }
 0x107   : > { %v4891_v3 = vmul.u32.u64.low %v4855_v8, %v712_v0  ;;  %v4892_v5 = vmul.u32.u64.high %v4855_v8, %v712_v0, %v4891_v3  ;;  %v4895_v7 = vmul.u32.u64.low %v4855_v8, %v708_v62  ;;  %v4896_v9 = vmul.u32.u64.high %v4855_v8, %v708_v62, %v4895_v7 }
 0x108   : > { %v2351_v16 = vor.u32 %v2350_v1, %v2349_v60  ;;  %v2353_v22 = vshrl.u32 %v4659_v23, %v2344_v37  ;;  %v2345_v24 = vshrl.u32 %v4656_v15, %v2344_v37  ;;  %v2355_v6 = vshll.u32 %v4659_v23, %v2343_v18 }
 0x109   : > { %v2356_v26 = vshrl.u32 %v4660_v25, %v2344_v37  ;;  %v2359_v27 = vshrl.u32 %v4661_v32, %v2344_v37  ;;  %v720_v28 = vmul.u32 %v4855_v8, %v704_v61  ;;  %v2358_v30 = vshll.u32 %v4660_v25, %v2343_v18 }
 0x10a   : > { %v2354_v29 = vor.u32 %v2353_v22, %v2352_v20  ;;  %vm2361_vm8 = vcmp.lt.s32.totalorder %v4867_v17, 1  ;;  %vm722_vm9 = vc.u32 %v4892_v5, %v4895_v7  ;;  %v723_v31 = vadd.s32 1, %v4896_v9  ;;  %v4936_v20 = vpop.f32.mrb[4].mxu0 }
 0x10b   : > { %v2357_v33 = vor.u32 %v2356_v26, %v2355_v6  ;;  %vm2362_vm10 = vcmp.lt.s32.totalorder %v4867_v17, 2  ;;  %v2360_v34 = vor.u32 %v2359_v27, %v2358_v30  ;;  %vm2363_vm11 = vcmp.lt.s32.totalorder %v4867_v17, 3 }
 0x10c   : > { %vm2364_vm12 = vcmp.lt.s32.totalorder %v4867_v17, 4  ;;  %v2369_v35 = vsel %vm2361_vm8, %v2348_v14, %v2351_v16  ;;  %v724_v8 = vsel %vm722_vm9, %v723_v31, %v4896_v9  ;;  %v2373_v18 = vsel %vm2361_vm8, %v2351_v16, %v2354_v29 }
 0x10d   : > { %v2366_v36 = vsel %vm2364_vm12, %v2354_v29, 2102212464  ;;  %v2370_v37 = vsel %vm2364_vm12, %v2357_v33, 920167782  ;;  %v725_v39 = vadd.s32 %v724_v8, %v720_v28  ;;  %v2365_v40 = vsel %vm2361_vm8, %v2345_v24, %v2348_v14 }
 0x10e   : > { %v2371_v43 = vsel %vm2363_vm11, %v2354_v29, %v2370_v37  ;;  %v2374_v44 = vsel %vm2364_vm12, %v2360_v34, 1326507024  ;;  %v2367_v47 = vsel %vm2363_vm11, %v2351_v16, %v2366_v36  ;;  %v573_v53 = vsel %vm572_vm7, %v4863_v12, 0 }
 0x10f   : > { %v2372_v49 = vsel %vm2362_vm10, %v2369_v35, %v2371_v43  ;;  %v2375_v52 = vsel %vm2363_vm11, %v2357_v33, %v2374_v44  ;;  %v726_v54 = vadd.s32 536870912, %v725_v39  ;;  %v2225_v61 = vand.u32 2147483647, %v4850_v63 }
 0x110   : > { %v2376_v55 = vsel %vm2362_vm10, %v2373_v18, %v2375_v52  ;;  %v4921_v56 = vmul.u32.u64.low %v4857_v10, %v2372_v49  ;;  %v4922_v57 = vmul.u32.u64.high %v4857_v10, %v2372_v49, %v4921_v56  ;;  %v2368_v0 = vsel %vm2362_vm10, %v2365_v40, %v2367_v47 }
 0x111   : > { %v4926_v59 = vmul.u32.u64.low %v4857_v10, %v2376_v55  ;;  %v4927_v60 = vmul.u32.u64.high %v4857_v10, %v2376_v55, %v4926_v59  ;;  %v727_v62 = vshrl.u32 %v726_v54, 30  ;;  %v569_v12 = vor.u32 8388608, %v4861_v11 }
 0x112   : > { %v575_v1 = vand.u32 31, %v573_v53  ;;  %v2387_v9 = vadd.s32 1, %v4922_v57  ;;  %v2229_v16 = vshrl.u32 %v2228_v13, 23  ;;  %v2384_v22 = vmul.u32 %v4857_v10, %v2368_v0 }
 0x113   : > { %v728_v3 = vshll.u32 %v727_v62, 30  ;;  %vm2386_vm13 = vc.u32 %v4927_v60, %v4921_v56  ;;  %v4943_v17 = vand.u32 8388607, %v2225_v61  ;;  %v4949_v6 = vshll.u32 %v569_v12, 8 }
 0x114   : > { %v576_v14 = vsub.s32 32, %v575_v1  ;;  %v2388_v24 = vsel %vm2386_vm13, %v2387_v9, %v4922_v57  ;;  %v721_v10 = vadd.s32 %v4895_v7, %v4892_v5  ;;  %v4958_v27 = vshrl.u32 %v573_v53, 5 }
 0x115   : > { %v4946_v11 = vsub.s32 %v725_v39, %v728_v3  ;;  %v2389_v26 = vadd.s32 %v2388_v24, %v2384_v22  ;;  %v4107_v33 = vadd.s32 4294967169, %v2229_v16  ;;  %v751_v34 = vsub.s32 4, %v727_v62 }
 0x116   : > { %v579_v28 = vshrl.u32 %v4657_v19, %v576_v14  ;;  %v582_v30 = vshrl.u32 %v4658_v21, %v576_v14  ;;  %v585_v31 = vshrl.u32 %v4659_v23, %v576_v14  ;;  %v578_v46 = vshll.u32 %v4656_v15, %v575_v1 }
 0x117   : > { %v731_v29 = vsub.s32 0, %v4946_v11  ;;  %v2390_v35 = vadd.s32 536870912, %v2389_v26  ;;  %v2233_v8 = vor.u32 8388608, %v4943_v17  ;;  %v581_v7 = vshll.u32 %v4657_v19, %v575_v1 }
 0x118   : > { %v584_v36 = vshll.u32 %v4658_v21, %v575_v1  ;;  %v588_v37 = vshrl.u32 %v4660_v25, %v576_v14  ;;  %v580_v39 = vor.u32 %v579_v28, %v578_v46  ;;  %v587_v40 = vshll.u32 %v4659_v23, %v575_v1 }
 0x119   : > { %v4048_v5 = vmin.u32 %v731_v29, %v4946_v11  ;;  %v2391_v18 = vshrl.u32 %v2390_v35, 30  ;;  %v591_v43 = vshrl.u32 %v4661_v32, %v576_v14  ;;  %v583_v47 = vor.u32 %v582_v30, %v581_v7 }
 0x11a   : > { %v586_v49 = vor.u32 %v585_v31, %v584_v36  ;;  %v590_v52 = vshll.u32 %v4660_v25, %v575_v1  ;;  %v752_v53 = vsel %vm667_vm14, %v751_v34, %v727_v62  ;;  %v589_v55 = vor.u32 %v588_v37, %v587_v40 }
 0x11b   : > { %v733_v44 = vclz %v4048_v5  ;;  %v2392_v54 = vshll.u32 %v2391_v18, 30  ;;  %vm593_vm0 = vcmp.lt.s32.totalorder %v4958_v27, 1  ;;  %vm594_vm1 = vcmp.lt.s32.totalorder %v4958_v27, 2 }
 0x11c   : > { %v592_v59 = vor.u32 %v591_v43, %v590_v52  ;;  %vm596_vm2 = vcmp.lt.s32.totalorder %v4958_v27, 4  ;;  %vm2331_vm3 = vcmp.lt.s32.totalorder %v4829_v42, 0  ;;  %v577_v12 = vshrl.u32 %v4656_v15, %v576_v14 }
 0x11d   : > { %v4049_v57 = vadd.s32 4294967294, %v733_v44  ;;  %v4979_v0 = vsub.s32 %v2389_v26, %v2392_v54  ;;  %vm595_vm4 = vcmp.lt.s32.totalorder %v4958_v27, 3  ;;  %v602_v62 = vsel %vm596_vm2, %v589_v55, 920167782 }
 0x11e   : > { %v754_v1 = vsel %vm4953_vm15, 0, %v752_v53  ;;  %v601_v3 = vsel %vm593_vm0, %v580_v39, %v583_v47  ;;  %v603_v9 = vsel %vm595_vm4, %v586_v49, %v602_v62  ;;  %v2415_v24 = vsub.s32 4, %v2391_v18 }
 0x11f   : > { %vm4050_vm5 = vcmp.lt.s32.totalorder %v4049_v57, 0  ;;  %v2395_v22 = vsub.s32 0, %v4979_v0  ;;  %v605_v14 = vsel %vm593_vm0, %v583_v47, %v586_v49  ;;  %vm4996_vm6 = vcmp.le.f32.partialorder %v2329_v48, 0.7853982 }
 0x120   : > { %v736_v16 = vsel %vm4050_vm5, 0, %v4049_v57  ;;  %v598_v30 = vsel %vm596_vm2, %v586_v49, 2102212464  ;;  %v606_v31 = vsel %vm596_vm2, %v592_v59, 1326507024  ;;  %v604_v46 = vsel %vm594_vm1, %v601_v3, %v603_v9  ;;  %v5016_v49 = vpop.f32.mrb[4].mxu1 }
 0x121   : > { %v737_v26 = vsub.s32 32, %v736_v16  ;;  %v741_v28 = vsub.s32 4294967266, %v736_v16  ;;  %v738_v34 = vshll.u32 %v4946_v11, %v736_v16  ;;  %v4112_v35 = vmin.u32 %v2395_v22, %v4979_v0 }
 0x122   : > { %v607_v5 = vsel %vm595_vm4, %v589_v55, %v606_v31  ;;  %v2235_v37 = vadd.s32 1, %v4107_v33  ;;  %v758_v40 = vadd.s32 3, %v754_v1  ;;  %v597_v44 = vsel %vm593_vm0, %v577_v12, %v580_v39 }
 0x123   : > { %v739_v48 = vshrl.u32 %v721_v10, %v737_v26  ;;  %v742_v7 = vadd.s32 127, %v741_v28  ;;  %v608_v36 = vsel %vm594_vm1, %v605_v14, %v607_v5  ;;  %v2397_v43 = vclz %v4112_v35 }
 0x124   : > { %v599_v11 = vsel %vm595_vm4, %v583_v47, %v598_v30  ;;  %v5019_v54 = vmul.u32.u64.low %v4949_v6, %v608_v36  ;;  %v5020_v10 = vmul.u32.u64.high %v4949_v6, %v608_v36, %v5019_v54  ;;  %vm2236_vm7 = vcmp.gt.s32.totalorder %v2235_v37, 0 }
 0x125   : > { %v740_v52 = vor.u32 %v739_v48, %v738_v34  ;;  %v743_v53 = vshll.u32 %v742_v7, 23  ;;  %v4113_v55 = vadd.s32 4294967294, %v2397_v43  ;;  %v2385_v39 = vadd.s32 %v4921_v56, %v4927_v60 }
 0x126   : > { %v5023_v57 = vmul.u32.u64.low %v4949_v6, %v604_v46  ;;  %v5024_v33 = vmul.u32.u64.high %v4949_v6, %v604_v46, %v5023_v57  ;;  %v2416_v47 = vsel %vm2331_vm3, %v2415_v24, %v2391_v18  ;;  %v2237_v12 = vsel %vm2236_vm7, %v2235_v37, 0 }
 0x127   : > { %v744_v59 = vor.u32 4788187, %v743_v53  ;;  %v5031_v62 = vand.u32 3, %v758_v40  ;;  %vm4114_vm8 = vcmp.lt.s32.totalorder %v4113_v55, 0  ;;  %v600_v1 = vsel %vm594_vm1, %v597_v44, %v599_v11 }
 0x128   : > { %v2239_v3 = vand.u32 31, %v2237_v12  ;;  %v747_v16 = vcvt.s32.f32 %v740_v52  ;;  %v2400_v22 = vsel %vm4114_vm8, 0, %v4113_v55  ;;  %vm618_vm9 = vc.u32 %v5020_v10, %v5023_v57 }
 0x129   : > { %v745_v9 = vand.u32 2147483647, %v744_v59  ;;  %v2401_v14 = vsub.s32 32, %v2400_v22  ;;  %v2405_v26 = vsub.s32 4294967266, %v2400_v22  ;;  %v2418_v56 = vsel %vm4996_vm6, 0, %v2416_v47 }
 0x12a   : > { %v619_v60 = vadd.s32 1, %v5024_v33  ;;  %v616_v24 = vmul.u32 %v4949_v6, %v600_v1  ;;  %v5041_v28 = vshrl.u32 %v2237_v12, 5  ;;  %v2240_v27 = vsub.s32 32, %v2239_v3 }
 0x12b   : > { %v748_v18 = vmul.f32 %v747_v16, %v745_v9  ;;  %v2402_v30 = vshll.u32 %v4979_v0, %v2400_v22  ;;  %v2403_v31 = vshrl.u32 %v2385_v39, %v2401_v14  ;;  %v2406_v34 = vadd.s32 127, %v2405_v26 }
 0x12c   : > { %v620_v35 = vsel %vm618_vm9, %v619_v60, %v5024_v33  ;;  %v2242_v48 = vshll.u32 %v4656_v15, %v2239_v3  ;;  %v2243_v7 = vshrl.u32 %v4657_v19, %v2240_v27  ;;  %v2245_v40 = vshll.u32 %v4657_v19, %v2239_v3 }
 0x12d   : > { %v749_v46 = vxor.u32 2147483648, %v748_v18  ;;  %v621_v5 = vadd.s32 %v620_v35, %v616_v24  ;;  %v2404_v36 = vor.u32 %v2403_v31, %v2402_v30  ;;  %v2407_v37 = vshll.u32 %v2406_v34, 23 }
 0x12e   : > { %v2246_v6 = vshrl.u32 %v4658_v21, %v2240_v27  ;;  %v2248_v44 = vshll.u32 %v4658_v21, %v2239_v3  ;;  %v2249_v11 = vshrl.u32 %v4659_v23, %v2240_v27  ;;  %v2244_v54 = vor.u32 %v2243_v7, %v2242_v48 }
 0x12f   : > { %v750_v43 = vsel %vm667_vm14, %v749_v46, %v748_v18  ;;  %v622_v0 = vadd.s32 536870912, %v621_v5  ;;  %v2408_v53 = vor.u32 4788187, %v2407_v37  ;;  %v2251_v55 = vshll.u32 %v4659_v23, %v2239_v3 }
 0x130   : > { %v753_v52 = vsel %vm4953_vm15, %v4826_v41, %v750_v43  ;;  %v2411_v33 = vcvt.s32.f32 %v2404_v36  ;;  %v2252_v39 = vshrl.u32 %v4660_v25, %v2240_v27  ;;  %v2247_v12 = vor.u32 %v2246_v6, %v2245_v40 }
 0x131   : > { %4459 = vcosq.f32 %v753_v52  ;;  %v5057_v59 = vshrl.u32 %v622_v0, 30  ;;  %v2409_v47 = vand.u32 2147483647, %v2408_v53  ;;  %v2255_v1 = vshrl.u32 %v4661_v32, %v2240_v27 }
 0x132   : > { %4461 = vsinq.f32 %v753_v52  ;;  %v2253_v16 = vor.u32 %v2252_v39, %v2251_v55  ;;  %v2250_v22 = vor.u32 %v2249_v11, %v2248_v44  ;;  %v2254_v14 = vshll.u32 %v4660_v25, %v2239_v3 }
 0x133   : > { %v624_v9 = vshll.u32 %v5057_v59, 30  ;;  %v2412_v13 = vmul.f32 %v2411_v33, %v2409_v47  ;;  %v2422_v26 = vadd.s32 3, %v2418_v56  ;;  %vm2257_vm10 = vcmp.lt.s32.totalorder %v5041_v28, 1 }
 0x134   : > { %v5068_v18 = vshll.u32 %v2233_v8, 8  ;;  %vm761_vm11 = vcmp.eq.s32.totalorder %v5031_v62, 0  ;;  %v2256_v30 = vor.u32 %v2255_v1, %v2254_v14  ;;  %vm2260_vm12 = vcmp.lt.s32.totalorder %v5041_v28, 4 }
 0x135   : > { %v5063_v60 = vsub.s32 %v621_v5, %v624_v9  ;;  %v2413_v24 = vxor.u32 2147483648, %v2412_v13  ;;  %v2265_v31 = vsel %vm2257_vm10, %v2244_v54, %v2247_v12  ;;  %vm760_vm13 = vcmp.lt.s32.totalorder %v5031_v62, 2 }
 0x136   : > { %v2241_v56 = vshrl.u32 %v4656_v15, %v2240_v27  ;;  %vm2259_vm14 = vcmp.lt.s32.totalorder %v5041_v28, 3  ;;  %v2266_v17 = vsel %vm2260_vm12, %v2253_v16, 920167782  ;;  %vm757_vm15 = vweird.f32 %v4826_v41 }
 0x137   : > { %v627_v3 = vsub.s32 0, %v5063_v60  ;;  %v2414_v8 = vsel %vm2331_vm3, %v2413_v24, %v2412_v13  ;;  %vm563_vm0 = vcmp.lt.s32.totalorder %v4832_v45, 0  ;;  %vm2258_vm1 = vcmp.lt.s32.totalorder %v5041_v28, 2 }
 0x138   : > { %v2262_v34 = vsel %vm2260_vm12, %v2250_v22, 2102212464  ;;  %v2267_v27 = vsel %vm2259_vm14, %v2250_v22, %v2266_v17  ;;  %v2417_v35 = vsel %vm4996_vm6, %v4829_v42, %v2414_v8  ;;  %v2269_v48 = vsel %vm2257_vm10, %v2247_v12, %v2250_v22  ;;  %v5149_v8 = vpop.f32.mrb[5].mxu0 }
 0x139   : > { %v4044_v46 = vmin.u32 %v627_v3, %v5063_v60  ;;  %v2268_v5 = vsel %vm2258_vm1, %v2265_v31, %v2267_v27  ;;  %4463 = vcosq.f32 %v2417_v35  ;;  %v2270_v7 = vsel %vm2260_vm12, %v2256_v30, 1326507024 }
 0x13a   : > { %v5100_v36 = vmul.u32.u64.low %v5068_v18, %v2268_v5  ;;  %v5101_v37 = vmul.u32.u64.high %v5068_v18, %v2268_v5, %v5100_v36  ;;  %vm764_vm2 = vcmp.eq.s32.totalorder %v5031_v62, 2  ;;  %4465 = vsinq.f32 %v2417_v35 }
 0x13b   : > { %v4460_v40 = vpop.eup %4459  ;;  %v629_v29 = vclz %v4044_v46  ;;  %v647_v6 = vsub.s32 4, %v5057_v59  ;;  %v2261_v44 = vsel %vm2257_vm10, %v2241_v56, %v2244_v54  ;;  %v2263_v11 = vsel %vm2259_vm14, %v2247_v12, %v2262_v34 }
 0x13c   : > { %v4462_v43 = vpop.eup %4461  ;;  %v765_v0 = vxor.u32 2147483648, %v4460_v40  ;;  %v2271_v52 = vsel %vm2259_vm14, %v2253_v16, %v2270_v7  ;;  %v5118_v39 = vadd.f32 %v4838_v50, %v4823_v38  ;;  %v2423_v1 = vand.u32 3, %v2422_v26 }
 0x13d   : > { %v762_v53 = vxor.u32 2147483648, %v4462_v43  ;;  %v4045_v55 = vadd.s32 4294967294, %v629_v29  ;;  %v2272_v33 = vsel %vm2258_vm1, %v2269_v48, %v2271_v52  ;;  %v2264_v16 = vsel %vm2258_vm1, %v2261_v44, %v2263_v11 }
 0x13e   : > { %v766_v47 = vsel %vm764_vm2, %v765_v0, %v4462_v43  ;;  %v5121_v9 = vmul.u32.u64.low %v5068_v18, %v2272_v33  ;;  %v5122_v54 = vmul.u32.u64.high %v5068_v18, %v2272_v33, %v5121_v9  ;;  %v2283_v13 = vadd.s32 1, %v5101_v37 }
 0x13f   : > { %v763_v12 = vsel %vm761_vm11, %v4460_v40, %v762_v53  ;;  %vm4046_vm3 = vcmp.lt.s32.totalorder %v4045_v55, 0  ;;  %v617_v50 = vadd.s32 %v5023_v57, %v5020_v10  ;;  %v876_v26 = vand.u32 2139095040, %v5118_v39 }
 0x140   : > { %v767_v22 = vsel %vm760_vm13, %v763_v12, %v766_v47  ;;  %v632_v14 = vsel %vm4046_vm3, 0, %v4045_v55  ;;  %vm2421_vm4 = vweird.f32 %v4829_v42  ;;  %v648_v28 = vsel %vm563_vm0, %v647_v6, %v5057_v59 }
 0x141   : > { %v768_v24 = vsel %vm757_vm15, nan, %v767_v22  ;;  %v633_v30 = vsub.s32 32, %v632_v14  ;;  %v637_v31 = vsub.s32 4294967266, %v632_v14  ;;  %v2280_v10 = vmul.u32 %v5068_v18, %v2264_v16 }
 0x142   : > { %3890 = vst [vmem:[%s5140_s24 + $0x8] sm:$0xff] %v768_v24  ;;  %vm2282_vm5 = vc.u32 %v5122_v54, %v5100_v36  ;;  %v873_v41 = vand.u32 2147483647, %v5118_v39  ;;  %v877_v57 = vshrl.u32 %v876_v26, 23  ;;  %v634_v62 = vshll.u32 %v5063_v60, %v632_v14 }
 0x143   : > { %v635_v3 = vshrl.u32 %v617_v50, %v633_v30  ;;  %v638_v56 = vadd.s32 127, %v637_v31  ;;  %v2284_v17 = vsel %vm2282_vm5, %v2283_v13, %v5101_v37  ;;  %v4464_v59 = vpop.eup %4463  ;;  %vm2428_vm6 = vcmp.eq.s32.totalorder %v2423_v1, 2 }
 0x144   : > { %vm5153_vm7 = vcmp.le.f32.partialorder %v561_v2, 0.7853982  ;;  %v2285_v34 = vadd.s32 %v2284_v17, %v2280_v10  ;;  %v4055_v27 = vadd.s32 4294967169, %v877_v57  ;;  %v4466_v35 = vpop.eup %4465  ;;  %v2429_v46 = vxor.u32 2147483648, %v4464_v59 }
 0x145   : > { %v636_v5 = vor.u32 %v635_v3, %v634_v62  ;;  %v639_v60 = vshll.u32 %v638_v56, 23  ;;  %v650_v48 = vsel %vm5153_vm7, 0, %v648_v28  ;;  %v2426_v7 = vxor.u32 2147483648, %v4466_v35 }
 0x146   : > { %v2286_v37 = vadd.s32 536870912, %v2285_v34  ;;  %v880_v40 = vand.u32 8388607, %v873_v41  ;;  %v883_v29 = vadd.s32 1, %v4055_v27  ;;  %vm2424_vm8 = vcmp.lt.s32.totalorder %v2423_v1, 2 }
 0x147   : > { %vm2425_vm9 = vcmp.eq.s32.totalorder %v2423_v1, 0  ;;  %v2430_v2 = vsel %vm2428_vm6, %v2429_v46, %v4466_v35  ;;  %v640_v6 = vor.u32 4788187, %v639_v60  ;;  %v654_v0 = vadd.s32 3, %v650_v48 }
 0x148   : > { %v2427_v43 = vsel %vm2425_vm9, %v4464_v59, %v2426_v7  ;;  %v5161_v44 = vshrl.u32 %v2286_v37, 30  ;;  %vm884_vm10 = vcmp.gt.s32.totalorder %v883_v29, 0  ;;  %v643_v53 = vcvt.s32.f32 %v636_v5 }
 0x149   : > { %v2431_v11 = vsel %vm2424_vm8, %v2427_v43, %v2430_v2  ;;  %v641_v52 = vand.u32 2147483647, %v640_v6  ;;  %v885_v55 = vsel %vm884_vm10, %v883_v29, 0  ;;  %v881_v9 = vor.u32 8388608, %v880_v40  ;;  %v5216_v2 = vpop.f32.mrb[5].mxu1 }
 0x14a   : > { %v2432_v33 = vsel %vm2421_vm4, nan, %v2431_v11  ;;  %v2288_v47 = vshll.u32 %v5161_v44, 30  ;;  %v887_v1 = vand.u32 31, %v885_v55  ;;  %v5167_v16 = vand.u32 3, %v654_v0 }
 0x14b   : > { %3906 = vst [vmem:[%s5140_s24 + $0x88] sm:$0xff] %v2432_v33  ;;  %v644_v12 = vmul.f32 %v643_v53, %v641_v52  ;;  %v2281_v50 = vadd.s32 %v5100_v36, %v5122_v54  ;;  %v5175_v26 = vadd.f32 %v4840_v51, %v4823_v38  ;;  %v5178_v24 = vshrl.u32 %v885_v55, 5 }
 0x14c   : > { %v5169_v13 = vsub.s32 %v2285_v34, %v2288_v47  ;;  %v888_v14 = vsub.s32 32, %v887_v1  ;;  %v5180_v30 = vshll.u32 %v881_v9, 8  ;;  %v5184_v31 = vadd.f32 %v4823_v38, %v4847_v58 }
 0x14d   : > { %v645_v22 = vxor.u32 2147483648, %v644_v12  ;;  %v890_v36 = vshll.u32 %v4656_v15, %v887_v1  ;;  %v893_v62 = vshll.u32 %v4657_v19, %v887_v1  ;;  %v2311_v58 = vsub.s32 4, %v5161_v44 }
 0x14e   : > { %v2291_v42 = vsub.s32 0, %v5169_v13  ;;  %v891_v54 = vshrl.u32 %v4657_v19, %v888_v14  ;;  %v894_v51 = vshrl.u32 %v4658_v21, %v888_v14  ;;  %v897_v38 = vshrl.u32 %v4659_v23, %v888_v14 }
 0x14f   : > { %v646_v28 = vsel %vm563_vm0, %v645_v22, %v644_v12  ;;  %v896_v3 = vshll.u32 %v4658_v21, %v887_v1  ;;  %v2540_v56 = vand.u32 2139095040, %v5175_v26  ;;  %v899_v18 = vshll.u32 %v4659_v23, %v887_v1 }
 0x150   : > { %v649_v10 = vsel %vm5153_vm7, %v4832_v45, %v646_v28  ;;  %v4108_v57 = vmin.u32 %v2291_v42, %v5169_v13  ;;  %v892_v59 = vor.u32 %v891_v54, %v890_v36  ;;  %v895_v34 = vor.u32 %v894_v51, %v893_v62 }
 0x151   : > { %4467 = vcosq.f32 %v649_v10  ;;  %v898_v27 = vor.u32 %v897_v38, %v896_v3  ;;  %v900_v35 = vshrl.u32 %v4660_v25, %v888_v14  ;;  %vm905_vm11 = vcmp.lt.s32.totalorder %v5178_v24, 1 }
 0x152   : > { %4469 = vsinq.f32 %v649_v10  ;;  %v2293_v17 = vclz %v4108_v57  ;;  %v902_v5 = vshll.u32 %v4660_v25, %v887_v1  ;;  %v903_v60 = vshrl.u32 %v4661_v32, %v888_v14 }
 0x153   : > { %vm906_vm12 = vcmp.lt.s32.totalorder %v5178_v24, 2  ;;  %vm660_vm13 = vcmp.eq.s32.totalorder %v5167_v16, 2  ;;  %v889_v48 = vshrl.u32 %v4656_v15, %v888_v14  ;;  %v901_v7 = vor.u32 %v900_v35, %v899_v18 }
 0x154   : > { %v4109_v46 = vadd.s32 4294967294, %v2293_v17  ;;  %vm907_vm14 = vcmp.lt.s32.totalorder %v5178_v24, 3  ;;  %vm908_vm15 = vcmp.lt.s32.totalorder %v5178_v24, 4  ;;  %vm657_vm0 = vcmp.eq.s32.totalorder %v5167_v16, 0 }
 0x155   : > { %vm2227_vm1 = vcmp.lt.s32.totalorder %v4850_v63, 0  ;;  %v904_v37 = vor.u32 %v903_v60, %v902_v5  ;;  %v910_v40 = vsel %vm908_vm15, %v898_v27, 2102212464  ;;  %v913_v29 = vsel %vm905_vm11, %v892_v59, %v895_v34 }
 0x156   : > { %vm4110_vm2 = vcmp.lt.s32.totalorder %v4109_v46, 0  ;;  %vm656_vm3 = vcmp.lt.s32.totalorder %v5167_v16, 2  ;;  %v909_v43 = vsel %vm905_vm11, %v889_v48, %v892_v59  ;;  %v914_v0 = vsel %vm908_vm15, %v901_v7, 920167782 }
 0x157   : > { %v2296_v6 = vsel %vm4110_vm2, 0, %v4109_v46  ;;  %v2541_v11 = vshrl.u32 %v2540_v56, 23  ;;  %vm653_vm4 = vweird.f32 %v4832_v45  ;;  %v915_v55 = vsel %vm907_vm14, %v898_v27, %v914_v0 }
 0x158   : > { %v2297_v52 = vsub.s32 32, %v2296_v6  ;;  %v2301_v53 = vsub.s32 4294967266, %v2296_v6  ;;  %v917_v33 = vsel %vm905_vm11, %v895_v34, %v898_v27  ;;  %vm5230_vm5 = vcmp.le.f32.partialorder %v2225_v61, 0.7853982 }
 0x159   : > { %v911_v9 = vsel %vm907_vm14, %v895_v34, %v910_v40  ;;  %v916_v12 = vsel %vm906_vm12, %v913_v29, %v915_v55  ;;  %v918_v1 = vsel %vm908_vm15, %v904_v37, 1326507024  ;;  %v4119_v22 = vadd.s32 4294967169, %v2541_v11 }
 0x15a   : > { %v2298_v14 = vshll.u32 %v5169_v13, %v2296_v6  ;;  %v2299_v42 = vshrl.u32 %v2281_v50, %v2297_v52  ;;  %v2302_v28 = vadd.s32 127, %v2301_v53  ;;  %v919_v61 = vsel %vm907_vm14, %v901_v7, %v918_v1 }
 0x15b   : > { %v4468_v36 = vpop.eup %4467  ;;  %v920_v54 = vsel %vm906_vm12, %v917_v33, %v919_v61  ;;  %v5246_v51 = vmul.u32.u64.low %v5180_v30, %v916_v12  ;;  %v5247_v10 = vmul.u32.u64.high %v5180_v30, %v916_v12, %v5246_v51  ;;  %v2547_v57 = vadd.s32 1, %v4119_v22 }
 0x15c   : > { %v4470_v62 = vpop.eup %4469  ;;  %v661_v38 = vxor.u32 2147483648, %v4468_v36  ;;  %v2300_v3 = vor.u32 %v2299_v42, %v2298_v14  ;;  %v2303_v56 = vshll.u32 %v2302_v28, 23  ;;  %v2537_v13 = vand.u32 2147483647, %v5175_v26 }
 0x15d   : > { %v658_v50 = vxor.u32 2147483648, %v4470_v62  ;;  %v5252_v17 = vmul.u32.u64.low %v5180_v30, %v920_v54  ;;  %v5253_v59 = vmul.u32.u64.high %v5180_v30, %v920_v54, %v5252_v17  ;;  %vm2548_vm6 = vcmp.gt.s32.totalorder %v2547_v57, 0 }
 0x15e   : > { %v662_v34 = vsel %vm660_vm13, %v661_v38, %v4470_v62  ;;  %v2304_v27 = vor.u32 4788187, %v2303_v56  ;;  %v912_v18 = vsel %vm906_vm12, %v909_v43, %v911_v9  ;;  %v2549_v35 = vsel %vm2548_vm6, %v2547_v57, 0 }
 0x15f   : > { %v659_v46 = vsel %vm657_vm0, %v4468_v36, %v658_v50  ;;  %v2312_v5 = vsel %vm2227_vm1, %v2311_v58, %v5161_v44  ;;  %v931_v60 = vadd.s32 1, %v5247_v10  ;;  %v2551_v48 = vand.u32 31, %v2549_v35 }
 0x160   : > { %v663_v7 = vsel %vm656_vm3, %v659_v46, %v662_v34  ;;  %v2305_v37 = vand.u32 2147483647, %v2304_v27  ;;  %v2307_v40 = vcvt.s32.f32 %v2300_v3  ;;  %v2544_v24 = vand.u32 8388607, %v2537_v13 }
 0x161   : > { %v664_v29 = vsel %vm653_vm4, nan, %v663_v7  ;;  %v928_v6 = vmul.u32 %v5180_v30, %v912_v18  ;;  %vm930_vm7 = vc.u32 %v5253_v59, %v5246_v51  ;;  %v2552_v44 = vsub.s32 32, %v2551_v48 }
 0x162   : > { %3889 = vst [vmem:[%s5140_s24] sm:$0xff] %v664_v29  ;;  %v2308_v58 = vmul.f32 %v2307_v40, %v2305_v37  ;;  %v2314_v16 = vsel %vm5230_vm5, 0, %v2312_v5  ;;  %v932_v43 = vsel %vm930_vm7, %v931_v60, %v5247_v10  ;;  %v2550_v0 = vshrl.u32 %v2549_v35, 5 }
 0x163   : > { %v933_v11 = vadd.s32 %v932_v43, %v928_v6  ;;  %v2554_v52 = vshll.u32 %v4656_v15, %v2551_v48  ;;  %v2555_v45 = vshrl.u32 %v4657_v19, %v2552_v44  ;;  %v2558_v53 = vshrl.u32 %v4658_v21, %v2552_v44 }
 0x164   : > { %v2309_v30 = vxor.u32 2147483648, %v2308_v58  ;;  %v2557_v55 = vshll.u32 %v4657_v19, %v2551_v48  ;;  %v2560_v33 = vshll.u32 %v4658_v21, %v2551_v48  ;;  %v2561_v9 = vshrl.u32 %v4659_v23, %v2552_v44 }
 0x165   : > { %v934_v12 = vadd.s32 536870912, %v933_v11  ;;  %v2556_v1 = vor.u32 %v2555_v45, %v2554_v52  ;;  %v2563_v22 = vshll.u32 %v4659_v23, %v2551_v48  ;;  %v2564_v14 = vshrl.u32 %v4660_v25, %v2552_v44 }
 0x166   : > { %v2310_v42 = vsel %vm2227_vm1, %v2309_v30, %v2308_v58  ;;  %v2559_v28 = vor.u32 %v2558_v53, %v2557_v55  ;;  %v2562_v61 = vor.u32 %v2561_v9, %v2560_v33  ;;  %v2567_v36 = vshrl.u32 %v4661_v32, %v2552_v44 }
 0x167   : > { %v2313_v54 = vsel %vm5230_vm5, %v4850_v63, %v2310_v42  ;;  %v935_v10 = vshrl.u32 %v934_v12, 30  ;;  %v2565_v57 = vor.u32 %v2564_v14, %v2563_v22  ;;  %v2566_v62 = vshll.u32 %v4660_v25, %v2551_v48 }
 0x168   : > { %4471 = vcosq.f32 %v2313_v54  ;;  %v2318_v38 = vadd.s32 3, %v2314_v16  ;;  %v2545_v3 = vor.u32 8388608, %v2544_v24  ;;  %vm2569_vm8 = vcmp.lt.s32.totalorder %v2550_v0, 1 }
 0x169   : > { %4473 = vsinq.f32 %v2313_v54  ;;  %v936_v56 = vshll.u32 %v935_v10, 30  ;;  %v2568_v50 = vor.u32 %v2567_v36, %v2566_v62  ;;  %vm2572_vm9 = vcmp.lt.s32.totalorder %v2550_v0, 4 }
 0x16a   : > { %v2553_v17 = vshrl.u32 %v4656_v15, %v2552_v44  ;;  %vm2571_vm10 = vcmp.lt.s32.totalorder %v2550_v0, 3  ;;  %v2577_v34 = vsel %vm2569_vm8, %v2556_v1, %v2559_v28  ;;  %v2578_v47 = vsel %vm2572_vm9, %v2565_v57, 920167782 }
 0x16b   : > { %v5298_v27 = vsub.s32 %v933_v11, %v936_v56  ;;  %vm2570_vm11 = vcmp.lt.s32.totalorder %v2550_v0, 2  ;;  %v2574_v18 = vsel %vm2572_vm9, %v2562_v61, 2102212464  ;;  %v2579_v35 = vsel %vm2571_vm10, %v2562_v61, %v2578_v47 }
 0x16c   : > { %v959_v46 = vsub.s32 4, %v935_v10  ;;  %v2580_v5 = vsel %vm2570_vm11, %v2577_v34, %v2579_v35  ;;  %v2581_v60 = vsel %vm2569_vm8, %v2559_v28, %v2562_v61  ;;  %v2585_v48 = vshll.u32 %v2545_v3, 8 }
 0x16d   : > { %v2319_v7 = vand.u32 3, %v2318_v38  ;;  %v939_v37 = vsub.s32 0, %v5298_v27  ;;  %v2573_v40 = vsel %vm2569_vm8, %v2553_v17, %v2556_v1  ;;  %v2582_v24 = vsel %vm2572_vm9, %v2568_v50, 1326507024 }
 0x16e   : > { %v2575_v29 = vsel %vm2571_vm10, %v2559_v28, %v2574_v18  ;;  %v2583_v6 = vsel %vm2571_vm10, %v2565_v57, %v2582_v24  ;;  %v5309_v44 = vmul.u32.u64.low %v2585_v48, %v2580_v5  ;;  %v5310_v58 = vmul.u32.u64.high %v2585_v48, %v2580_v5, %v5309_v44  ;;  %v5343_v5 = vpop.f32.mrb[6].mxu0 }
 0x16f   : > { %vm2317_vm12 = vweird.f32 %v4850_v63  ;;  %vm875_vm13 = vcmp.lt.s32.totalorder %v5118_v39, 0  ;;  %v4056_v16 = vmin.u32 %v939_v37, %v5298_v27  ;;  %v2584_v43 = vsel %vm2570_vm11, %v2581_v60, %v2583_v6 }
 0x170   : > { %v960_v11 = vsel %vm875_vm13, %v959_v46, %v935_v10  ;;  %v5318_v52 = vmul.u32.u64.low %v2585_v48, %v2584_v43  ;;  %v5319_v45 = vmul.u32.u64.high %v2585_v48, %v2584_v43, %v5318_v52  ;;  %v772_v53 = vand.u32 2139095040, %v5184_v31 }
 0x171   : > { %vm5324_vm14 = vcmp.le.f32.partialorder %v873_v41, 0.7853982  ;;  %v941_v55 = vclz %v4056_v16  ;;  %v2576_v33 = vsel %vm2570_vm11, %v2573_v40, %v2575_v29  ;;  %v769_v9 = vand.u32 2147483647, %v5184_v31 }
 0x172   : > { %v4472_v12 = vpop.eup %4471  ;;  %vm2320_vm15 = vcmp.lt.s32.totalorder %v2319_v7, 2  ;;  %vm2321_vm0 = vcmp.eq.s32.totalorder %v2319_v7, 0  ;;  %v2595_v1 = vadd.s32 1, %v5310_v58  ;;  %v773_v22 = vshrl.u32 %v772_v53, 23 }
 0x173   : > { %v4474_v14 = vpop.eup %4473  ;;  %vm2324_vm1 = vcmp.eq.s32.totalorder %v2319_v7, 2  ;;  %v2325_v42 = vxor.u32 2147483648, %v4472_v12  ;;  %v4057_v28 = vadd.s32 4294967294, %v941_v55  ;;  %v962_v41 = vsel %vm5324_vm14, 0, %v960_v11 }
 0x174   : > { %v2322_v61 = vxor.u32 2147483648, %v4474_v14  ;;  %v2592_v36 = vmul.u32 %v2585_v48, %v2576_v33  ;;  %vm2594_vm2 = vc.u32 %v5319_v45, %v5309_v44  ;;  %v4051_v0 = vadd.s32 4294967169, %v773_v22 }
 0x175   : > { %v2326_v54 = vsel %vm2324_vm1, %v2325_v42, %v4474_v14  ;;  %vm4058_vm3 = vcmp.lt.s32.totalorder %v4057_v28, 0  ;;  %v2596_v10 = vsel %vm2594_vm2, %v2595_v1, %v5310_v58  ;;  %v776_v57 = vand.u32 8388607, %v769_v9 }
 0x176   : > { %v2323_v62 = vsel %vm2321_vm0, %v4472_v12, %v2322_v61  ;;  %v944_v38 = vsel %vm4058_vm3, 0, %v4057_v28  ;;  %v2597_v3 = vadd.s32 %v2596_v10, %v2592_v36  ;;  %v779_v56 = vadd.s32 1, %v4051_v0 }
 0x177   : > { %v2327_v50 = vsel %vm2320_vm15, %v2323_v62, %v2326_v54  ;;  %v929_v17 = vadd.s32 %v5246_v51, %v5253_v59  ;;  %v945_v34 = vsub.s32 32, %v944_v38  ;;  %v949_v47 = vsub.s32 4294967266, %v944_v38 }
 0x178   : > { %v2328_v18 = vsel %vm2317_vm12, nan, %v2327_v50  ;;  %v966_v35 = vadd.s32 3, %v962_v41  ;;  %v2598_v46 = vadd.s32 536870912, %v2597_v3  ;;  %vm780_vm4 = vcmp.gt.s32.totalorder %v779_v56, 0 }
 0x179   : > { %3905 = vst [vmem:[%s5140_s24 + $0x80] sm:$0xff] %v2328_v18  ;;  %v946_v60 = vshll.u32 %v5298_v27, %v944_v38  ;;  %v947_v48 = vshrl.u32 %v929_v17, %v945_v34  ;;  %v950_v37 = vadd.s32 127, %v949_v47  ;;  %v781_v7 = vsel %vm780_vm4, %v779_v56, 0  ;;  %v5354_v27 = vld [vmem:[%s7556_s2] ss:$0 sm:$0xff] }
 0x17a   : > { %v2599_v40 = vshrl.u32 %v2598_v46, 30  ;;  %v777_v24 = vor.u32 8388608, %v776_v57  ;;  %v783_v29 = vand.u32 31, %v781_v7  ;;  %v5347_v6 = vand.u32 3, %v966_v35 }
 0x17b   : > { %v948_v51 = vor.u32 %v947_v48, %v946_v60  ;;  %v951_v59 = vshll.u32 %v950_v37, 23  ;;  %vm2539_vm5 = vcmp.lt.s32.totalorder %v5175_v26, 0  ;;  %v2593_v43 = vadd.s32 %v5309_v44, %v5319_v45 }
 0x17c   : > { %v2600_v63 = vshll.u32 %v2599_v40, 30  ;;  %v784_v58 = vsub.s32 32, %v783_v29  ;;  %v5358_v11 = vadd.f32 %v5354_v27, %v4853_v4  ;;  %v5362_v52 = vadd.f32 %v5354_v27, %v4936_v20 }
 0x17d   : > { %v952_v16 = vor.u32 4788187, %v951_v59  ;;  %v782_v55 = vshrl.u32 %v781_v7, 5  ;;  %v5367_v12 = vshll.u32 %v777_v24, 8  ;;  %v955_v45 = vcvt.s32.f32 %v948_v51 }
 0x17e   : > { %v5364_v53 = vsub.s32 %v2597_v3, %v2600_v63  ;;  %v787_v33 = vshrl.u32 %v4657_v19, %v784_v58  ;;  %v790_v1 = vshrl.u32 %v4658_v21, %v784_v58  ;;  %v793_v22 = vshrl.u32 %v4659_v23, %v784_v58 }
 0x17f   : > { %v953_v44 = vand.u32 2147483647, %v952_v16  ;;  %v2623_v14 = vsub.s32 4, %v2599_v40  ;;  %v786_v42 = vshll.u32 %v4656_v15, %v783_v29  ;;  %v789_v20 = vshll.u32 %v4657_v19, %v783_v29 }
 0x180   : > { %v2603_v4 = vsub.s32 0, %v5364_v53  ;;  %v792_v41 = vshll.u32 %v4658_v21, %v783_v29  ;;  %v795_v61 = vshll.u32 %v4659_v23, %v783_v29  ;;  %v796_v36 = vshrl.u32 %v4660_v25, %v784_v58 }
 0x181   : > { %v956_v28 = vmul.f32 %v955_v45, %v953_v44  ;;  %v788_v54 = vor.u32 %v787_v33, %v786_v42  ;;  %v791_v10 = vor.u32 %v790_v1, %v789_v20  ;;  %v799_v57 = vshrl.u32 %v4661_v32, %v784_v58 }
 0x182   : > { %v4120_v0 = vmin.u32 %v2603_v4, %v5364_v53  ;;  %v794_v38 = vor.u32 %v793_v22, %v792_v41  ;;  %v797_v3 = vor.u32 %v796_v36, %v795_v61  ;;  %v798_v56 = vshll.u32 %v4660_v25, %v783_v29  ;;  %v5392_v29 = vpop.f32.mrb[6].mxu1 }
 0x183   : > { %v957_v62 = vxor.u32 2147483648, %v956_v28  ;;  %v2624_v17 = vsel %vm2539_vm5, %v2623_v14, %v2599_v40  ;;  %v785_v34 = vshrl.u32 %v4656_v15, %v784_v58  ;;  %v2436_v47 = vand.u32 2139095040, %v5358_v11 }
 0x184   : > { %v2605_v50 = vclz %v4120_v0  ;;  %v800_v35 = vor.u32 %v799_v57, %v798_v56  ;;  %vm801_vm6 = vcmp.lt.s32.totalorder %v782_v55, 1  ;;  %vm802_vm7 = vcmp.lt.s32.totalorder %v782_v55, 2 }
 0x185   : > { %v958_v18 = vsel %vm875_vm13, %v957_v62, %v956_v28  ;;  %vm803_vm8 = vcmp.lt.s32.totalorder %v782_v55, 3  ;;  %vm804_vm9 = vcmp.lt.s32.totalorder %v782_v55, 4  ;;  %v809_v37 = vsel %vm801_vm6, %v788_v54, %v791_v10 }
 0x186   : > { %v961_v46 = vsel %vm5324_vm14, %v5118_v39, %v958_v18  ;;  %v4121_v60 = vadd.s32 4294967294, %v2605_v50  ;;  %v806_v48 = vsel %vm804_vm9, %v794_v38, 2102212464  ;;  %v810_v7 = vsel %vm804_vm9, %v797_v3, 920167782 }
 0x187   : > { %4475 = vcosq.f32 %v961_v46  ;;  %v805_v40 = vsel %vm801_vm6, %v785_v34, %v788_v54  ;;  %v811_v24 = vsel %vm803_vm8, %v794_v38, %v810_v7  ;;  %v813_v59 = vsel %vm801_vm6, %v791_v10, %v794_v38 }
 0x188   : > { %4477 = vsinq.f32 %v961_v46  ;;  %vm4122_vm10 = vcmp.lt.s32.totalorder %v4121_v60, 0  ;;  %v812_v30 = vsel %vm802_vm7, %v809_v37, %v811_v24  ;;  %v814_v63 = vsel %vm804_vm9, %v800_v35, 1326507024 }
 0x189   : > { %v2608_v51 = vsel %vm4122_vm10, 0, %v4121_v60  ;;  %v807_v33 = vsel %vm803_vm8, %v791_v10, %v806_v48  ;;  %v815_v44 = vsel %vm803_vm8, %v797_v3, %v814_v63  ;;  %vm5411_vm11 = vcmp.le.f32.partialorder %v2537_v13, 0.7853982 }
 0x18a   : > { %v2609_v58 = vsub.s32 32, %v2608_v51  ;;  %v2613_v16 = vsub.s32 4294967266, %v2608_v51  ;;  %v2610_v45 = vshll.u32 %v5364_v53, %v2608_v51  ;;  %v816_v1 = vsel %vm802_vm7, %v813_v59, %v815_v44 }
 0x18b   : > { %v5401_v22 = vmul.u32.u64.low %v5367_v12, %v812_v30  ;;  %v5402_v4 = vmul.u32.u64.high %v5367_v12, %v812_v30, %v5401_v22  ;;  %v5406_v20 = vmul.u32.u64.low %v5367_v12, %v816_v1  ;;  %v5407_v28 = vmul.u32.u64.high %v5367_v12, %v816_v1, %v5406_v20 }
 0x18c   : > { %v2611_v14 = vshrl.u32 %v2593_v43, %v2609_v58  ;;  %v2614_v42 = vadd.s32 127, %v2613_v16  ;;  %v808_v53 = vsel %vm802_vm7, %v805_v40, %v807_v33  ;;  %v2437_v61 = vshrl.u32 %v2436_v47, 23 }
 0x18d   : > { %v2626_v54 = vsel %vm5411_vm11, 0, %v2624_v17  ;;  %v827_v43 = vadd.s32 1, %v5402_v4  ;;  %v2433_v10 = vand.u32 2147483647, %v5358_v11  ;;  %v1084_v62 = vand.u32 2139095040, %v5362_v52 }
 0x18e   : > { %v2612_v36 = vor.u32 %v2611_v14, %v2610_v45  ;;  %v2615_v0 = vshll.u32 %v2614_v42, 23  ;;  %v4115_v57 = vadd.s32 4294967169, %v2437_v61  ;;  %vm969_vm12 = vcmp.eq.s32.totalorder %v5347_v6, 0 }
 0x18f   : > { %v824_v38 = vmul.u32 %v5367_v12, %v808_v53  ;;  %vm826_vm13 = vc.u32 %v5407_v28, %v5401_v22  ;;  %vm972_vm14 = vcmp.eq.s32.totalorder %v5347_v6, 2  ;;  %v2630_v3 = vadd.s32 3, %v2626_v54 }
 0x190   : > { %v2616_v13 = vor.u32 4788187, %v2615_v0  ;;  %v828_v56 = vsel %vm826_vm13, %v827_v43, %v5402_v4  ;;  %v2443_v50 = vadd.s32 1, %v4115_v57  ;;  %v2619_v18 = vcvt.s32.f32 %v2612_v36 }
 0x191   : > { %v4476_v55 = vpop.eup %4475  ;;  %v829_v35 = vadd.s32 %v828_v56, %v824_v38  ;;  %v2440_v60 = vand.u32 8388607, %v2433_v10  ;;  %v1085_v12 = vshrl.u32 %v1084_v62, 23  ;;  %vm965_vm0 = vweird.f32 %v5118_v39 }
 0x192   : > { %v4478_v17 = vpop.eup %4477  ;;  %v973_v34 = vxor.u32 2147483648, %v4476_v55  ;;  %v2617_v47 = vand.u32 2147483647, %v2616_v13  ;;  %vm2444_vm15 = vcmp.gt.s32.totalorder %v2443_v50, 0  ;;  %vm968_vm1 = vcmp.lt.s32.totalorder %v5347_v6, 2 }
 0x193   : > { %v970_v46 = vxor.u32 2147483648, %v4478_v17  ;;  %v830_v7 = vadd.s32 536870912, %v829_v35  ;;  %v2445_v40 = vsel %vm2444_vm15, %v2443_v50, 0  ;;  %v5433_v63 = vand.u32 3, %v2630_v3 }
 0x194   : > { %v974_v48 = vsel %vm972_vm14, %v973_v34, %v4478_v17  ;;  %v2620_v37 = vmul.f32 %v2619_v18, %v2617_v47  ;;  %v2447_v51 = vand.u32 31, %v2445_v40  ;;  %v2441_v33 = vor.u32 8388608, %v2440_v60 }
 0x195   : > { %v971_v24 = vsel %vm969_vm12, %v4476_v55, %v970_v46  ;;  %v5435_v58 = vshrl.u32 %v830_v7, 30  ;;  %v1081_v45 = vand.u32 2147483647, %v5362_v52  ;;  %v4063_v4 = vadd.s32 4294967169, %v1085_v12 }
 0x196   : > { %v975_v30 = vsel %vm968_vm1, %v971_v24, %v974_v48  ;;  %v2621_v59 = vxor.u32 2147483648, %v2620_v37  ;;  %v2448_v44 = vsub.s32 32, %v2447_v51  ;;  %v2450_v6 = vshll.u32 %v4656_v15, %v2447_v51 }
 0x197   : > { %v976_v16 = vsel %vm965_vm0, nan, %v975_v30  ;;  %v832_v1 = vshll.u32 %v5435_v58, 30  ;;  %v2453_v20 = vshll.u32 %v4657_v19, %v2447_v51  ;;  %v2456_v36 = vshll.u32 %v4658_v21, %v2447_v51 }
 0x198   : > { %3892 = vst [vmem:[%s5140_s24 + $0x18] sm:$0xff] %v976_v16  ;;  %v2622_v39 = vsel %vm2539_vm5, %v2621_v59, %v2620_v37  ;;  %v2451_v42 = vshrl.u32 %v4657_v19, %v2448_v44  ;;  %v2454_v53 = vshrl.u32 %v4658_v21, %v2448_v44  ;;  %v2457_v0 = vshrl.u32 %v4659_v23, %v2448_v44 }
 0x199   : > { %v2625_v14 = vsel %vm5411_vm11, %v5175_v26, %v2622_v39  ;;  %v5449_v61 = vsub.s32 %v829_v35, %v832_v1  ;;  %v825_v54 = vadd.s32 %v5401_v22, %v5407_v28  ;;  %v2446_v43 = vshrl.u32 %v2445_v40, 5 }
 0x19a   : > { %4479 = vcosq.f32 %v2625_v14  ;;  %v5455_v41 = vshll.u32 %v2441_v33, 8  ;;  %v2452_v62 = vor.u32 %v2451_v42, %v2450_v6  ;;  %v2455_v13 = vor.u32 %v2454_v53, %v2453_v20  ;;  %v5485_v53 = vpop.f32.mrb[7].mxu0 }
 0x19b   : > { %4481 = vsinq.f32 %v2625_v14  ;;  %v835_v57 = vsub.s32 0, %v5449_v61  ;;  %v2458_v38 = vor.u32 %v2457_v0, %v2456_v36  ;;  %v2459_v55 = vshll.u32 %v4659_v23, %v2447_v51 }
 0x19c   : > { %v2460_v3 = vshrl.u32 %v4660_v25, %v2448_v44  ;;  %v2462_v56 = vshll.u32 %v4660_v25, %v2447_v51  ;;  %v2463_v50 = vshrl.u32 %v4661_v32, %v2448_v44  ;;  %vm2636_vm2 = vcmp.eq.s32.totalorder %v5433_v63, 2 }
 0x19d   : > { %v4052_v22 = vmin.u32 %v835_v57, %v5449_v61  ;;  %v855_v28 = vsub.s32 4, %v5435_v58  ;;  %v5467_v17 = vand.u32 8388607, %v1081_v45  ;;  %v1091_v34 = vadd.s32 1, %v4063_v4 }
 0x19e   : > { %vm2633_vm3 = vcmp.eq.s32.totalorder %v5433_v63, 0  ;;  %v2449_v47 = vshrl.u32 %v4656_v15, %v2448_v44  ;;  %v2461_v18 = vor.u32 %v2460_v3, %v2459_v55  ;;  %v2464_v35 = vor.u32 %v2463_v50, %v2462_v56 }
 0x19f   : > { %vm2465_vm4 = vcmp.lt.s32.totalorder %v2446_v43, 1  ;;  %vm2632_vm5 = vcmp.lt.s32.totalorder %v5433_v63, 2  ;;  %vm771_vm6 = vcmp.lt.s32.totalorder %v5184_v31, 0  ;;  %v837_v46 = vclz %v4052_v22 }
 0x1a0   : > { %vm2466_vm7 = vcmp.lt.s32.totalorder %v2446_v43, 2  ;;  %vm2467_vm8 = vcmp.lt.s32.totalorder %v2446_v43, 3  ;;  %vm2468_vm9 = vcmp.lt.s32.totalorder %v2446_v43, 4  ;;  %vm2629_vm10 = vweird.f32 %v5175_v26 }
 0x1a1   : > { %v2470_v60 = vsel %vm2468_vm9, %v2458_v38, 2102212464  ;;  %v2473_v12 = vsel %vm2465_vm4, %v2452_v62, %v2455_v13  ;;  %v2474_v48 = vsel %vm2468_vm9, %v2461_v18, 920167782  ;;  %v2477_v37 = vsel %vm2465_vm4, %v2455_v13, %v2458_v38 }
 0x1a2   : > { %v4053_v7 = vadd.s32 4294967294, %v837_v46  ;;  %v2469_v40 = vsel %vm2465_vm4, %v2449_v47, %v2452_v62  ;;  %v2475_v24 = vsel %vm2467_vm8, %v2458_v38, %v2474_v48  ;;  %v2478_v51 = vsel %vm2468_vm9, %v2464_v35, 1326507024 }
 0x1a3   : > { %v2471_v30 = vsel %vm2467_vm8, %v2455_v13, %v2470_v60  ;;  %v2476_v59 = vsel %vm2466_vm7, %v2473_v12, %v2475_v24  ;;  %v2479_v16 = vsel %vm2467_vm8, %v2461_v18, %v2478_v51  ;;  %vm1092_vm11 = vcmp.gt.s32.totalorder %v1091_v34, 0 }
 0x1a4   : > { %v4480_v33 = vpop.eup %4479  ;;  %vm4054_vm12 = vcmp.lt.s32.totalorder %v4053_v7, 0  ;;  %v2480_v44 = vsel %vm2466_vm7, %v2477_v37, %v2479_v16  ;;  %v5477_v39 = vmul.u32.u64.low %v5455_v41, %v2476_v59  ;;  %v5478_v1 = vmul.u32.u64.high %v5455_v41, %v2476_v59, %v5477_v39 }
 0x1a5   : > { %v4482_v6 = vpop.eup %4481  ;;  %v2637_v4 = vxor.u32 2147483648, %v4480_v33  ;;  %v840_v14 = vsel %vm4054_vm12, 0, %v4053_v7  ;;  %v5482_v42 = vmul.u32.u64.low %v5455_v41, %v2480_v44  ;;  %v5483_v20 = vmul.u32.u64.high %v5455_v41, %v2480_v44, %v5482_v42 }
 0x1a6   : > { %v2634_v36 = vxor.u32 2147483648, %v4482_v6  ;;  %v841_v0 = vsub.s32 32, %v840_v14  ;;  %v845_v57 = vsub.s32 4294967266, %v840_v14  ;;  %v2472_v62 = vsel %vm2466_vm7, %v2469_v40, %v2471_v30 }
 0x1a7   : > { %v2638_v13 = vsel %vm2636_vm2, %v2637_v4, %v4482_v6  ;;  %v842_v38 = vshll.u32 %v5449_v61, %v840_v14  ;;  %v1089_v55 = vor.u32 8388608, %v5467_v17  ;;  %v1093_v3 = vsel %vm1092_vm11, %v1091_v34, 0 }
 0x1a8   : > { %v2635_v56 = vsel %vm2633_vm3, %v4480_v33, %v2634_v36  ;;  %v843_v50 = vshrl.u32 %v825_v54, %v841_v0  ;;  %v846_v22 = vadd.s32 127, %v845_v57  ;;  %v2491_v47 = vadd.s32 1, %v5478_v1 }
 0x1a9   : > { %v2639_v43 = vsel %vm2632_vm5, %v2635_v56, %v2638_v13  ;;  %v856_v18 = vsel %vm771_vm6, %v855_v28, %v5435_v58  ;;  %v2488_v61 = vmul.u32 %v5455_v41, %v2472_v62  ;;  %vm2490_vm13 = vc.u32 %v5483_v20, %v5477_v39 }
 0x1aa   : > { %v2640_v17 = vsel %vm2629_vm10, nan, %v2639_v43  ;;  %v844_v34 = vor.u32 %v843_v50, %v842_v38  ;;  %v847_v54 = vshll.u32 %v846_v22, 23  ;;  %v2492_v35 = vsel %vm2490_vm13, %v2491_v47, %v5478_v1 }
 0x1ab   : > { %3908 = vst [vmem:[%s5140_s24 + $0x98] sm:$0xff] %v2640_v17  ;;  %vm5510_vm14 = vcmp.le.f32.partialorder %v769_v9, 0.7853982  ;;  %v2493_v58 = vadd.s32 %v2492_v35, %v2488_v61  ;;  %v1095_v28 = vand.u32 31, %v1093_v3  ;;  %v5516_v60 = vshll.u32 %v1089_v55, 8 }
 0x1ac   : > { %v848_v41 = vor.u32 4788187, %v847_v54  ;;  %v858_v46 = vsel %vm5510_vm14, 0, %v856_v18  ;;  %v851_v26 = vcvt.s32.f32 %v844_v34  ;;  %v5518_v48 = vshrl.u32 %v1093_v3, 5 }
 0x1ad   : > { %v2494_v12 = vadd.s32 536870912, %v2493_v58  ;;  %v1096_v37 = vsub.s32 32, %v1095_v28  ;;  %v1098_v40 = vshll.u32 %v4656_v15, %v1095_v28  ;;  %v1101_v9 = vshll.u32 %v4657_v19, %v1095_v28 }
 0x1ae   : > { %v849_v7 = vand.u32 2147483647, %v848_v41  ;;  %v1104_v24 = vshll.u32 %v4658_v21, %v1095_v28  ;;  %v1107_v16 = vshll.u32 %v4659_v23, %v1095_v28  ;;  %v862_v4 = vadd.s32 3, %v858_v46 }
 0x1af   : > { %v2495_v51 = vshrl.u32 %v2494_v12, 30  ;;  %v1099_v30 = vshrl.u32 %v4657_v19, %v1096_v37  ;;  %v1102_v59 = vshrl.u32 %v4658_v21, %v1096_v37  ;;  %v1105_v44 = vshrl.u32 %v4659_v23, %v1096_v37 }
 0x1b0   : > { %v852_v33 = vmul.f32 %v851_v26, %v849_v7  ;;  %v1108_v1 = vshrl.u32 %v4660_v25, %v1096_v37  ;;  %v1111_v6 = vshrl.u32 %v4661_v32, %v1096_v37  ;;  %v1110_v13 = vshll.u32 %v4660_v25, %v1095_v28  ;;  %v5567_v26 = vpop.f32.mrb[7].mxu1 }
 0x1b1   : > { %v2496_v14 = vshll.u32 %v2495_v51, 30  ;;  %v1100_v42 = vor.u32 %v1099_v30, %v1098_v40  ;;  %v1103_v36 = vor.u32 %v1102_v59, %v1101_v9  ;;  %v1106_v57 = vor.u32 %v1105_v44, %v1104_v24 }
 0x1b2   : > { %v853_v0 = vxor.u32 2147483648, %v852_v33  ;;  %v1109_v62 = vor.u32 %v1108_v1, %v1107_v16  ;;  %vm1113_vm15 = vcmp.lt.s32.totalorder %v5518_v48, 1  ;;  %vm1116_vm0 = vcmp.lt.s32.totalorder %v5518_v48, 4 }
 0x1b3   : > { %v5530_v38 = vsub.s32 %v2493_v58, %v2496_v14  ;;  %v5536_v55 = vadd.f32 %v5354_v27, %v5016_v49  ;;  %v1112_v56 = vor.u32 %v1111_v6, %v1110_v13  ;;  %v1121_v50 = vsel %vm1113_vm15, %v1100_v42, %v1103_v36 }
 0x1b4   : > { %v854_v3 = vsel %vm771_vm6, %v853_v0, %v852_v33  ;;  %v1122_v22 = vsel %vm1116_vm0, %v1109_v62, 920167782  ;;  %vm1114_vm1 = vcmp.lt.s32.totalorder %v5518_v48, 2  ;;  %vm1115_vm2 = vcmp.lt.s32.totalorder %v5518_v48, 3 }
 0x1b5   : > { %v857_v47 = vsel %vm5510_vm14, %v5184_v31, %v854_v3  ;;  %v2499_v43 = vsub.s32 0, %v5530_v38  ;;  %v2519_v49 = vsub.s32 4, %v2495_v51  ;;  %v1097_v18 = vshrl.u32 %v4656_v15, %v1096_v37 }
 0x1b6   : > { %4483 = vcosq.f32 %v857_v47  ;;  %v1123_v61 = vsel %vm1115_vm2, %v1106_v57, %v1122_v22  ;;  %v1118_v34 = vsel %vm1116_vm0, %v1106_v57, 2102212464  ;;  %v1125_v35 = vsel %vm1113_vm15, %v1103_v36, %v1106_v57 }
 0x1b7   : > { %4485 = vsinq.f32 %v857_v47  ;;  %v4116_v17 = vmin.u32 %v2499_v43, %v5530_v38  ;;  %v1124_v54 = vsel %vm1114_vm1, %v1121_v50, %v1123_v61  ;;  %v1126_v63 = vsel %vm1116_vm0, %v1112_v56, 1326507024 }
 0x1b8   : > { %v5563_v58 = vmul.u32.u64.low %v5516_v60, %v1124_v54  ;;  %v5564_v28 = vmul.u32.u64.high %v5516_v60, %v1124_v54, %v5563_v58  ;;  %v863_v41 = vand.u32 3, %v862_v4  ;;  %v1117_v12 = vsel %vm1113_vm15, %v1097_v18, %v1100_v42 }
 0x1b9   : > { %v2501_v46 = vclz %v4116_v17  ;;  %v1119_v37 = vsel %vm1115_vm2, %v1103_v36, %v1118_v34  ;;  %v1127_v7 = vsel %vm1115_vm2, %v1109_v62, %v1126_v63  ;;  %v2748_v40 = vand.u32 2139095040, %v5536_v55 }
 0x1ba   : > { %vm5578_vm3 = vcmp.le.f32.partialorder %v2433_v10, 0.7853982  ;;  %vm2435_vm4 = vcmp.lt.s32.totalorder %v5358_v11, 0  ;;  %v1128_v30 = vsel %vm1114_vm1, %v1125_v35, %v1127_v7  ;;  %v2745_v44 = vand.u32 2147483647, %v5536_v55 }
 0x1bb   : > { %v4117_v24 = vadd.s32 4294967294, %v2501_v46  ;;  %v2520_v59 = vsel %vm2435_vm4, %v2519_v49, %v2495_v51  ;;  %v5588_v16 = vmul.u32.u64.low %v5516_v60, %v1128_v30  ;;  %v5589_v33 = vmul.u32.u64.high %v5516_v60, %v1128_v30, %v5588_v16 }
 0x1bc   : > { %vm861_vm5 = vweird.f32 %v5184_v31  ;;  %v1120_v10 = vsel %vm1114_vm1, %v1117_v12, %v1119_v37  ;;  %v1139_v1 = vadd.s32 1, %v5564_v28  ;;  %v2749_v6 = vshrl.u32 %v2748_v40, 23 }
 0x1bd   : > { %vm4118_vm6 = vcmp.lt.s32.totalorder %v4117_v24, 0  ;;  %vm864_vm7 = vcmp.lt.s32.totalorder %v863_v41, 2  ;;  %vm868_vm8 = vcmp.eq.s32.totalorder %v863_v41, 2  ;;  %v2489_v51 = vadd.s32 %v5477_v39, %v5483_v20 }
 0x1be   : > { %v2504_v4 = vsel %vm4118_vm6, 0, %v4117_v24  ;;  %v2522_v36 = vsel %vm5578_vm3, 0, %v2520_v59  ;;  %v4127_v0 = vadd.s32 4294967169, %v2749_v6  ;;  %v1136_v48 = vmul.u32 %v5516_v60, %v1120_v10 }
 0x1bf   : > { %v2505_v14 = vsub.s32 32, %v2504_v4  ;;  %v2509_v42 = vsub.s32 4294967266, %v2504_v4  ;;  %v2506_v62 = vshll.u32 %v5530_v38, %v2504_v4  ;;  %vm1138_vm9 = vc.u32 %v5589_v33, %v5563_v58 }
 0x1c0   : > { %v4484_v57 = vpop.eup %4483  ;;  %v2752_v13 = vand.u32 8388607, %v2745_v44  ;;  %v1140_v50 = vsel %vm1138_vm9, %v1139_v1, %v5564_v28  ;;  %v2755_v43 = vadd.s32 1, %v4127_v0  ;;  %v5609_v38 = vadd.f32 %v5354_v27, %v5149_v8 }
 0x1c1   : > { %v4486_v3 = vpop.eup %4485  ;;  %v869_v39 = vxor.u32 2147483648, %v4484_v57  ;;  %v2507_v20 = vshrl.u32 %v2489_v51, %v2505_v14  ;;  %v2510_v56 = vadd.s32 127, %v2509_v42  ;;  %v1141_v47 = vadd.s32 %v1140_v50, %v1136_v48 }
 0x1c2   : > { %v866_v22 = vxor.u32 2147483648, %v4486_v3  ;;  %vm865_vm10 = vcmp.eq.s32.totalorder %v863_v41, 0  ;;  %v2526_v17 = vadd.s32 3, %v2522_v36  ;;  %vm2756_vm11 = vcmp.gt.s32.totalorder %v2755_v43, 0 }
 0x1c3   : > { %v870_v60 = vsel %vm868_vm8, %v869_v39, %v4486_v3  ;;  %v2508_v49 = vor.u32 %v2507_v20, %v2506_v62  ;;  %v2511_v18 = vshll.u32 %v2510_v56, 23  ;;  %v1142_v34 = vadd.s32 536870912, %v1141_v47 }
 0x1c4   : > { %v867_v61 = vsel %vm865_vm10, %v4484_v57, %v866_v22  ;;  %v2753_v63 = vor.u32 8388608, %v2752_v13  ;;  %v2757_v28 = vsel %vm2756_vm11, %v2755_v43, 0  ;;  %v980_v37 = vand.u32 2139095040, %v5609_v38 }
 0x1c5   : > { %v871_v54 = vsel %vm864_vm7, %v867_v61, %v870_v60  ;;  %v2512_v35 = vor.u32 4788187, %v2511_v18  ;;  %v1143_v8 = vshrl.u32 %v1142_v34, 30  ;;  %v2759_v12 = vand.u32 31, %v2757_v28 }
 0x1c6   : > { %v872_v46 = vsel %vm861_vm5, nan, %v871_v54  ;;  %v2515_v40 = vcvt.s32.f32 %v2508_v49  ;;  %vm1083_vm12 = vcmp.lt.s32.totalorder %v5362_v52, 0  ;;  %v5618_v24 = vand.u32 3, %v2526_v17 }
 0x1c7   : > { %3891 = vst [vmem:[%s5140_s24 + $0x10] sm:$0xff] %v872_v46  ;;  %v2513_v7 = vand.u32 2147483647, %v2512_v35  ;;  %vm5622_vm13 = vcmp.le.f32.partialorder %v1081_v45, 0.7853982  ;;  %v1144_v30 = vshll.u32 %v1143_v8, 30  ;;  %v1137_v10 = vadd.s32 %v5563_v58, %v5589_v33 }
 0x1c8   : > { %v2760_v31 = vsub.s32 32, %v2759_v12  ;;  %v977_v59 = vand.u32 2147483647, %v5609_v38  ;;  %v1167_v1 = vsub.s32 4, %v1143_v8  ;;  %v5629_v6 = vshll.u32 %v2753_v63, 8 }
 0x1c9   : > { %v2516_v16 = vmul.f32 %v2515_v40, %v2513_v7  ;;  %v5631_v51 = vsub.s32 %v1141_v47, %v1144_v30  ;;  %v5633_v4 = vshrl.u32 %v2757_v28, 5  ;;  %v981_v14 = vshrl.u32 %v980_v37, 23 }
 0x1ca   : > { %v2763_v45 = vshrl.u32 %v4657_v19, %v2760_v31  ;;  %v2762_v36 = vshll.u32 %v4656_v15, %v2759_v12  ;;  %v2766_v0 = vshrl.u32 %v4658_v21, %v2760_v31  ;;  %v2769_v57 = vshrl.u32 %v4659_v23, %v2760_v31 }
 0x1cb   : > { %v2517_v42 = vxor.u32 2147483648, %v2516_v16  ;;  %v1147_v62 = vsub.s32 0, %v5631_v51  ;;  %v2765_v58 = vshll.u32 %v4657_v19, %v2759_v12  ;;  %v2768_v33 = vshll.u32 %v4658_v21, %v2759_v12 }
 0x1cc   : > { %v2772_v48 = vshrl.u32 %v4660_v25, %v2760_v31  ;;  %v1168_v3 = vsel %vm1083_vm12, %v1167_v1, %v1143_v8  ;;  %v2764_v39 = vor.u32 %v2763_v45, %v2762_v36  ;;  %v2771_v20 = vshll.u32 %v4659_v23, %v2759_v12 }
 0x1cd   : > { %v2518_v13 = vsel %vm2435_vm4, %v2517_v42, %v2516_v16  ;;  %v4064_v50 = vmin.u32 %v1147_v62, %v5631_v51  ;;  %v2767_v22 = vor.u32 %v2766_v0, %v2765_v58  ;;  %v2770_v47 = vor.u32 %v2769_v57, %v2768_v33 }
 0x1ce   : > { %v2521_v56 = vsel %vm5578_vm3, %v5358_v11, %v2518_v13  ;;  %v2773_v43 = vor.u32 %v2772_v48, %v2771_v20  ;;  %v2774_v60 = vshll.u32 %v4660_v25, %v2759_v12  ;;  %v2775_v49 = vshrl.u32 %v4661_v32, %v2760_v31  ;;  %v5687_v13 = vpop.f32.mrb[8].mxu0 }
 0x1cf   : > { %4487 = vcosq.f32 %v2521_v56  ;;  %v1149_v18 = vclz %v4064_v50  ;;  %v4059_v61 = vadd.s32 4294967169, %v981_v14  ;;  %v5656_v17 = vand.u32 8388607, %v977_v59 }
 0x1d0   : > { %4489 = vsinq.f32 %v2521_v56  ;;  %v1170_v9 = vsel %vm5622_vm13, 0, %v1168_v3  ;;  %v2761_v34 = vshrl.u32 %v4656_v15, %v2760_v31  ;;  %v2776_v54 = vor.u32 %v2775_v49, %v2774_v60 }
 0x1d1   : > { %vm2777_vm14 = vcmp.lt.s32.totalorder %v5633_v4, 1  ;;  %v4065_v35 = vadd.s32 4294967294, %v1149_v18  ;;  %vm2779_vm15 = vcmp.lt.s32.totalorder %v5633_v4, 3  ;;  %vm2780_vm0 = vcmp.lt.s32.totalorder %v5633_v4, 4 }
 0x1d2   : > { %v2785_v63 = vsel %vm2777_vm14, %v2764_v39, %v2767_v22  ;;  %v2782_v28 = vsel %vm2780_vm0, %v2770_v47, 2102212464  ;;  %v2786_v46 = vsel %vm2780_vm0, %v2773_v43, 920167782  ;;  %v2789_v8 = vsel %vm2777_vm14, %v2767_v22, %v2770_v47 }
 0x1d3   : > { %v2790_v12 = vsel %vm2780_vm0, %v2776_v54, 1326507024  ;;  %vm4066_vm1 = vcmp.lt.s32.totalorder %v4065_v35, 0  ;;  %vm2778_vm2 = vcmp.lt.s32.totalorder %v5633_v4, 2  ;;  %v2787_v37 = vsel %vm2779_vm15, %v2770_v47, %v2786_v46 }
 0x1d4   : > { %v2791_v7 = vsel %vm2779_vm15, %v2773_v43, %v2790_v12  ;;  %vm2528_vm3 = vcmp.lt.s32.totalorder %v5618_v24, 2  ;;  %v1152_v40 = vsel %vm4066_vm1, 0, %v4065_v35  ;;  %v2781_v30 = vsel %vm2777_vm14, %v2761_v34, %v2764_v39 }
 0x1d5   : > { %v2788_v31 = vsel %vm2778_vm2, %v2785_v63, %v2787_v37  ;;  %v2792_v16 = vsel %vm2778_vm2, %v2789_v8, %v2791_v7  ;;  %vm2525_vm4 = vweird.f32 %v5358_v11  ;;  %v1153_v1 = vsub.s32 32, %v1152_v40 }
 0x1d6   : > { %v1157_v45 = vsub.s32 4294967266, %v1152_v40  ;;  %v2783_v14 = vsel %vm2779_vm15, %v2767_v22, %v2782_v28  ;;  %v987_v42 = vadd.s32 1, %v4059_v61  ;;  %v1154_v58 = vshll.u32 %v5631_v51, %v1152_v40 }
 0x1d7   : > { %v5678_v36 = vmul.u32.u64.low %v5629_v6, %v2792_v16  ;;  %v5679_v0 = vmul.u32.u64.high %v5629_v6, %v2792_v16, %v5678_v36  ;;  %v5682_v57 = vmul.u32.u64.low %v5629_v6, %v2788_v31  ;;  %v5683_v62 = vmul.u32.u64.high %v5629_v6, %v2788_v31, %v5682_v57 }
 0x1d8   : > { %v1155_v33 = vshrl.u32 %v1137_v10, %v1153_v1  ;;  %v1158_v48 = vadd.s32 127, %v1157_v45  ;;  %vm988_vm5 = vcmp.gt.s32.totalorder %v987_v42, 0  ;;  %vm2529_vm6 = vcmp.eq.s32.totalorder %v5618_v24, 0 }
 0x1d9   : > { %v4488_v3 = vpop.eup %4487  ;;  %vm2532_vm7 = vcmp.eq.s32.totalorder %v5618_v24, 2  ;;  %v2784_v39 = vsel %vm2778_vm2, %v2781_v30, %v2783_v14  ;;  %v989_v20 = vsel %vm988_vm5, %v987_v42, 0  ;;  %v985_v51 = vor.u32 8388608, %v5656_v17 }
 0x1da   : > { %v4490_v56 = vpop.eup %4489  ;;  %v2533_v50 = vxor.u32 2147483648, %v4488_v3  ;;  %v1156_v22 = vor.u32 %v1155_v33, %v1154_v58  ;;  %v1159_v47 = vshll.u32 %v1158_v48, 23  ;;  %v1174_v43 = vadd.s32 3, %v1170_v9 }
 0x1db   : > { %v2530_v10 = vxor.u32 2147483648, %v4490_v56  ;;  %vm2802_vm8 = vc.u32 %v5679_v0, %v5682_v57  ;;  %v2803_v60 = vadd.s32 1, %v5683_v62  ;;  %v2800_v4 = vmul.u32 %v5629_v6, %v2784_v39 }
 0x1dc   : > { %v2534_v49 = vsel %vm2532_vm7, %v2533_v50, %v4490_v56  ;;  %v1160_v18 = vor.u32 4788187, %v1159_v47  ;;  %v991_v61 = vand.u32 31, %v989_v20  ;;  %v1163_v54 = vcvt.s32.f32 %v1156_v22 }
 0x1dd   : > { %v2531_v34 = vsel %vm2529_vm6, %v4488_v3, %v2530_v10  ;;  %v2804_v35 = vsel %vm2802_vm8, %v2803_v60, %v5683_v62  ;;  %v5703_v17 = vadd.f32 %v5354_v27, %v5216_v2  ;;  %v5709_v8 = vand.u32 3, %v1174_v43 }
 0x1de   : > { %v2535_v9 = vsel %vm2528_vm3, %v2531_v34, %v2534_v49  ;;  %v1161_v63 = vand.u32 2147483647, %v1160_v18  ;;  %v2805_v28 = vadd.s32 %v2804_v35, %v2800_v4  ;;  %v992_v46 = vsub.s32 32, %v991_v61 }
 0x1df   : > { %v2536_v6 = vsel %vm2525_vm4, nan, %v2535_v9  ;;  %v990_v12 = vshrl.u32 %v989_v20, 5  ;;  %v994_v37 = vshll.u32 %v4656_v15, %v991_v61  ;;  %v997_v30 = vshll.u32 %v4657_v19, %v991_v61 }
 0x1e0   : > { %3907 = vst [vmem:[%s5140_s24 + $0x90] sm:$0xff] %v2536_v6  ;;  %v1164_v7 = vmul.f32 %v1163_v54, %v1161_v63  ;;  %v2806_v40 = vadd.s32 536870912, %v2805_v28  ;;  %v995_v2 = vshrl.u32 %v4657_v19, %v992_v46  ;;  %v998_v24 = vshrl.u32 %v4658_v21, %v992_v46 }
 0x1e1   : > { %v1000_v31 = vshll.u32 %v4658_v21, %v991_v61  ;;  %v1001_v16 = vshrl.u32 %v4659_v23, %v992_v46  ;;  %v1004_v11 = vshrl.u32 %v4660_v25, %v992_v46  ;;  %v1003_v42 = vshll.u32 %v4659_v23, %v991_v61 }
 0x1e2   : > { %v1165_v1 = vxor.u32 2147483648, %v1164_v7  ;;  %v2807_v45 = vshrl.u32 %v2806_v40, 30  ;;  %v996_v14 = vor.u32 %v995_v2, %v994_v37  ;;  %v999_v36 = vor.u32 %v998_v24, %v997_v30 }
 0x1e3   : > { %v1002_v62 = vor.u32 %v1001_v16, %v1000_v31  ;;  %v1006_v58 = vshll.u32 %v4660_v25, %v991_v61  ;;  %v1007_v33 = vshrl.u32 %v4661_v32, %v992_v46  ;;  %v1005_v39 = vor.u32 %v1004_v11, %v1003_v42 }
 0x1e4   : > { %v1166_v48 = vsel %vm1083_vm12, %v1165_v1, %v1164_v7  ;;  %v2808_v3 = vshll.u32 %v2807_v45, 30  ;;  %v5724_v20 = vshll.u32 %v985_v51, 8  ;;  %vm1009_vm9 = vcmp.lt.s32.totalorder %v990_v12, 1 }
 0x1e5   : > { %v1169_v56 = vsel %vm5622_vm13, %v5362_v52, %v1166_v48  ;;  %v1008_v50 = vor.u32 %v1007_v33, %v1006_v58  ;;  %v2644_v22 = vand.u32 2139095040, %v5703_v17  ;;  %vm1010_vm10 = vcmp.lt.s32.totalorder %v990_v12, 2 }
 0x1e6   : > { %4491 = vcosq.f32 %v1169_v56  ;;  %v5730_v47 = vsub.s32 %v2805_v28, %v2808_v3  ;;  %vm1012_vm11 = vcmp.lt.s32.totalorder %v990_v12, 4  ;;  %v993_v10 = vshrl.u32 %v4656_v15, %v992_v46 }
 0x1e7   : > { %4493 = vsinq.f32 %v1169_v56  ;;  %v1014_v43 = vsel %vm1012_vm11, %v1002_v62, 2102212464  ;;  %v1017_v51 = vsel %vm1009_vm9, %v996_v14, %v999_v36  ;;  %v2831_v49 = vsub.s32 4, %v2807_v45 }
 0x1e8   : > { %v2811_v60 = vsub.s32 0, %v5730_v47  ;;  %vm1011_vm12 = vcmp.lt.s32.totalorder %v990_v12, 3  ;;  %v1018_v41 = vsel %vm1012_vm11, %v1005_v39, 920167782  ;;  %v1013_v18 = vsel %vm1009_vm9, %v993_v10, %v996_v14  ;;  %v5764_v12 = vpop.f32.mrb[8].mxu1 }
 0x1e9   : > { %v1019_v4 = vsel %vm1011_vm12, %v1002_v62, %v1018_v41  ;;  %v1021_v61 = vsel %vm1009_vm9, %v999_v36, %v1002_v62  ;;  %v1022_v34 = vsel %vm1012_vm11, %v1008_v50, 1326507024  ;;  %v1015_v35 = vsel %vm1011_vm12, %v999_v36, %v1014_v43 }
 0x1ea   : > { %v4128_v54 = vmin.u32 %v2811_v60, %v5730_v47  ;;  %v1020_v9 = vsel %vm1010_vm10, %v1017_v51, %v1019_v4  ;;  %v1023_v63 = vsel %vm1011_vm12, %v1005_v39, %v1022_v34  ;;  %vm2747_vm13 = vcmp.lt.s32.totalorder %v5536_v55, 0 }
 0x1eb   : > { %v1024_v28 = vsel %vm1010_vm10, %v1021_v61, %v1023_v63  ;;  %v5742_v46 = vmul.u32.u64.low %v5724_v20, %v1020_v9  ;;  %v5743_v6 = vmul.u32.u64.high %v5724_v20, %v1020_v9, %v5742_v46  ;;  %v2832_v7 = vsel %vm2747_vm13, %v2831_v49, %v2807_v45 }
 0x1ec   : > { %v2813_v37 = vclz %v4128_v54  ;;  %v2641_v40 = vand.u32 2147483647, %v5703_v17  ;;  %v1016_v2 = vsel %vm1010_vm10, %v1013_v18, %v1015_v35  ;;  %v2645_v31 = vshrl.u32 %v2644_v22, 23 }
 0x1ed   : > { %v5750_v30 = vmul.u32.u64.low %v5724_v20, %v1024_v28  ;;  %v5751_v24 = vmul.u32.u64.high %v5724_v20, %v1024_v28, %v5750_v30  ;;  %vm1176_vm14 = vcmp.lt.s32.totalorder %v5709_v8, 2  ;;  %vm5756_vm15 = vcmp.le.f32.partialorder %v2745_v44, 0.7853982 }
 0x1ee   : > { %v4129_v11 = vadd.s32 4294967294, %v2813_v37  ;;  %v5762_v1 = vadd.f32 %v5354_v27, %v5343_v5  ;;  %vm1177_vm0 = vcmp.eq.s32.totalorder %v5709_v8, 0  ;;  %vm1180_vm1 = vcmp.eq.s32.totalorder %v5709_v8, 2 }
 0x1ef   : > { %v1035_v45 = vadd.s32 1, %v5743_v6  ;;  %v4123_v14 = vadd.s32 4294967169, %v2645_v31  ;;  %v2801_v44 = vadd.s32 %v5682_v57, %v5679_v0  ;;  %v2834_v36 = vsel %vm5756_vm15, 0, %v2832_v7 }
 0x1f0   : > { %v4492_v42 = vpop.eup %4491  ;;  %vm4130_vm2 = vcmp.lt.s32.totalorder %v4129_v11, 0  ;;  %v1032_v5 = vmul.u32 %v5724_v20, %v1016_v2  ;;  %vm1034_vm3 = vc.u32 %v5751_v24, %v5742_v46  ;;  %v2648_v33 = vand.u32 8388607, %v2641_v40 }
 0x1f1   : > { %v4494_v27 = vpop.eup %4493  ;;  %v1181_v62 = vxor.u32 2147483648, %v4492_v42  ;;  %v2816_v58 = vsel %vm4130_vm2, 0, %v4129_v11  ;;  %v1292_v56 = vand.u32 2139095040, %v5762_v1  ;;  %v1036_v20 = vsel %vm1034_vm3, %v1035_v45, %v5743_v6 }
 0x1f2   : > { %v1178_v48 = vxor.u32 2147483648, %v4494_v27  ;;  %v2817_v3 = vsub.s32 32, %v2816_v58  ;;  %v2821_v39 = vsub.s32 4294967266, %v2816_v58  ;;  %v2818_v57 = vshll.u32 %v5730_v47, %v2816_v58 }
 0x1f3   : > { %v1182_v0 = vsel %vm1180_vm1, %v1181_v62, %v4494_v27  ;;  %v2651_v50 = vadd.s32 1, %v4123_v14  ;;  %v1037_v51 = vadd.s32 %v1036_v20, %v1032_v5  ;;  %vm1173_vm4 = vweird.f32 %v5362_v52 }
 0x1f4   : > { %v1179_v22 = vsel %vm1177_vm0, %v4492_v42, %v1178_v48  ;;  %v2819_v10 = vshrl.u32 %v2801_v44, %v2817_v3  ;;  %v2822_v43 = vadd.s32 127, %v2821_v39  ;;  %v2838_v49 = vadd.s32 3, %v2834_v36 }
 0x1f5   : > { %v1183_v60 = vsel %vm1176_vm14, %v1179_v22, %v1182_v0  ;;  %vm2652_vm5 = vcmp.gt.s32.totalorder %v2651_v50, 0  ;;  %v1038_v47 = vadd.s32 536870912, %v1037_v51  ;;  %v2649_v61 = vor.u32 8388608, %v2648_v33 }
 0x1f6   : > { %v1184_v41 = vsel %vm1173_vm4, nan, %v1183_v60  ;;  %v2820_v18 = vor.u32 %v2819_v10, %v2818_v57  ;;  %v2823_v4 = vshll.u32 %v2822_v43, 23  ;;  %v2653_v34 = vsel %vm2652_vm5, %v2651_v50, 0 }
 0x1f7   : > { %3894 = vst [vmem:[%s5140_s24 + $0x28] sm:$0xff] %v1184_v41  ;;  %v1039_v35 = vshrl.u32 %v1038_v47, 30  ;;  %v1293_v9 = vshrl.u32 %v1292_v56, 23  ;;  %v2655_v63 = vand.u32 31, %v2653_v34  ;;  %v5788_v37 = vand.u32 3, %v2838_v49 }
 0x1f8   : > { %v2824_v54 = vor.u32 4788187, %v2823_v4  ;;  %v2827_v6 = vcvt.s32.f32 %v2820_v18  ;;  %vm979_vm6 = vcmp.lt.s32.totalorder %v5609_v38, 0  ;;  %v5792_v8 = vadd.s32 %v5742_v46, %v5751_v24 }
 0x1f9   : > { %v1040_v52 = vshll.u32 %v1039_v35, 30  ;;  %v2656_v7 = vsub.s32 32, %v2655_v63  ;;  %v5794_v2 = vshll.u32 %v2649_v61, 8  ;;  %v1289_v30 = vand.u32 2147483647, %v5762_v1 }
 0x1fa   : > { %v2825_v28 = vand.u32 2147483647, %v2824_v54  ;;  %v5799_v45 = vshrl.u32 %v2653_v34, 5  ;;  %v4071_v14 = vadd.s32 4294967169, %v1293_v9  ;;  %v1063_v42 = vsub.s32 4, %v1039_v35 }
 0x1fb   : > { %v5797_v11 = vsub.s32 %v1037_v51, %v1040_v52  ;;  %v2658_v44 = vshll.u32 %v4656_v15, %v2655_v63  ;;  %v2659_v36 = vshrl.u32 %v4657_v19, %v2656_v7  ;;  %v2662_v5 = vshrl.u32 %v4658_v21, %v2656_v7  ;;  %v5846_v52 = vpop.f32.mrb[9].mxu0 }
 0x1fc   : > { %v2828_v31 = vmul.f32 %v2827_v6, %v2825_v28  ;;  %vm5806_vm7 = vcmp.le.f32.partialorder %v977_v59, 0.7853982  ;;  %v2661_v62 = vshll.u32 %v4657_v19, %v2655_v63  ;;  %v2665_v58 = vshrl.u32 %v4659_v23, %v2656_v7 }
 0x1fd   : > { %v1043_v27 = vsub.s32 0, %v5797_v11  ;;  %v2660_v33 = vor.u32 %v2659_v36, %v2658_v44  ;;  %v2664_v48 = vshll.u32 %v4658_v21, %v2655_v63  ;;  %v2667_v3 = vshll.u32 %v4659_v23, %v2655_v63 }
 0x1fe   : > { %v2829_v46 = vxor.u32 2147483648, %v2828_v31  ;;  %v2668_v39 = vshrl.u32 %v4660_v25, %v2656_v7  ;;  %v2663_v0 = vor.u32 %v2662_v5, %v2661_v62  ;;  %v2670_v57 = vshll.u32 %v4660_v25, %v2655_v63 }
 0x1ff   : > { %v4060_v59 = vmin.u32 %v1043_v27, %v5797_v11  ;;  %v2666_v50 = vor.u32 %v2665_v58, %v2664_v48  ;;  %v2671_v10 = vshrl.u32 %v4661_v32, %v2656_v7  ;;  %vm2673_vm8 = vcmp.lt.s32.totalorder %v5799_v45, 1 }
 0x200   : > { %v2830_v56 = vsel %vm2747_vm13, %v2829_v46, %v2828_v31  ;;  %v2669_v22 = vor.u32 %v2668_v39, %v2667_v3  ;;  %v1299_v51 = vadd.s32 1, %v4071_v14  ;;  %v1064_v60 = vsel %vm979_vm6, %v1063_v42, %v1039_v35 }
 0x201   : > { %v2833_v20 = vsel %vm5756_vm15, %v5536_v55, %v2830_v56  ;;  %v1045_v43 = vclz %v4060_v59  ;;  %v2657_v49 = vshrl.u32 %v4656_v15, %v2656_v7  ;;  %v2672_v41 = vor.u32 %v2671_v10, %v2670_v57 }
 0x202   : > { %4495 = vcosq.f32 %v2833_v20  ;;  %vm2675_vm9 = vcmp.lt.s32.totalorder %v5799_v45, 3  ;;  %vm2676_vm10 = vcmp.lt.s32.totalorder %v5799_v45, 4  ;;  %v2681_v16 = vsel %vm2673_vm8, %v2660_v33, %v2663_v0 }
 0x203   : > { %4497 = vsinq.f32 %v2833_v20  ;;  %v4061_v18 = vadd.s32 4294967294, %v1045_v43  ;;  %v2678_v4 = vsel %vm2676_vm10, %v2666_v50, 2102212464  ;;  %v2682_v47 = vsel %vm2676_vm10, %v2669_v22, 920167782 }
 0x204   : > { %v2685_v61 = vsel %vm2673_vm8, %v2663_v0, %v2666_v50  ;;  %v2686_v34 = vsel %vm2676_vm10, %v2672_v41, 1326507024  ;;  %vm2674_vm12 = vcmp.lt.s32.totalorder %v5799_v45, 2  ;;  %v2683_v54 = vsel %vm2675_vm9, %v2666_v50, %v2682_v47  ;;  %v5876_v45 = vld [vmem:[%s7556_s2] ss:$0 sm:$0xff] }
 0x205   : > { %vm4062_vm11 = vcmp.lt.s32.totalorder %v4061_v18, 0  ;;  %v2687_v35 = vsel %vm2675_vm9, %v2669_v22, %v2686_v34  ;;  %vm2841_vm13 = vcmp.eq.s32.totalorder %v5788_v37, 0  ;;  %v1066_v63 = vsel %vm5806_vm7, 0, %v1064_v60 }
 0x206   : > { %v1048_v9 = vsel %vm4062_vm11, 0, %v4061_v18  ;;  %v2684_v28 = vsel %vm2674_vm12, %v2681_v16, %v2683_v54  ;;  %v2688_v6 = vsel %vm2674_vm12, %v2685_v61, %v2687_v35  ;;  %vm2840_vm14 = vcmp.lt.s32.totalorder %v5788_v37, 2 }
 0x207   : > { %v1049_v7 = vsub.s32 32, %v1048_v9  ;;  %v1053_v31 = vsub.s32 4294967266, %v1048_v9  ;;  %v2677_v14 = vsel %vm2673_vm8, %v2657_v49, %v2660_v33  ;;  %v2679_v42 = vsel %vm2675_vm9, %v2663_v0, %v2678_v4 }
 0x208   : > { %vm2837_vm15 = vweird.f32 %v5536_v55  ;;  %v5855_v44 = vmul.u32.u64.low %v5794_v2, %v2688_v6  ;;  %v5856_v36 = vmul.u32.u64.high %v5794_v2, %v2688_v6, %v5855_v44  ;;  %v1050_v27 = vshll.u32 %v5797_v11, %v1048_v9 }
 0x209   : > { %v5859_v5 = vmul.u32.u64.low %v5794_v2, %v2684_v28  ;;  %v5860_v46 = vmul.u32.u64.high %v5794_v2, %v2684_v28, %v5859_v5  ;;  %v1051_v62 = vshrl.u32 %v5792_v8, %v1049_v7  ;;  %v1054_v58 = vadd.s32 127, %v1053_v31 }
 0x20a   : > { %vm1300_vm0 = vcmp.gt.s32.totalorder %v1299_v51, 0  ;;  %v1070_v33 = vadd.s32 3, %v1066_v63  ;;  %v2680_v48 = vsel %vm2674_vm12, %v2677_v14, %v2679_v42  ;;  %v1296_v3 = vand.u32 8388607, %v1289_v30 }
 0x20b   : > { %v1301_v39 = vsel %vm1300_vm0, %v1299_v51, 0  ;;  %vm2844_vm1 = vcmp.eq.s32.totalorder %v5788_v37, 2  ;;  %v1052_v59 = vor.u32 %v1051_v62, %v1050_v27  ;;  %v1055_v0 = vshll.u32 %v1054_v58, 23 }
 0x20c   : > { %v4496_v56 = vpop.eup %4495  ;;  %v1303_v57 = vand.u32 31, %v1301_v39  ;;  %vm2698_vm2 = vc.u32 %v5856_v36, %v5859_v5  ;;  %v2699_v8 = vadd.s32 1, %v5860_v46  ;;  %v5880_v50 = vadd.f32 %v5876_v45, %v5392_v29 }
 0x20d   : > { %v4498_v20 = vpop.eup %4497  ;;  %v2845_v11 = vxor.u32 2147483648, %v4496_v56  ;;  %v1056_v10 = vor.u32 4788187, %v1055_v0  ;;  %v2696_v43 = vmul.u32 %v5794_v2, %v2680_v48  ;;  %v5883_v49 = vand.u32 3, %v1070_v33 }
 0x20e   : > { %v2842_v22 = vxor.u32 2147483648, %v4498_v20  ;;  %v1304_v51 = vsub.s32 32, %v1303_v57  ;;  %v2700_v41 = vsel %vm2698_vm2, %v2699_v8, %v5860_v46  ;;  %v1297_v18 = vor.u32 8388608, %v1296_v3 }
 0x20f   : > { %v2846_v60 = vsel %vm2844_vm1, %v2845_v11, %v4498_v20  ;;  %v1057_v4 = vand.u32 2147483647, %v1056_v10  ;;  %v1059_v47 = vcvt.s32.f32 %v1052_v59  ;;  %v2701_v61 = vadd.s32 %v2700_v41, %v2696_v43 }
 0x210   : > { %v2843_v16 = vsel %vm2841_vm13, %v4496_v56, %v2842_v22  ;;  %v1306_v34 = vshll.u32 %v4656_v15, %v1303_v57  ;;  %v1307_v2 = vshrl.u32 %v4657_v19, %v1304_v51  ;;  %v1310_v54 = vshrl.u32 %v4658_v21, %v1304_v51 }
 0x211   : > { %v2847_v29 = vsel %vm2840_vm14, %v2843_v16, %v2846_v60  ;;  %v1060_v9 = vmul.f32 %v1059_v47, %v1057_v4  ;;  %v2702_v63 = vadd.s32 536870912, %v2701_v61  ;;  %v1313_v28 = vshrl.u32 %v4659_v23, %v1304_v51 }
 0x212   : > { %v2848_v35 = vsel %vm2837_vm15, nan, %v2847_v29  ;;  %v1302_v6 = vshrl.u32 %v1301_v39, 5  ;;  %v1309_v7 = vshll.u32 %v4657_v19, %v1303_v57  ;;  %v1312_v37 = vshll.u32 %v4658_v21, %v1303_v57 }
 0x213   : > { %3910 = vst [vmem:[%s5140_s24 + $0xa8] sm:$0xff] %v2848_v35  ;;  %v1316_v31 = vshrl.u32 %v4660_v25, %v1304_v51  ;;  %v1061_v14 = vxor.u32 2147483648, %v1060_v9  ;;  %v2703_v42 = vshrl.u32 %v2702_v63, 30  ;;  %v1308_v44 = vor.u32 %v1307_v2, %v1306_v34 }
 0x214   : > { %v1315_v46 = vshll.u32 %v4659_v23, %v1303_v57  ;;  %v1311_v27 = vor.u32 %v1310_v54, %v1309_v7  ;;  %v1314_v55 = vor.u32 %v1313_v28, %v1312_v37  ;;  %v1318_v62 = vshll.u32 %v4660_v25, %v1303_v57  ;;  %v5922_v54 = vpop.f32.mrb[9].mxu1 }
 0x215   : > { %v1319_v58 = vshrl.u32 %v4661_v32, %v1304_v51  ;;  %v1062_v33 = vsel %vm979_vm6, %v1061_v14, %v1060_v9  ;;  %v2704_v48 = vshll.u32 %v2703_v42, 30  ;;  %v5905_v39 = vshll.u32 %v1297_v18, 8 }
 0x216   : > { %v1317_v3 = vor.u32 %v1316_v31, %v1315_v46  ;;  %v1065_v56 = vsel %vm5806_vm7, %v5609_v38, %v1062_v33  ;;  %v1305_v59 = vshrl.u32 %v4656_v15, %v1304_v51  ;;  %v2956_v20 = vand.u32 2139095040, %v5880_v50 }
 0x217   : > { %v1320_v0 = vor.u32 %v1319_v58, %v1318_v62  ;;  %4499 = vcosq.f32 %v1065_v56  ;;  %v5912_v57 = vsub.s32 %v2701_v61, %v2704_v48  ;;  %vm1321_vm3 = vcmp.lt.s32.totalorder %v1302_v6, 1 }
 0x218   : > { %vm1324_vm4 = vcmp.lt.s32.totalorder %v1302_v6, 4  ;;  %4501 = vsinq.f32 %v1065_v56  ;;  %vm1322_vm5 = vcmp.lt.s32.totalorder %v1302_v6, 2  ;;  %v1329_v8 = vsel %vm1321_vm3, %v1308_v44, %v1311_v27 }
 0x219   : > { %v1326_v11 = vsel %vm1324_vm4, %v1314_v55, 2102212464  ;;  %v2707_v22 = vsub.s32 0, %v5912_v57  ;;  %v2727_v10 = vsub.s32 4, %v2703_v42  ;;  %vm1323_vm6 = vcmp.lt.s32.totalorder %v1302_v6, 3 }
 0x21a   : > { %v1330_v24 = vsel %vm1324_vm4, %v1317_v3, 920167782  ;;  %v1325_v43 = vsel %vm1321_vm3, %v1305_v59, %v1308_v44  ;;  %v1333_v51 = vsel %vm1321_vm3, %v1311_v27, %v1314_v55  ;;  %v1334_v41 = vsel %vm1324_vm4, %v1320_v0, 1326507024 }
 0x21b   : > { %v1331_v60 = vsel %vm1323_vm6, %v1314_v55, %v1330_v24  ;;  %v4124_v18 = vmin.u32 %v2707_v22, %v5912_v57  ;;  %v1327_v16 = vsel %vm1323_vm6, %v1311_v27, %v1326_v11  ;;  %v1335_v47 = vsel %vm1323_vm6, %v1317_v3, %v1334_v41 }
 0x21c   : > { %v1332_v4 = vsel %vm1322_vm5, %v1329_v8, %v1331_v60  ;;  %v1336_v61 = vsel %vm1322_vm5, %v1333_v51, %v1335_v47  ;;  %v2957_v2 = vshrl.u32 %v2956_v20, 23  ;;  %vm5926_vm7 = vcmp.le.f32.partialorder %v2641_v40, 0.7853982 }
 0x21d   : > { %v5919_v29 = vmul.u32.u64.low %v5905_v39, %v1332_v4  ;;  %v5920_v34 = vmul.u32.u64.high %v5905_v39, %v1332_v4, %v5919_v29  ;;  %vm2643_vm8 = vcmp.lt.s32.totalorder %v5703_v17, 0  ;;  %v2709_v9 = vclz %v4124_v18 }
 0x21e   : > { %vm1069_vm9 = vweird.f32 %v5609_v38  ;;  %v2728_v63 = vsel %vm2643_vm8, %v2727_v10, %v2703_v42  ;;  %v5935_v28 = vmul.u32.u64.low %v5905_v39, %v1336_v61  ;;  %v5936_v7 = vmul.u32.u64.high %v5905_v39, %v1336_v61, %v5935_v28 }
 0x21f   : > { %v4135_v37 = vadd.s32 4294967169, %v2957_v2  ;;  %v4125_v31 = vadd.s32 4294967294, %v2709_v9  ;;  %v1328_v14 = vsel %vm1322_vm5, %v1325_v43, %v1327_v16  ;;  %v2953_v40 = vand.u32 2147483647, %v5880_v50 }
 0x220   : > { %v5942_v44 = vadd.f32 %v5876_v45, %v5485_v53  ;;  %vm1072_vm10 = vcmp.lt.s32.totalorder %v5883_v49, 2  ;;  %vm1073_vm11 = vcmp.eq.s32.totalorder %v5883_v49, 0  ;;  %v1347_v42 = vadd.s32 1, %v5920_v34 }
 0x221   : > { %v2963_v46 = vadd.s32 1, %v4135_v37  ;;  %v4500_v27 = vpop.eup %4499  ;;  %vm1076_vm12 = vcmp.eq.s32.totalorder %v5883_v49, 2  ;;  %v2697_v6 = vadd.s32 %v5859_v5, %v5856_v36  ;;  %vm4126_vm13 = vcmp.lt.s32.totalorder %v4125_v31, 0 }
 0x222   : > { %v2730_v55 = vsel %vm5926_vm7, 0, %v2728_v63  ;;  %v4502_v62 = vpop.eup %4501  ;;  %v1077_v53 = vxor.u32 2147483648, %v4500_v27  ;;  %v2712_v58 = vsel %vm4126_vm13, 0, %v4125_v31  ;;  %v1344_v33 = vmul.u32 %v5905_v39, %v1328_v14 }
 0x223   : > { %vm1346_vm14 = vc.u32 %v5936_v7, %v5919_v29  ;;  %v1074_v48 = vxor.u32 2147483648, %v4502_v62  ;;  %v2713_v3 = vsub.s32 32, %v2712_v58  ;;  %v2717_v56 = vsub.s32 4294967266, %v2712_v58 }
 0x224   : > { %v2960_v59 = vand.u32 8388607, %v2953_v40  ;;  %v1078_v0 = vsel %vm1076_vm12, %v1077_v53, %v4502_v62  ;;  %v2714_v36 = vshll.u32 %v5912_v57, %v2712_v58  ;;  %v1348_v5 = vsel %vm1346_vm14, %v1347_v42, %v5920_v34 }
 0x225   : > { %vm2964_vm15 = vcmp.gt.s32.totalorder %v2963_v46, 0  ;;  %v1075_v20 = vsel %vm1073_vm11, %v4500_v27, %v1074_v48  ;;  %v2715_v11 = vshrl.u32 %v2697_v6, %v2713_v3  ;;  %v2718_v39 = vadd.s32 127, %v2717_v56 }
 0x226   : > { %v1349_v8 = vadd.s32 %v1348_v5, %v1344_v33  ;;  %v1079_v22 = vsel %vm1072_vm10, %v1075_v20, %v1078_v0  ;;  %v2734_v10 = vadd.s32 3, %v2730_v55  ;;  %v2965_v24 = vsel %vm2964_vm15, %v2963_v46, 0 }
 0x227   : > { %v1185_v43 = vand.u32 2147483647, %v5942_v44  ;;  %v1080_v60 = vsel %vm1069_vm9, nan, %v1079_v22  ;;  %v2716_v57 = vor.u32 %v2715_v11, %v2714_v36  ;;  %v2719_v51 = vshll.u32 %v2718_v39, 23 }
 0x228   : > { %v1350_v41 = vadd.s32 536870912, %v1349_v8  ;;  %3893 = vst [vmem:[%s5140_s24 + $0x20] sm:$0xff] %v1080_v60  ;;  %v2961_v18 = vor.u32 8388608, %v2960_v59  ;;  %v2967_v16 = vand.u32 31, %v2965_v24  ;;  %v5968_v61 = vand.u32 3, %v2734_v10 }
 0x229   : > { %v2720_v4 = vor.u32 4788187, %v2719_v51  ;;  %v1188_v34 = vand.u32 2139095040, %v5942_v44  ;;  %v5973_v2 = vand.u32 8388607, %v1185_v43  ;;  %v2723_v9 = vcvt.s32.f32 %v2716_v57 }
 0x22a   : > { %v5966_v47 = vshrl.u32 %v1350_v41, 30  ;;  %v2968_v49 = vsub.s32 32, %v2967_v16  ;;  %v5976_v63 = vadd.s32 %v5919_v29, %v5936_v7  ;;  %v5982_v42 = vshll.u32 %v2961_v18, 8 }
 0x22b   : > { %v2721_v38 = vand.u32 2147483647, %v2720_v4  ;;  %v2970_v6 = vshll.u32 %v4656_v15, %v2967_v16  ;;  %v2966_v62 = vshrl.u32 %v2965_v24, 5  ;;  %v2973_v29 = vshll.u32 %v4657_v19, %v2967_v16 }
 0x22c   : > { %v1352_v28 = vshll.u32 %v5966_v47, 30  ;;  %v2971_v37 = vshrl.u32 %v4657_v19, %v2968_v49  ;;  %v2974_v31 = vshrl.u32 %v4658_v21, %v2968_v49  ;;  %v2977_v14 = vshrl.u32 %v4659_v23, %v2968_v49 }
 0x22d   : > { %v2724_v46 = vmul.f32 %v2723_v9, %v2721_v38  ;;  %v2980_v55 = vshrl.u32 %v4660_v25, %v2968_v49  ;;  %v2976_v7 = vshll.u32 %v4658_v21, %v2967_v16  ;;  %v1189_v53 = vshrl.u32 %v1188_v34, 23 }
 0x22e   : > { %v5984_v27 = vsub.s32 %v1349_v8, %v1352_v28  ;;  %v2972_v48 = vor.u32 %v2971_v37, %v2970_v6  ;;  %v2979_v3 = vshll.u32 %v4659_v23, %v2967_v16  ;;  %v2975_v56 = vor.u32 %v2974_v31, %v2973_v29 }
 0x22f   : > { %v2725_v58 = vxor.u32 2147483648, %v2724_v46  ;;  %v2978_v59 = vor.u32 %v2977_v14, %v2976_v7  ;;  %v2982_v0 = vshll.u32 %v4660_v25, %v2967_v16  ;;  %v2983_v36 = vshrl.u32 %v4661_v32, %v2968_v49 }
 0x230   : > { %v1355_v33 = vsub.s32 0, %v5984_v27  ;;  %v2981_v11 = vor.u32 %v2980_v55, %v2979_v3  ;;  %v1193_v39 = vor.u32 8388608, %v5973_v2  ;;  %v2969_v22 = vshrl.u32 %v4656_v15, %v2968_v49 }
 0x231   : > { %v2726_v5 = vsel %vm2643_vm8, %v2725_v58, %v2724_v46  ;;  %v2984_v10 = vor.u32 %v2983_v36, %v2982_v0  ;;  %v4067_v24 = vadd.s32 4294967169, %v1189_v53  ;;  %vm2985_vm0 = vcmp.lt.s32.totalorder %v2966_v62, 1 }
 0x232   : > { %v4072_v20 = vmin.u32 %v1355_v33, %v5984_v27  ;;  %v2729_v8 = vsel %vm5926_vm7, %v5703_v17, %v2726_v5  ;;  %vm2988_vm1 = vcmp.lt.s32.totalorder %v2966_v62, 4  ;;  %vm1291_vm2 = vcmp.lt.s32.totalorder %v5762_v1, 0  ;;  %v6017_v33 = vpop.f32.mrb[10].mxu0 }
 0x233   : > { %4503 = vcosq.f32 %v2729_v8  ;;  %vm2986_vm3 = vcmp.lt.s32.totalorder %v2966_v62, 2  ;;  %v2990_v57 = vsel %vm2988_vm1, %v2978_v59, 2102212464  ;;  %v2993_v51 = vsel %vm2985_vm0, %v2972_v48, %v2975_v56 }
 0x234   : > { %v1357_v60 = vclz %v4072_v20  ;;  %4505 = vsinq.f32 %v2729_v8  ;;  %vm2987_vm4 = vcmp.lt.s32.totalorder %v2966_v62, 3  ;;  %v2994_v18 = vsel %vm2988_vm1, %v2981_v11, 920167782 }
 0x235   : > { %v2997_v16 = vsel %vm2985_vm0, %v2975_v56, %v2978_v59  ;;  %v2989_v35 = vsel %vm2985_vm0, %v2969_v22, %v2972_v48  ;;  %v2995_v4 = vsel %vm2987_vm4, %v2978_v59, %v2994_v18  ;;  %v2998_v34 = vsel %vm2988_vm1, %v2984_v10, 1326507024 }
 0x236   : > { %v4073_v41 = vadd.s32 4294967294, %v1357_v60  ;;  %v1195_v49 = vadd.s32 1, %v4067_v24  ;;  %v2991_v2 = vsel %vm2987_vm4, %v2975_v56, %v2990_v57  ;;  %v2996_v38 = vsel %vm2986_vm3, %v2993_v51, %v2995_v4 }
 0x237   : > { %v2999_v9 = vsel %vm2987_vm4, %v2981_v11, %v2998_v34  ;;  %v6006_v31 = vmul.u32.u64.low %v5982_v42, %v2996_v38  ;;  %v6007_v14 = vmul.u32.u64.high %v5982_v42, %v2996_v38, %v6006_v31  ;;  %v1375_v55 = vsub.s32 4, %v5966_v47 }
 0x238   : > { %vm4074_vm5 = vcmp.lt.s32.totalorder %v4073_v41, 0  ;;  %v3000_v37 = vsel %vm2986_vm3, %v2997_v16, %v2999_v9  ;;  %vm1196_vm6 = vcmp.gt.s32.totalorder %v1195_v49, 0  ;;  %vm2733_vm7 = vweird.f32 %v5703_v17 }
 0x239   : > { %v1360_v28 = vsel %vm4074_vm5, 0, %v4073_v41  ;;  %v2992_v29 = vsel %vm2986_vm3, %v2989_v35, %v2991_v2  ;;  %v6014_v7 = vmul.u32.u64.low %v5982_v42, %v3000_v37  ;;  %v6015_v53 = vmul.u32.u64.high %v5982_v42, %v3000_v37, %v6014_v7 }
 0x23a   : > { %v1361_v46 = vsub.s32 32, %v1360_v28  ;;  %v1365_v6 = vsub.s32 4294967266, %v1360_v28  ;;  %v1197_v58 = vsel %vm1196_vm6, %v1195_v49, 0  ;;  %v1362_v48 = vshll.u32 %v5984_v27, %v1360_v28 }
 0x23b   : > { %v1199_v59 = vand.u32 31, %v1197_v58  ;;  %vm2736_vm8 = vcmp.lt.s32.totalorder %v5968_v61, 2  ;;  %vm2737_vm9 = vcmp.eq.s32.totalorder %v5968_v61, 0  ;;  %vm6025_vm10 = vcmp.le.f32.partialorder %v1289_v30, 0.7853982 }
 0x23c   : > { %v1363_v3 = vshrl.u32 %v5976_v63, %v1361_v46  ;;  %v1366_v56 = vadd.s32 127, %v1365_v6  ;;  %v3011_v0 = vadd.s32 1, %v6007_v14  ;;  %vm2740_vm11 = vcmp.eq.s32.totalorder %v5968_v61, 2 }
 0x23d   : > { %v4504_v36 = vpop.eup %4503  ;;  %v1376_v63 = vsel %vm1291_vm2, %v1375_v55, %v5966_v47  ;;  %v3008_v8 = vmul.u32 %v5982_v42, %v2992_v29  ;;  %vm3010_vm12 = vc.u32 %v6015_v53, %v6006_v31  ;;  %v1200_v30 = vsub.s32 32, %v1199_v59 }
 0x23e   : > { %v1364_v27 = vor.u32 %v1363_v3, %v1362_v48  ;;  %v1367_v5 = vshll.u32 %v1366_v56, 23  ;;  %v4506_v20 = vpop.eup %4505  ;;  %v2741_v11 = vxor.u32 2147483648, %v4504_v36  ;;  %v3012_v24 = vsel %vm3010_vm12, %v3011_v0, %v6007_v14 }
 0x23f   : > { %v2738_v22 = vxor.u32 2147483648, %v4506_v20  ;;  %v6038_v60 = vshll.u32 %v1193_v39, 8  ;;  %v1378_v51 = vsel %vm6025_vm10, 0, %v1376_v63  ;;  %v3013_v47 = vadd.s32 %v3012_v24, %v3008_v8 }
 0x240   : > { %v1368_v10 = vor.u32 4788187, %v1367_v5  ;;  %v2742_v57 = vsel %vm2740_vm11, %v2741_v11, %v4506_v20  ;;  %v6044_v41 = vadd.f32 %v5876_v45, %v5567_v26  ;;  %v1371_v16 = vcvt.s32.f32 %v1364_v27 }
 0x241   : > { %v2739_v42 = vsel %vm2737_vm9, %v4504_v36, %v2738_v22  ;;  %v6048_v35 = vshrl.u32 %v1197_v58, 5  ;;  %v3014_v4 = vadd.s32 536870912, %v3013_v47  ;;  %v1203_v34 = vshrl.u32 %v4657_v19, %v1200_v30 }
 0x242   : > { %v1369_v18 = vand.u32 2147483647, %v1368_v10  ;;  %v2743_v39 = vsel %vm2736_vm8, %v2739_v42, %v2742_v57  ;;  %v1206_v49 = vshrl.u32 %v4658_v21, %v1200_v30  ;;  %v1202_v38 = vshll.u32 %v4656_v15, %v1199_v59 }
 0x243   : > { %v2744_v2 = vsel %vm2733_vm7, nan, %v2743_v39  ;;  %v1209_v9 = vshrl.u32 %v4659_v23, %v1200_v30  ;;  %v3015_v28 = vshrl.u32 %v3014_v4, 30  ;;  %v1205_v37 = vshll.u32 %v4657_v19, %v1199_v59 }
 0x244   : > { %v1372_v26 = vmul.f32 %v1371_v16, %v1369_v18  ;;  %3909 = vst [vmem:[%s5140_s24 + $0xa0] sm:$0xff] %v2744_v2  ;;  %v1208_v61 = vshll.u32 %v4658_v21, %v1199_v59  ;;  %v1212_v14 = vshrl.u32 %v4660_v25, %v1200_v30  ;;  %v1211_v6 = vshll.u32 %v4659_v23, %v1199_v59 }
 0x245   : > { %v1214_v55 = vshll.u32 %v4660_v25, %v1199_v59  ;;  %v1215_v17 = vshrl.u32 %v4661_v32, %v1200_v30  ;;  %v1382_v29 = vadd.s32 3, %v1378_v51  ;;  %v3016_v7 = vshll.u32 %v3015_v28, 30 }
 0x246   : > { %v1373_v46 = vxor.u32 2147483648, %v1372_v26  ;;  %v1204_v58 = vor.u32 %v1203_v34, %v1202_v38  ;;  %v1207_v48 = vor.u32 %v1206_v49, %v1205_v37  ;;  %v1210_v56 = vor.u32 %v1209_v9, %v1208_v61 }
 0x247   : > { %v1213_v0 = vor.u32 %v1212_v14, %v1211_v6  ;;  %v1216_v36 = vor.u32 %v1215_v17, %v1214_v55  ;;  %v6070_v5 = vsub.s32 %v3013_v47, %v3016_v7  ;;  %v1201_v59 = vshrl.u32 %v4656_v15, %v1200_v30 }
 0x248   : > { %v1374_v3 = vsel %vm1291_vm2, %v1373_v46, %v1372_v26  ;;  %v2852_v63 = vand.u32 2139095040, %v6044_v41  ;;  %vm1217_vm13 = vcmp.lt.s32.totalorder %v6048_v35, 1  ;;  %vm1218_vm14 = vcmp.lt.s32.totalorder %v6048_v35, 2 }
 0x249   : > { %v1377_v27 = vsel %vm6025_vm10, %v5762_v1, %v1374_v3  ;;  %vm1219_vm15 = vcmp.lt.s32.totalorder %v6048_v35, 3  ;;  %v3019_v20 = vsub.s32 0, %v6070_v5  ;;  %vm1220_vm0 = vcmp.lt.s32.totalorder %v6048_v35, 4 }
 0x24a   : > { %4507 = vcosq.f32 %v1377_v27  ;;  %v1225_v62 = vsel %vm1217_vm13, %v1204_v58, %v1207_v48  ;;  %v1222_v11 = vsel %vm1220_vm0, %v1210_v56, 2102212464  ;;  %v1226_v8 = vsel %vm1220_vm0, %v1213_v0, 920167782 }
 0x24b   : > { %4509 = vsinq.f32 %v1377_v27  ;;  %v1229_v30 = vsel %vm1217_vm13, %v1207_v48, %v1210_v56  ;;  %v1230_v22 = vsel %vm1220_vm0, %v1216_v36, 1326507024  ;;  %v4136_v10 = vmin.u32 %v3019_v20, %v6070_v5 }
 0x24c   : > { %v3039_v24 = vsub.s32 4, %v3015_v28  ;;  %v1227_v57 = vsel %vm1219_vm15, %v1210_v56, %v1226_v8  ;;  %v1231_v51 = vsel %vm1219_vm15, %v1213_v0, %v1230_v22  ;;  %v1383_v47 = vand.u32 3, %v1382_v29 }
 0x24d   : > { %v1228_v42 = vsel %vm1218_vm14, %v1225_v62, %v1227_v57  ;;  %v1232_v18 = vsel %vm1218_vm14, %v1229_v30, %v1231_v51  ;;  %v2853_v16 = vshrl.u32 %v2852_v63, 23  ;;  %vm2955_vm1 = vcmp.lt.s32.totalorder %v5880_v50, 0 }
 0x24e   : > { %v3021_v39 = vclz %v4136_v10  ;;  %v1221_v4 = vsel %vm1217_vm13, %v1201_v59, %v1204_v58  ;;  %v1223_v34 = vsel %vm1219_vm15, %v1207_v48, %v1222_v11  ;;  %vm1381_vm2 = vweird.f32 %v5762_v1 }
 0x24f   : > { %v6098_v49 = vmul.u32.u64.low %v6038_v60, %v1232_v18  ;;  %v6099_v2 = vmul.u32.u64.high %v6038_v60, %v1232_v18, %v6098_v49  ;;  %v6102_v26 = vmul.u32.u64.low %v6038_v60, %v1228_v42  ;;  %v6103_v38 = vmul.u32.u64.high %v6038_v60, %v1228_v42, %v6102_v26 }
 0x250   : > { %vm6109_vm3 = vcmp.le.f32.partialorder %v2953_v40, 0.7853982  ;;  %v4137_v37 = vadd.s32 4294967294, %v3021_v39  ;;  %v3040_v61 = vsel %vm2955_vm1, %v3039_v24, %v3015_v28  ;;  %v4131_v14 = vadd.s32 4294967169, %v2853_v16 }
 0x251   : > { %vm1384_vm4 = vcmp.lt.s32.totalorder %v1383_v47, 2  ;;  %vm1385_vm5 = vcmp.eq.s32.totalorder %v1383_v47, 0  ;;  %vm1388_vm6 = vcmp.eq.s32.totalorder %v1383_v47, 2  ;;  %v1224_v46 = vsel %vm1218_vm14, %v1221_v4, %v1223_v34 }
 0x252   : > { %v3009_v6 = vadd.s32 %v6006_v31, %v6015_v53  ;;  %vm4138_vm7 = vcmp.lt.s32.totalorder %v4137_v37, 0  ;;  %v2849_v40 = vand.u32 2147483647, %v6044_v41  ;;  %v2859_v55 = vadd.s32 1, %v4131_v14 }
 0x253   : > { %v3024_v29 = vsel %vm4138_vm7, 0, %v4137_v37  ;;  %v3042_v7 = vsel %vm6109_vm3, 0, %v3040_v61  ;;  %vm1242_vm8 = vc.u32 %v6099_v2, %v6102_v26  ;;  %v1243_v28 = vadd.s32 1, %v6103_v38  ;;  %v6148_v37 = vpop.f32.mrb[10].mxu1 }
 0x254   : > { %v4508_v17 = vpop.eup %4507  ;;  %v3025_v48 = vsub.s32 32, %v3024_v29  ;;  %v3029_v3 = vsub.s32 4294967266, %v3024_v29  ;;  %v1240_v31 = vmul.u32 %v6038_v60, %v1224_v46  ;;  %v3026_v56 = vshll.u32 %v6070_v5, %v3024_v29 }
 0x255   : > { %v4510_v58 = vpop.eup %4509  ;;  %v1389_v35 = vxor.u32 2147483648, %v4508_v17  ;;  %v1244_v0 = vsel %vm1242_vm8, %v1243_v28, %v6103_v38  ;;  %vm2860_vm9 = vcmp.gt.s32.totalorder %v2859_v55, 0  ;;  %v3046_v62 = vadd.s32 3, %v3042_v7 }
 0x256   : > { %v1386_v53 = vxor.u32 2147483648, %v4510_v58  ;;  %v3027_v27 = vshrl.u32 %v3009_v6, %v3025_v48  ;;  %v3030_v59 = vadd.s32 127, %v3029_v3  ;;  %v1245_v63 = vadd.s32 %v1244_v0, %v1240_v31 }
 0x257   : > { %v1390_v36 = vsel %vm1388_vm6, %v1389_v35, %v4510_v58  ;;  %v2856_v11 = vand.u32 8388607, %v2849_v40  ;;  %v2861_v8 = vsel %vm2860_vm9, %v2859_v55, 0  ;;  %v6138_v4 = vand.u32 3, %v3046_v62 }
 0x258   : > { %v1387_v20 = vsel %vm1385_vm5, %v4508_v17, %v1386_v53  ;;  %v3028_v30 = vor.u32 %v3027_v27, %v3026_v56  ;;  %v3031_v5 = vshll.u32 %v3030_v59, 23  ;;  %v1246_v22 = vadd.s32 536870912, %v1245_v63 }
 0x259   : > { %v1391_v60 = vsel %vm1384_vm4, %v1387_v20, %v1390_v36  ;;  %v2863_v24 = vand.u32 31, %v2861_v8  ;;  %v2857_v42 = vor.u32 8388608, %v2856_v11  ;;  %v6146_v38 = vadd.f32 %v5876_v45, %v5687_v13 }
 0x25a   : > { %v1392_v10 = vsel %vm1381_vm2, nan, %v1391_v60  ;;  %v3032_v57 = vor.u32 4788187, %v3031_v5  ;;  %v6136_v51 = vshrl.u32 %v1246_v22, 30  ;;  %v3035_v39 = vcvt.s32.f32 %v3028_v30 }
 0x25b   : > { %3896 = vst [vmem:[%s5140_s24 + $0x38] sm:$0xff] %v1392_v10  ;;  %v2864_v18 = vsub.s32 32, %v2863_v24  ;;  %v2866_v46 = vshll.u32 %v4656_v15, %v2863_v24  ;;  %v2862_v55 = vshrl.u32 %v2861_v8, 5  ;;  %v2869_v17 = vshll.u32 %v4657_v19, %v2863_v24 }
 0x25c   : > { %v3033_v16 = vand.u32 2147483647, %v3032_v57  ;;  %v1248_v47 = vshll.u32 %v6136_v51, 30  ;;  %v2872_v29 = vshll.u32 %v4658_v21, %v2863_v24  ;;  %v6156_v7 = vshll.u32 %v2857_v42, 8 }
 0x25d   : > { %v2867_v34 = vshrl.u32 %v4657_v19, %v2864_v18  ;;  %v2870_v49 = vshrl.u32 %v4658_v21, %v2864_v18  ;;  %v2873_v1 = vshrl.u32 %v4659_v23, %v2864_v18  ;;  %v2876_v6 = vshrl.u32 %v4660_v25, %v2864_v18 }
 0x25e   : > { %v3036_v61 = vmul.f32 %v3035_v39, %v3033_v16  ;;  %v6150_v14 = vsub.s32 %v1245_v63, %v1248_v47  ;;  %v2875_v35 = vshll.u32 %v4659_v23, %v2863_v24  ;;  %v2878_v31 = vshll.u32 %v4660_v25, %v2863_v24 }
 0x25f   : > { %v2868_v58 = vor.u32 %v2867_v34, %v2866_v46  ;;  %v2871_v48 = vor.u32 %v2870_v49, %v2869_v17  ;;  %v2874_v3 = vor.u32 %v2873_v1, %v2872_v29  ;;  %v2879_v53 = vshrl.u32 %v4661_v32, %v2864_v18 }
 0x260   : > { %v3037_v28 = vxor.u32 2147483648, %v3036_v61  ;;  %v1251_v13 = vsub.s32 0, %v6150_v14  ;;  %vm1187_vm10 = vcmp.lt.s32.totalorder %v5942_v44, 0  ;;  %v2877_v36 = vor.u32 %v2876_v6, %v2875_v35 }
 0x261   : > { %v1500_v27 = vand.u32 2139095040, %v6146_v38  ;;  %v1271_v63 = vsub.s32 4, %v6136_v51  ;;  %v2865_v20 = vshrl.u32 %v4656_v15, %v2864_v18  ;;  %v2880_v62 = vor.u32 %v2879_v53, %v2878_v31 }
 0x262   : > { %v3038_v56 = vsel %vm2955_vm1, %v3037_v28, %v3036_v61  ;;  %v4068_v0 = vmin.u32 %v1251_v13, %v6150_v14  ;;  %vm2881_vm11 = vcmp.lt.s32.totalorder %v2862_v55, 1  ;;  %vm2884_vm12 = vcmp.lt.s32.totalorder %v2862_v55, 4 }
 0x263   : > { %v3041_v59 = vsel %vm6109_vm3, %v5880_v50, %v3038_v56  ;;  %vm6174_vm13 = vcmp.le.f32.partialorder %v1185_v43, 0.7853982  ;;  %vm2882_vm14 = vcmp.lt.s32.totalorder %v2862_v55, 2  ;;  %v2886_v60 = vsel %vm2884_vm12, %v2874_v3, 2102212464 }
 0x264   : > { %4511 = vcosq.f32 %v3041_v59  ;;  %v1253_v11 = vclz %v4068_v0  ;;  %v2889_v9 = vsel %vm2881_vm11, %v2868_v58, %v2871_v48  ;;  %vm2883_vm15 = vcmp.lt.s32.totalorder %v2862_v55, 3 }
 0x265   : > { %4513 = vsinq.f32 %v3041_v59  ;;  %v2890_v5 = vsel %vm2884_vm12, %v2877_v36, 920167782  ;;  %v2893_v22 = vsel %vm2881_vm11, %v2871_v48, %v2874_v3  ;;  %v2885_v10 = vsel %vm2881_vm11, %v2865_v20, %v2868_v58 }
 0x266   : > { %v4069_v30 = vadd.s32 4294967294, %v1253_v11  ;;  %v2891_v24 = vsel %vm2883_vm15, %v2874_v3, %v2890_v5  ;;  %v2894_v57 = vsel %vm2884_vm12, %v2880_v62, 1326507024  ;;  %v1501_v42 = vshrl.u32 %v1500_v27, 23 }
 0x267   : > { %v2887_v18 = vsel %vm2883_vm15, %v2871_v48, %v2886_v60  ;;  %v2892_v16 = vsel %vm2882_vm14, %v2889_v9, %v2891_v24  ;;  %v2895_v39 = vsel %vm2883_vm15, %v2877_v36, %v2894_v57  ;;  %vm3049_vm1 = vcmp.eq.s32.totalorder %v6138_v4, 0 }
 0x268   : > { %vm4070_vm0 = vcmp.lt.s32.totalorder %v4069_v30, 0  ;;  %v2896_v47 = vsel %vm2882_vm14, %v2893_v22, %v2895_v39  ;;  %v6182_v34 = vmul.u32.u64.low %v6156_v7, %v2892_v16  ;;  %v6183_v49 = vmul.u32.u64.high %v6156_v7, %v2892_v16, %v6182_v34 }
 0x269   : > { %v1256_v43 = vsel %vm4070_vm0, 0, %v4069_v30  ;;  %vm3048_vm2 = vcmp.lt.s32.totalorder %v6138_v4, 2  ;;  %v1241_v1 = vadd.s32 %v6102_v26, %v6099_v2  ;;  %v4079_v6 = vadd.s32 4294967169, %v1501_v42  ;;  %v6199_v26 = vpop.f32.mrb[11].mxu0 }
 0x26a   : > { %v1257_v61 = vsub.s32 32, %v1256_v43  ;;  %v1261_v46 = vsub.s32 4294967266, %v1256_v43  ;;  %vm3045_vm3 = vweird.f32 %v5880_v50  ;;  %v1272_v17 = vsel %vm1187_vm10, %v1271_v63, %v6136_v51 }
 0x26b   : > { %v2888_v29 = vsel %vm2882_vm14, %v2885_v10, %v2887_v18  ;;  %v6195_v28 = vmul.u32.u64.low %v6156_v7, %v2896_v47  ;;  %v6196_v13 = vmul.u32.u64.high %v6156_v7, %v2896_v47, %v6195_v28  ;;  %v1258_v58 = vshll.u32 %v6150_v14, %v1256_v43 }
 0x26c   : > { %v1259_v35 = vshrl.u32 %v1241_v1, %v1257_v61  ;;  %v1262_v48 = vadd.s32 127, %v1261_v46  ;;  %v1507_v2 = vadd.s32 1, %v4079_v6  ;;  %vm3052_vm4 = vcmp.eq.s32.totalorder %v6138_v4, 2 }
 0x26d   : > { %v2907_v3 = vadd.s32 1, %v6183_v49  ;;  %v1497_v31 = vand.u32 2147483647, %v6146_v38  ;;  %v6206_v51 = vadd.f32 %v5876_v45, %v5764_v12  ;;  %v1274_v14 = vsel %vm6174_vm13, 0, %v1272_v17 }
 0x26e   : > { %v4512_v55 = vpop.eup %4511  ;;  %v1260_v53 = vor.u32 %v1259_v35, %v1258_v58  ;;  %v1263_v56 = vshll.u32 %v1262_v48, 23  ;;  %vm1508_vm5 = vcmp.gt.s32.totalorder %v1507_v2, 0  ;;  %v2904_v27 = vmul.u32 %v6156_v7, %v2888_v29 }
 0x26f   : > { %v4514_v0 = vpop.eup %4513  ;;  %v3053_v36 = vxor.u32 2147483648, %v4512_v55  ;;  %vm2906_vm6 = vc.u32 %v6196_v13, %v6182_v34  ;;  %v1509_v59 = vsel %vm1508_vm5, %v1507_v2, 0  ;;  %v6216_v62 = vadd.f32 %v5876_v45, %v5846_v52 }
 0x270   : > { %v3050_v63 = vxor.u32 2147483648, %v4514_v0  ;;  %v1264_v20 = vor.u32 4788187, %v1263_v56  ;;  %v2908_v12 = vsel %vm2906_vm6, %v2907_v3, %v6183_v49  ;;  %v1504_v7 = vand.u32 8388607, %v1497_v31 }
 0x271   : > { %v3054_v11 = vsel %vm3052_vm4, %v3053_v36, %v4514_v0  ;;  %v2909_v60 = vadd.s32 %v2908_v12, %v2904_v27  ;;  %v1511_v9 = vand.u32 31, %v1509_v59  ;;  %v1267_v22 = vcvt.s32.f32 %v1260_v53 }
 0x272   : > { %v3051_v30 = vsel %vm3049_vm1, %v4512_v55, %v3050_v63  ;;  %v1265_v5 = vand.u32 2147483647, %v1264_v20  ;;  %v1278_v10 = vadd.s32 3, %v1274_v14  ;;  %v3164_v57 = vand.u32 2139095040, %v6206_v51 }
 0x273   : > { %v3055_v24 = vsel %vm3048_vm2, %v3051_v30, %v3054_v11  ;;  %v2910_v52 = vadd.s32 536870912, %v2909_v60  ;;  %v1512_v45 = vsub.s32 32, %v1511_v9  ;;  %v1514_v16 = vshll.u32 %v4656_v15, %v1511_v9 }
 0x274   : > { %v3056_v42 = vsel %vm3045_vm3, nan, %v3055_v24  ;;  %v1268_v18 = vmul.f32 %v1267_v22, %v1265_v5  ;;  %v1517_v39 = vshll.u32 %v4657_v19, %v1511_v9  ;;  %v1520_v4 = vshll.u32 %v4658_v21, %v1511_v9  ;;  %v6261_v22 = vpop.f32.mrb[11].mxu1 }
 0x275   : > { %3912 = vst [vmem:[%s5140_s24 + $0xb8] sm:$0xff] %v3056_v42  ;;  %v2911_v43 = vshrl.u32 %v2910_v52, 30  ;;  %v1515_v47 = vshrl.u32 %v4657_v19, %v1512_v45  ;;  %v1518_v49 = vshrl.u32 %v4658_v21, %v1512_v45  ;;  %v1521_v61 = vshrl.u32 %v4659_v23, %v1512_v45 }
 0x276   : > { %v1269_v1 = vxor.u32 2147483648, %v1268_v18  ;;  %v1523_v46 = vshll.u32 %v4659_v23, %v1511_v9  ;;  %v1524_v50 = vshrl.u32 %v4660_v25, %v1512_v45  ;;  %v6238_v6 = vand.u32 3, %v1278_v10 }
 0x277   : > { %vm2851_vm7 = vcmp.lt.s32.totalorder %v6044_v41, 0  ;;  %v2912_v17 = vshll.u32 %v2911_v43, 30  ;;  %v1510_v29 = vshrl.u32 %v1509_v59, 5  ;;  %v1516_v28 = vor.u32 %v1515_v47, %v1514_v16 }
 0x278   : > { %v1270_v58 = vsel %vm1187_vm10, %v1269_v1, %v1268_v18  ;;  %v1519_v35 = vor.u32 %v1518_v49, %v1517_v39  ;;  %v1522_v48 = vor.u32 %v1521_v61, %v1520_v4  ;;  %v1525_v2 = vor.u32 %v1524_v50, %v1523_v46 }
 0x279   : > { %v1273_v3 = vsel %vm6174_vm13, %v5942_v44, %v1270_v58  ;;  %v6246_v55 = vsub.s32 %v2909_v60, %v2912_v17  ;;  %v1526_v53 = vshll.u32 %v4660_v25, %v1511_v9  ;;  %v1527_v56 = vshrl.u32 %v4661_v32, %v1512_v45 }
 0x27a   : > { %4515 = vcosq.f32 %v1273_v3  ;;  %v1505_v14 = vor.u32 8388608, %v1504_v7  ;;  %v3161_v0 = vand.u32 2147483647, %v6206_v51  ;;  %v3165_v36 = vshrl.u32 %v3164_v57, 23 }
 0x27b   : > { %4517 = vsinq.f32 %v1273_v3  ;;  %vm6253_vm8 = vcmp.le.f32.partialorder %v2849_v40, 0.7853982  ;;  %v2915_v8 = vsub.s32 0, %v6246_v55  ;;  %v1513_v59 = vshrl.u32 %v4656_v15, %v1512_v45 }
 0x27c   : > { %v1528_v63 = vor.u32 %v1527_v56, %v1526_v53  ;;  %v2935_v20 = vsub.s32 4, %v2911_v43  ;;  %vm1529_vm9 = vcmp.lt.s32.totalorder %v1510_v29, 1  ;;  %vm1531_vm10 = vcmp.lt.s32.totalorder %v1510_v29, 3 }
 0x27d   : > { %vm1532_vm11 = vcmp.lt.s32.totalorder %v1510_v29, 4  ;;  %v4132_v12 = vmin.u32 %v2915_v8, %v6246_v55  ;;  %v1537_v60 = vsel %vm1529_vm9, %v1516_v28, %v1519_v35  ;;  %v1541_v40 = vsel %vm1529_vm9, %v1519_v35, %v1522_v48 }
 0x27e   : > { %v1534_v11 = vsel %vm1532_vm11, %v1522_v48, 2102212464  ;;  %v1538_v7 = vsel %vm1532_vm11, %v1525_v2, 920167782  ;;  %v1542_v30 = vsel %vm1532_vm11, %v1528_v63, 1326507024  ;;  %v1533_v24 = vsel %vm1529_vm9, %v1513_v59, %v1516_v28 }
 0x27f   : > { %v1539_v9 = vsel %vm1531_vm10, %v1522_v48, %v1538_v7  ;;  %v1545_v5 = vshll.u32 %v1505_v14, 8  ;;  %v2917_v10 = vclz %v4132_v12  ;;  %vm1530_vm12 = vcmp.lt.s32.totalorder %v1510_v29, 2 }
 0x280   : > { %v1535_v52 = vsel %vm1531_vm10, %v1519_v35, %v1534_v11  ;;  %v2936_v45 = vsel %vm2851_vm7, %v2935_v20, %v2911_v43  ;;  %v1540_v57 = vsel %vm1530_vm12, %v1537_v60, %v1539_v9  ;;  %v1543_v42 = vsel %vm1531_vm10, %v1525_v2, %v1542_v30 }
 0x281   : > { %v4143_v18 = vadd.s32 4294967169, %v3165_v36  ;;  %vm1277_vm13 = vweird.f32 %v5942_v44  ;;  %v4133_v16 = vadd.s32 4294967294, %v2917_v10  ;;  %v1544_v39 = vsel %vm1530_vm12, %v1541_v40, %v1543_v42 }
 0x282   : > { %v6268_v47 = vmul.u32.u64.low %v1545_v5, %v1540_v57  ;;  %v6269_v49 = vmul.u32.u64.high %v1545_v5, %v1540_v57, %v6268_v47  ;;  %vm1280_vm14 = vcmp.lt.s32.totalorder %v6238_v6, 2  ;;  %v1536_v4 = vsel %vm1530_vm12, %v1533_v24, %v1535_v52 }
 0x283   : > { %v6273_v1 = vmul.u32.u64.low %v1545_v5, %v1544_v39  ;;  %v6274_v61 = vmul.u32.u64.high %v1545_v5, %v1544_v39, %v6273_v1  ;;  %vm1281_vm15 = vcmp.eq.s32.totalorder %v6238_v6, 0  ;;  %vm1284_vm0 = vcmp.eq.s32.totalorder %v6238_v6, 2 }
 0x284   : > { %vm4134_vm1 = vcmp.lt.s32.totalorder %v4133_v16, 0  ;;  %v3171_v43 = vadd.s32 1, %v4143_v18  ;;  %v4516_v46 = vpop.eup %4515  ;;  %v2905_v50 = vadd.s32 %v6182_v34, %v6196_v13  ;;  %v2938_v29 = vsel %vm6253_vm8, 0, %v2936_v45 }
 0x285   : > { %v2920_v17 = vsel %vm4134_vm1, 0, %v4133_v16  ;;  %v3168_v28 = vand.u32 8388607, %v3161_v0  ;;  %v4518_v58 = vpop.eup %4517  ;;  %v1285_v35 = vxor.u32 2147483648, %v4516_v46  ;;  %v1552_v3 = vmul.u32 %v1545_v5, %v1536_v4 }
 0x286   : > { %v2921_v48 = vsub.s32 32, %v2920_v17  ;;  %v2925_v2 = vsub.s32 4294967266, %v2920_v17  ;;  %v1282_v53 = vxor.u32 2147483648, %v4518_v58  ;;  %v2922_v56 = vshll.u32 %v6246_v55, %v2920_v17 }
 0x287   : > { %vm1554_vm2 = vc.u32 %v6274_v61, %v6268_v47  ;;  %v1555_v34 = vadd.s32 1, %v6269_v49  ;;  %v1286_v13 = vsel %vm1284_vm0, %v1285_v35, %v4518_v58  ;;  %vm3172_vm3 = vcmp.gt.s32.totalorder %v3171_v43, 0 }
 0x288   : > { %v2923_v14 = vshrl.u32 %v2905_v50, %v2921_v48  ;;  %v2926_v36 = vadd.s32 127, %v2925_v2  ;;  %v1283_v8 = vsel %vm1281_vm15, %v4516_v46, %v1282_v53  ;;  %v2942_v59 = vadd.s32 3, %v2938_v29 }
 0x289   : > { %v1556_v63 = vsel %vm1554_vm2, %v1555_v34, %v6269_v49  ;;  %v3173_v20 = vsel %vm3172_vm3, %v3171_v43, 0  ;;  %v1287_v55 = vsel %vm1280_vm14, %v1283_v8, %v1286_v13  ;;  %v3169_v10 = vor.u32 8388608, %v3168_v28 }
 0x28a   : > { %v2924_v12 = vor.u32 %v2923_v14, %v2922_v56  ;;  %v2927_v11 = vshll.u32 %v2926_v36, 23  ;;  %v1557_v60 = vadd.s32 %v1556_v63, %v1552_v3  ;;  %v1288_v7 = vsel %vm1277_vm13, nan, %v1287_v55 }
 0x28b   : > { %v3175_v9 = vand.u32 31, %v3173_v20  ;;  %3895 = vst [vmem:[%s5140_s24 + $0x30] sm:$0xff] %v1288_v7  ;;  %v6298_v5 = vand.u32 3, %v2942_v59  ;;  %v1396_v6 = vand.u32 2139095040, %v6216_v62  ;;  %v3174_v42 = vshrl.u32 %v3173_v20, 5 }
 0x28c   : > { %v2928_v40 = vor.u32 4788187, %v2927_v11  ;;  %v1558_v30 = vadd.s32 536870912, %v1557_v60  ;;  %v2931_v45 = vcvt.s32.f32 %v2924_v12  ;;  %v1393_v35 = vand.u32 2147483647, %v6216_v62 }
 0x28d   : > { %v3176_v24 = vsub.s32 32, %v3175_v9  ;;  %v3184_v4 = vshll.u32 %v4658_v21, %v3175_v9  ;;  %v3178_v43 = vshll.u32 %v4656_v15, %v3175_v9  ;;  %v3181_v46 = vshll.u32 %v4657_v19, %v3175_v9 }
 0x28e   : > { %v2929_v52 = vand.u32 2147483647, %v2928_v40  ;;  %v6300_v57 = vshrl.u32 %v1558_v30, 30  ;;  %v3187_v50 = vshll.u32 %v4659_v23, %v3175_v9  ;;  %v3190_v53 = vshll.u32 %v4660_v25, %v3175_v9 }
 0x28f   : > { %v3179_v18 = vshrl.u32 %v4657_v19, %v3176_v24  ;;  %v3182_v44 = vshrl.u32 %v4658_v21, %v3176_v24  ;;  %v3185_v16 = vshrl.u32 %v4659_v23, %v3176_v24  ;;  %v3188_v1 = vshrl.u32 %v4660_v25, %v3176_v24 }
 0x290   : > { %v2932_v39 = vmul.f32 %v2931_v45, %v2929_v52  ;;  %v1560_v49 = vshll.u32 %v6300_v57, 30  ;;  %v3191_v17 = vshrl.u32 %v4661_v32, %v3176_v24  ;;  %v6320_v13 = vshll.u32 %v3169_v10, 8 }
 0x291   : > { %v3186_v58 = vor.u32 %v3185_v16, %v3184_v4  ;;  %v3180_v48 = vor.u32 %v3179_v18, %v3178_v43  ;;  %v3183_v2 = vor.u32 %v3182_v44, %v3181_v46  ;;  %v3189_v3 = vor.u32 %v3188_v1, %v3187_v50 }
 0x292   : > { %v2933_v29 = vxor.u32 2147483648, %v2932_v39  ;;  %v6313_v28 = vsub.s32 %v1557_v60, %v1560_v49  ;;  %v1397_v14 = vshrl.u32 %v1396_v6, 23  ;;  %v3177_v8 = vshrl.u32 %v4656_v15, %v3176_v24 }
 0x293   : > { %v3192_v59 = vor.u32 %v3191_v17, %v3190_v53  ;;  %vm3196_vm4 = vcmp.lt.s32.totalorder %v3174_v42, 4  ;;  %vm3193_vm5 = vcmp.lt.s32.totalorder %v3174_v42, 1  ;;  %vm3195_vm6 = vcmp.lt.s32.totalorder %v3174_v42, 3 }
 0x294   : > { %v2934_v56 = vsel %vm2851_vm7, %v2933_v29, %v2932_v39  ;;  %v1563_v34 = vsub.s32 0, %v6313_v28  ;;  %v3198_v20 = vsel %vm3196_vm4, %v3186_v58, 2102212464  ;;  %v3201_v55 = vsel %vm3193_vm5, %v3180_v48, %v3183_v2 }
 0x295   : > { %v2937_v36 = vsel %vm6253_vm8, %v6044_v41, %v2934_v56  ;;  %v3202_v12 = vsel %vm3196_vm4, %v3189_v3, 920167782  ;;  %vm6331_vm7 = vcmp.le.f32.partialorder %v1497_v31, 0.7853982  ;;  %v3197_v60 = vsel %vm3193_vm5, %v3177_v8, %v3180_v48 }
 0x296   : > { %4519 = vcosq.f32 %v2937_v36  ;;  %v4080_v63 = vmin.u32 %v1563_v34, %v6313_v28  ;;  %v3199_v7 = vsel %vm3195_vm6, %v3183_v2, %v3198_v20  ;;  %v3205_v9 = vsel %vm3193_vm5, %v3183_v2, %v3186_v58 }
 0x297   : > { %4521 = vsinq.f32 %v2937_v36  ;;  %vm3194_vm8 = vcmp.lt.s32.totalorder %v3174_v42, 2  ;;  %v3203_v40 = vsel %vm3195_vm6, %v3186_v58, %v3202_v12  ;;  %v3206_v30 = vsel %vm3196_vm4, %v3192_v59, 1326507024 }
 0x298   : > { %v1565_v11 = vclz %v4080_v63  ;;  %v4075_v10 = vadd.s32 4294967169, %v1397_v14  ;;  %v1583_v52 = vsub.s32 4, %v6300_v57  ;;  %v3204_v45 = vsel %vm3194_vm8, %v3201_v55, %v3203_v40  ;;  %v6364_v14 = vpop.f32.mrb[12].mxu0  ;;  %v6372_v55 = vld [vmem:[%s7556_s2] ss:$0 sm:$0xff] }
 0x299   : > { %v3207_v6 = vsel %vm3195_vm6, %v3189_v3, %v3206_v30  ;;  %v3200_v18 = vsel %vm3194_vm8, %v3197_v60, %v3199_v7  ;;  %v6338_v31 = vmul.u32.u64.low %v6320_v13, %v3204_v45  ;;  %v6339_v16 = vmul.u32.u64.high %v6320_v13, %v3204_v45, %v6338_v31 }
 0x29a   : > { %v4081_v24 = vadd.s32 4294967294, %v1565_v11  ;;  %v3208_v44 = vsel %vm3194_vm8, %v3205_v9, %v3207_v6  ;;  %v1403_v42 = vadd.s32 1, %v4075_v10  ;;  %vm2941_vm10 = vweird.f32 %v6044_v41 }
 0x29b   : > { %v6343_v39 = vmul.u32.u64.low %v6320_v13, %v3208_v44  ;;  %v6344_v49 = vmul.u32.u64.high %v6320_v13, %v3208_v44, %v6343_v39  ;;  %vm2948_vm11 = vcmp.eq.s32.totalorder %v6298_v5, 2  ;;  %vm1499_vm12 = vcmp.lt.s32.totalorder %v6146_v38, 0 }
 0x29c   : > { %vm4082_vm9 = vcmp.lt.s32.totalorder %v4081_v24, 0  ;;  %v1553_v4 = vadd.s32 %v6268_v47, %v6274_v61  ;;  %v1584_v50 = vsel %vm1499_vm12, %v1583_v52, %v6300_v57  ;;  %vm1404_vm13 = vcmp.gt.s32.totalorder %v1403_v42, 0 }
 0x29d   : > { %v1568_v1 = vsel %vm4082_vm9, 0, %v4081_v24  ;;  %v3216_v17 = vmul.u32 %v6320_v13, %v3200_v18  ;;  %v3219_v29 = vadd.s32 1, %v6339_v16  ;;  %v1400_v58 = vand.u32 8388607, %v1393_v35 }
 0x29e   : > { %v1569_v43 = vsub.s32 32, %v1568_v1  ;;  %v1573_v46 = vsub.s32 4294967266, %v1568_v1  ;;  %v1405_v48 = vsel %vm1404_vm13, %v1403_v42, 0  ;;  %v1570_v3 = vshll.u32 %v6313_v28, %v1568_v1 }
 0x29f   : > { %vm3218_vm14 = vc.u32 %v6344_v49, %v6338_v31  ;;  %v1586_v57 = vsel %vm6331_vm7, 0, %v1584_v50  ;;  %v1407_v13 = vand.u32 31, %v1405_v48  ;;  %vm2945_vm15 = vcmp.eq.s32.totalorder %v6298_v5, 0 }
 0x2a0   : > { %v4520_v2 = vpop.eup %4519  ;;  %v1571_v47 = vshrl.u32 %v1553_v4, %v1569_v43  ;;  %v1574_v61 = vadd.s32 127, %v1573_v46  ;;  %v3220_v34 = vsel %vm3218_vm14, %v3219_v29, %v6339_v16  ;;  %v6376_v12 = vadd.f32 %v6372_v55, %v5922_v54 }
 0x2a1   : > { %v4522_v53 = vpop.eup %4521  ;;  %v2949_v56 = vxor.u32 2147483648, %v4520_v2  ;;  %v3221_v63 = vadd.s32 %v3220_v34, %v3216_v17  ;;  %v1408_v20 = vsub.s32 32, %v1407_v13  ;;  %vm2944_vm0 = vcmp.lt.s32.totalorder %v6298_v5, 2 }
 0x2a2   : > { %v2946_v36 = vxor.u32 2147483648, %v4522_v53  ;;  %v1572_v8 = vor.u32 %v1571_v47, %v1570_v3  ;;  %v1575_v59 = vshll.u32 %v1574_v61, 23  ;;  %v1590_v40 = vadd.s32 3, %v1586_v57 }
 0x2a3   : > { %v2950_v28 = vsel %vm2948_vm11, %v2949_v56, %v4522_v53  ;;  %v3222_v7 = vadd.s32 536870912, %v3221_v63  ;;  %v1401_v30 = vor.u32 8388608, %v1400_v58  ;;  %v6381_v10 = vadd.f32 %v6372_v55, %v6017_v33 }
 0x2a4   : > { %v2947_v11 = vsel %vm2945_vm15, %v4520_v2, %v2946_v36  ;;  %v1576_v60 = vor.u32 4788187, %v1575_v59  ;;  %v1579_v45 = vcvt.s32.f32 %v1572_v8  ;;  %v1406_v54 = vshrl.u32 %v1405_v48, 5 }
 0x2a5   : > { %v2951_v9 = vsel %vm2944_vm0, %v2947_v11, %v2950_v28  ;;  %v3223_v6 = vshrl.u32 %v3222_v7, 30  ;;  %v1411_v5 = vshrl.u32 %v4657_v19, %v1408_v20  ;;  %v1414_v18 = vshrl.u32 %v4658_v21, %v1408_v20 }
 0x2a6   : > { %v2952_v24 = vsel %vm2941_vm10, nan, %v2951_v9  ;;  %v1577_v52 = vand.u32 2147483647, %v1576_v60  ;;  %v1417_v44 = vshrl.u32 %v4659_v23, %v1408_v20  ;;  %v1416_v42 = vshll.u32 %v4658_v21, %v1407_v13 }
 0x2a7   : > { %3911 = vst [vmem:[%s5140_s24 + $0xb0] sm:$0xff] %v2952_v24  ;;  %v3224_v39 = vshll.u32 %v3223_v6, 30  ;;  %v1420_v33 = vshrl.u32 %v4660_v25, %v1408_v20  ;;  %vm3163_vm1 = vcmp.lt.s32.totalorder %v6206_v51, 0  ;;  %v1410_v41 = vshll.u32 %v4656_v15, %v1407_v13 }
 0x2a8   : > { %v1580_v16 = vmul.f32 %v1579_v45, %v1577_v52  ;;  %v1413_v4 = vshll.u32 %v4657_v19, %v1407_v13  ;;  %v1419_v1 = vshll.u32 %v4659_v23, %v1407_v13  ;;  %v1423_v43 = vshrl.u32 %v4661_v32, %v1408_v20 }
 0x2a9   : > { %v6396_v50 = vand.u32 3, %v1590_v40  ;;  %v6398_v17 = vsub.s32 %v3221_v63, %v3224_v39  ;;  %v1418_v29 = vor.u32 %v1417_v44, %v1416_v42  ;;  %v1412_v58 = vor.u32 %v1411_v5, %v1410_v41  ;;  %v6419_v40 = vpop.f32.mrb[12].mxu1 }
 0x2aa   : > { %v1581_v46 = vxor.u32 2147483648, %v1580_v16  ;;  %v1415_v48 = vor.u32 %v1414_v18, %v1413_v4  ;;  %v1421_v2 = vor.u32 %v1420_v33, %v1419_v1  ;;  %v1422_v3 = vshll.u32 %v4660_v25, %v1407_v13 }
 0x2ab   : > { %v3227_v61 = vsub.s32 0, %v6398_v17  ;;  %v1409_v53 = vshrl.u32 %v4656_v15, %v1408_v20  ;;  %v1441_v56 = vshll.u32 %v1401_v30, 8  ;;  %v3247_v34 = vsub.s32 4, %v3223_v6 }
 0x2ac   : > { %v1582_v47 = vsel %vm1499_vm12, %v1581_v46, %v1580_v16  ;;  %v1424_v36 = vor.u32 %v1423_v43, %v1422_v3  ;;  %vm1428_vm2 = vcmp.lt.s32.totalorder %v1406_v54, 4  ;;  %vm6410_vm3 = vcmp.le.f32.partialorder %v3161_v0, 0.7853982 }
 0x2ad   : > { %v1585_v57 = vsel %vm6331_vm7, %v6146_v38, %v1582_v47  ;;  %v4144_v8 = vmin.u32 %v3227_v61, %v6398_v17  ;;  %vm1425_vm4 = vcmp.lt.s32.totalorder %v1406_v54, 1  ;;  %v1430_v59 = vsel %vm1428_vm2, %v1418_v29, 2102212464 }
 0x2ae   : > { %4523 = vcosq.f32 %v1585_v57  ;;  %vm1426_vm5 = vcmp.lt.s32.totalorder %v1406_v54, 2  ;;  %v1433_v63 = vsel %vm1425_vm4, %v1412_v58, %v1415_v48  ;;  %v1434_v27 = vsel %vm1428_vm2, %v1421_v2, 920167782 }
 0x2af   : > { %4525 = vsinq.f32 %v1585_v57  ;;  %v3229_v28 = vclz %v4144_v8  ;;  %vm1427_vm6 = vcmp.lt.s32.totalorder %v1406_v54, 3  ;;  %v1429_v20 = vsel %vm1425_vm4, %v1409_v53, %v1412_v58 }
 0x2b0   : > { %v1437_v11 = vsel %vm1425_vm4, %v1415_v48, %v1418_v29  ;;  %v1431_v60 = vsel %vm1427_vm6, %v1415_v48, %v1430_v59  ;;  %v1435_v7 = vsel %vm1427_vm6, %v1418_v29, %v1434_v27  ;;  %v1438_v0 = vsel %vm1428_vm2, %v1424_v36, 1326507024 }
 0x2b1   : > { %v3060_v9 = vand.u32 2139095040, %v6376_v12  ;;  %v4145_v30 = vadd.s32 4294967294, %v3229_v28  ;;  %v3248_v24 = vsel %vm3163_vm1, %v3247_v34, %v3223_v6  ;;  %v1436_v52 = vsel %vm1426_vm5, %v1433_v63, %v1435_v7 }
 0x2b2   : > { %v1439_v45 = vsel %vm1427_vm6, %v1421_v2, %v1438_v0  ;;  %v6425_v18 = vmul.u32.u64.low %v1441_v56, %v1436_v52  ;;  %v6426_v44 = vmul.u32.u64.high %v1441_v56, %v1436_v52, %v6425_v18  ;;  %v1432_v39 = vsel %vm1426_vm5, %v1429_v20, %v1431_v60 }
 0x2b3   : > { %v1440_v5 = vsel %vm1426_vm5, %v1437_v11, %v1439_v45  ;;  %v3061_v16 = vshrl.u32 %v3060_v9, 23  ;;  %vm4146_vm7 = vcmp.lt.s32.totalorder %v4145_v30, 0  ;;  %vm1592_vm8 = vcmp.lt.s32.totalorder %v6396_v50, 2 }
 0x2b4   : > { %v6430_v42 = vmul.u32.u64.low %v1441_v56, %v1440_v5  ;;  %v6431_v33 = vmul.u32.u64.high %v1441_v56, %v1440_v5, %v6430_v42  ;;  %vm1593_vm9 = vcmp.eq.s32.totalorder %v6396_v50, 0  ;;  %v3232_v6 = vsel %vm4146_vm7, 0, %v4145_v30 }
 0x2b5   : > { %v4139_v41 = vadd.s32 4294967169, %v3061_v16  ;;  %v3217_v4 = vadd.s32 %v6338_v31, %v6344_v49  ;;  %v3233_v1 = vsub.s32 32, %v3232_v6  ;;  %v3237_v43 = vsub.s32 4294967266, %v3232_v6 }
 0x2b6   : > { %v3057_v46 = vand.u32 2147483647, %v6376_v12  ;;  %v3250_v54 = vsel %vm6410_vm3, 0, %v3248_v24  ;;  %v1448_v29 = vmul.u32 %v1441_v56, %v1432_v39  ;;  %v1451_v58 = vadd.s32 1, %v6426_v44 }
 0x2b7   : > { %v3067_v48 = vadd.s32 1, %v4139_v41  ;;  %v3234_v3 = vshll.u32 %v6398_v17, %v3232_v6  ;;  %v3235_v47 = vshrl.u32 %v3217_v4, %v3233_v1  ;;  %v3238_v61 = vadd.s32 127, %v3237_v43 }
 0x2b8   : > { %v4524_v2 = vpop.eup %4523  ;;  %vm1450_vm10 = vc.u32 %v6431_v33, %v6425_v18  ;;  %vm1596_vm11 = vcmp.eq.s32.totalorder %v6396_v50, 2  ;;  %v3254_v59 = vadd.s32 3, %v3250_v54  ;;  %v3064_v17 = vand.u32 8388607, %v3057_v46 }
 0x2b9   : > { %v4526_v31 = vpop.eup %4525  ;;  %v1597_v49 = vxor.u32 2147483648, %v4524_v2  ;;  %v1452_v53 = vsel %vm1450_vm10, %v1451_v58, %v6426_v44  ;;  %vm3068_vm12 = vcmp.gt.s32.totalorder %v3067_v48, 0  ;;  %v3236_v56 = vor.u32 %v3235_v47, %v3234_v3 }
 0x2ba   : > { %v1594_v57 = vxor.u32 2147483648, %v4526_v31  ;;  %v3239_v34 = vshll.u32 %v3238_v61, 23  ;;  %v1453_v36 = vadd.s32 %v1452_v53, %v1448_v29  ;;  %v3069_v63 = vsel %vm3068_vm12, %v3067_v48, 0 }
 0x2bb   : > { %v1598_v8 = vsel %vm1596_vm11, %v1597_v49, %v4526_v31  ;;  %v1708_v11 = vand.u32 2139095040, %v6381_v10  ;;  %vm1589_vm13 = vweird.f32 %v6146_v38  ;;  %v3071_v7 = vand.u32 31, %v3069_v63 }
 0x2bc   : > { %v1595_v27 = vsel %vm1593_vm9, %v4524_v2, %v1594_v57  ;;  %v3240_v28 = vor.u32 4788187, %v3239_v34  ;;  %v1454_v20 = vadd.s32 536870912, %v1453_v36  ;;  %v3243_v30 = vcvt.s32.f32 %v3236_v56 }
 0x2bd   : > { %v1599_v60 = vsel %vm1592_vm8, %v1595_v27, %v1598_v8  ;;  %v6457_v52 = vand.u32 3, %v3254_v59  ;;  %v3065_v45 = vor.u32 8388608, %v3064_v17  ;;  %v3072_v5 = vsub.s32 32, %v3071_v7 }
 0x2be   : > { %v1600_v0 = vsel %vm1589_vm13, nan, %v1599_v60  ;;  %v3241_v9 = vand.u32 2147483647, %v3240_v28  ;;  %v6454_v24 = vshrl.u32 %v1454_v20, 30  ;;  %v1705_v44 = vand.u32 2147483647, %v6381_v10 }
 0x2bf   : > { %3898 = vst [vmem:[%s5140_s24 + $0x48] sm:$0xff] %v1600_v0  ;;  %v3074_v38 = vshll.u32 %v4656_v15, %v3071_v7  ;;  %v1709_v50 = vshrl.u32 %v1708_v11, 23  ;;  %v3075_v42 = vshrl.u32 %v4657_v19, %v3072_v5  ;;  %v3077_v6 = vshll.u32 %v4657_v19, %v3071_v7 }
 0x2c0   : > { %v3244_v16 = vmul.f32 %v3243_v30, %v3241_v9  ;;  %v1456_v39 = vshll.u32 %v6454_v24, 30  ;;  %v3078_v41 = vshrl.u32 %v4658_v21, %v3072_v5  ;;  %v3081_v4 = vshrl.u32 %v4659_v23, %v3072_v5 }
 0x2c1   : > { %v3080_v54 = vshll.u32 %v4658_v21, %v3071_v7  ;;  %v3084_v29 = vshrl.u32 %v4660_v25, %v3072_v5  ;;  %v3070_v58 = vshrl.u32 %v3069_v63, 5  ;;  %v3076_v48 = vor.u32 %v3075_v42, %v3074_v38 }
 0x2c2   : > { %v3245_v1 = vxor.u32 2147483648, %v3244_v16  ;;  %v6466_v43 = vsub.s32 %v1453_v36, %v1456_v39  ;;  %v3083_v2 = vshll.u32 %v4659_v23, %v3071_v7  ;;  %v6471_v3 = vshll.u32 %v3065_v45, 8 }
 0x2c3   : > { %v3079_v31 = vor.u32 %v3078_v41, %v3077_v6  ;;  %v3082_v49 = vor.u32 %v3081_v4, %v3080_v54  ;;  %vm1395_vm14 = vcmp.lt.s32.totalorder %v6216_v62, 0  ;;  %v3086_v56 = vshll.u32 %v4660_v25, %v3071_v7  ;;  %v6512_v54 = vpop.f32.mrb[13].mxu0 }
 0x2c4   : > { %v3246_v47 = vsel %vm3163_vm1, %v3245_v1, %v3244_v16  ;;  %v1459_v61 = vsub.s32 0, %v6466_v43  ;;  %v3085_v57 = vor.u32 %v3084_v29, %v3083_v2  ;;  %v3087_v34 = vshrl.u32 %v4661_v32, %v3072_v5 }
 0x2c5   : > { %v3249_v53 = vsel %vm6410_vm3, %v6206_v51, %v3246_v47  ;;  %v1449_v36 = vadd.s32 %v6425_v18, %v6431_v33  ;;  %v4087_v59 = vadd.s32 4294967169, %v1709_v50  ;;  %v1479_v17 = vsub.s32 4, %v6454_v24 }
 0x2c6   : > { %4527 = vcosq.f32 %v3249_v53  ;;  %v4076_v8 = vmin.u32 %v1459_v61, %v6466_v43  ;;  %v3073_v13 = vshrl.u32 %v4656_v15, %v3072_v5  ;;  %v3088_v63 = vor.u32 %v3087_v34, %v3086_v56 }
 0x2c7   : > { %4529 = vsinq.f32 %v3249_v53  ;;  %vm6489_vm15 = vcmp.le.f32.partialorder %v1393_v35, 0.7853982  ;;  %vm3089_vm0 = vcmp.lt.s32.totalorder %v3070_v58, 1  ;;  %vm3090_vm1 = vcmp.lt.s32.totalorder %v3070_v58, 2 }
 0x2c8   : > { %v1461_v28 = vclz %v4076_v8  ;;  %vm3092_vm2 = vcmp.lt.s32.totalorder %v3070_v58, 4  ;;  %vm3091_vm3 = vcmp.lt.s32.totalorder %v3070_v58, 3  ;;  %v3097_v33 = vsel %vm3089_vm0, %v3076_v48, %v3079_v31 }
 0x2c9   : > { %v3094_v18 = vsel %vm3092_vm2, %v3082_v49, 2102212464  ;;  %v3098_v20 = vsel %vm3092_vm2, %v3085_v57, 920167782  ;;  %vm3260_vm4 = vcmp.eq.s32.totalorder %v6457_v52, 2  ;;  %v3093_v60 = vsel %vm3089_vm0, %v3073_v13, %v3076_v48 }
 0x2ca   : > { %v4077_v11 = vadd.s32 4294967294, %v1461_v28  ;;  %v3099_v7 = vsel %vm3091_vm3, %v3082_v49, %v3098_v20  ;;  %v3101_v0 = vsel %vm3089_vm0, %v3079_v31, %v3082_v49  ;;  %vm3257_vm5 = vcmp.eq.s32.totalorder %v6457_v52, 0 }
 0x2cb   : > { %v3095_v35 = vsel %vm3091_vm3, %v3079_v31, %v3094_v18  ;;  %v3100_v9 = vsel %vm3090_vm1, %v3097_v33, %v3099_v7  ;;  %v3102_v30 = vsel %vm3092_vm2, %v3088_v63, 1326507024  ;;  %v1715_v45 = vadd.s32 1, %v4087_v59 }
 0x2cc   : > { %vm3256_vm6 = vcmp.lt.s32.totalorder %v6457_v52, 2  ;;  %vm4078_vm7 = vcmp.lt.s32.totalorder %v4077_v11, 0  ;;  %v3103_v5 = vsel %vm3091_vm3, %v3085_v57, %v3102_v30  ;;  %vm3253_vm8 = vweird.f32 %v6206_v51 }
 0x2cd   : > { %v6501_v16 = vmul.u32.u64.low %v6471_v3, %v3100_v9  ;;  %v6502_v39 = vmul.u32.u64.high %v6471_v3, %v3100_v9, %v6501_v16  ;;  %v1464_v38 = vsel %vm4078_vm7, 0, %v4077_v11  ;;  %v3104_v50 = vsel %vm3090_vm1, %v3101_v0, %v3103_v5 }
 0x2ce   : > { %v1712_v42 = vand.u32 8388607, %v1705_v44  ;;  %vm1716_vm9 = vcmp.gt.s32.totalorder %v1715_v45, 0  ;;  %v1465_v6 = vsub.s32 32, %v1464_v38  ;;  %v1469_v41 = vsub.s32 4294967266, %v1464_v38 }
 0x2cf   : > { %v1480_v4 = vsel %vm1395_vm14, %v1479_v17, %v6454_v24  ;;  %v1717_v1 = vsel %vm1716_vm9, %v1715_v45, 0  ;;  %v3096_v29 = vsel %vm3090_vm1, %v3093_v60, %v3095_v35  ;;  %v1466_v31 = vshll.u32 %v6466_v43, %v1464_v38 }
 0x2d0   : > { %v6516_v48 = vmul.u32.u64.low %v6471_v3, %v3104_v50  ;;  %v6517_v2 = vmul.u32.u64.high %v6471_v3, %v3104_v50, %v6516_v48  ;;  %v1719_v47 = vand.u32 31, %v1717_v1  ;;  %v4528_v61 = vpop.eup %4527  ;;  %v1467_v49 = vshrl.u32 %v1449_v36, %v1465_v6 }
 0x2d1   : > { %v1470_v53 = vadd.s32 127, %v1469_v41  ;;  %v3115_v57 = vadd.s32 1, %v6502_v39  ;;  %v4530_v56 = vpop.eup %4529  ;;  %v3261_v34 = vxor.u32 2147483648, %v4528_v61  ;;  %v1482_v24 = vsel %vm6489_vm15, 0, %v1480_v4 }
 0x2d2   : > { %v1713_v8 = vor.u32 8388608, %v1712_v42  ;;  %v1720_v58 = vsub.s32 32, %v1719_v47  ;;  %v3258_v59 = vxor.u32 2147483648, %v4530_v56  ;;  %v1468_v17 = vor.u32 %v1467_v49, %v1466_v31 }
 0x2d3   : > { %v1471_v13 = vshll.u32 %v1470_v53, 23  ;;  %v3112_v63 = vmul.u32 %v6471_v3, %v3096_v29  ;;  %v3262_v28 = vsel %vm3260_vm4, %v3261_v34, %v4530_v56  ;;  %vm3114_vm10 = vc.u32 %v6517_v2, %v6501_v16 }
 0x2d4   : > { %v6528_v43 = vshrl.u32 %v1717_v1, 5  ;;  %v1722_v36 = vshll.u32 %v4656_v15, %v1719_v47  ;;  %v3259_v18 = vsel %vm3257_vm5, %v4528_v61, %v3258_v59  ;;  %v3116_v20 = vsel %vm3114_vm10, %v3115_v57, %v6502_v39 }
 0x2d5   : > { %v1472_v33 = vor.u32 4788187, %v1471_v13  ;;  %v1725_v11 = vshll.u32 %v4657_v19, %v1719_v47  ;;  %v3263_v3 = vsel %vm3256_vm6, %v3259_v18, %v3262_v28  ;;  %v3117_v60 = vadd.s32 %v3116_v20, %v3112_v63 }
 0x2d6   : > { %v1723_v7 = vshrl.u32 %v4657_v19, %v1720_v58  ;;  %v1726_v0 = vshrl.u32 %v4658_v21, %v1720_v58  ;;  %v3264_v35 = vsel %vm3253_vm8, nan, %v3263_v3  ;;  %v1475_v30 = vcvt.s32.f32 %v1468_v17 }
 0x2d7   : > { %v1473_v9 = vand.u32 2147483647, %v1472_v33  ;;  %v1729_v45 = vshrl.u32 %v4659_v23, %v1720_v58  ;;  %3914 = vst [vmem:[%s5140_s24 + $0xc8] sm:$0xff] %v3264_v35  ;;  %v3118_v5 = vadd.s32 536870912, %v3117_v60  ;;  %v1728_v39 = vshll.u32 %v4658_v21, %v1719_v47  ;;  %v6595_v35 = vpop.f32.mrb[13].mxu1 }
 0x2d8   : > { %v1731_v38 = vshll.u32 %v4659_v23, %v1719_v47  ;;  %v1732_v52 = vshrl.u32 %v4660_v25, %v1720_v58  ;;  %v1724_v42 = vor.u32 %v1723_v7, %v1722_v36  ;;  %v1727_v6 = vor.u32 %v1726_v0, %v1725_v11 }
 0x2d9   : > { %v1476_v50 = vmul.f32 %v1475_v30, %v1473_v9  ;;  %v1735_v41 = vshrl.u32 %v4661_v32, %v1720_v58  ;;  %v3119_v4 = vshrl.u32 %v3118_v5, 30  ;;  %v1486_v29 = vadd.s32 3, %v1482_v24 }
 0x2da   : > { %v1733_v51 = vor.u32 %v1732_v52, %v1731_v38  ;;  %v1730_v48 = vor.u32 %v1729_v45, %v1728_v39  ;;  %v1734_v61 = vshll.u32 %v4660_v25, %v1719_v47  ;;  %vm1737_vm11 = vcmp.lt.s32.totalorder %v6528_v43, 1 }
 0x2db   : > { %v1477_v1 = vxor.u32 2147483648, %v1476_v50  ;;  %v3120_v31 = vshll.u32 %v3119_v4, 30  ;;  %vm1740_vm12 = vcmp.lt.s32.totalorder %v6528_v43, 4  ;;  %v6550_v49 = vshll.u32 %v1713_v8, 8 }
 0x2dc   : > { %v1736_v57 = vor.u32 %v1735_v41, %v1734_v61  ;;  %v1745_v56 = vsel %vm1737_vm11, %v1724_v42, %v1727_v6  ;;  %v1746_v34 = vsel %vm1740_vm12, %v1733_v51, 920167782  ;;  %v1721_v59 = vshrl.u32 %v4656_v15, %v1720_v58 }
 0x2dd   : > { %v1478_v53 = vsel %vm1395_vm14, %v1477_v1, %v1476_v50  ;;  %v6561_v24 = vsub.s32 %v3117_v60, %v3120_v31  ;;  %vm1739_vm13 = vcmp.lt.s32.totalorder %v6528_v43, 3  ;;  %vm1738_vm14 = vcmp.lt.s32.totalorder %v6528_v43, 2 }
 0x2de   : > { %v1481_v47 = vsel %vm6489_vm15, %v6216_v62, %v1478_v53  ;;  %v1742_v8 = vsel %vm1740_vm12, %v1730_v48, 2102212464  ;;  %v1747_v17 = vsel %vm1739_vm13, %v1730_v48, %v1746_v34  ;;  %v1749_v58 = vsel %vm1737_vm11, %v1727_v6, %v1730_v48 }
 0x2df   : > { %4531 = vcosq.f32 %v1481_v47  ;;  %v3123_v13 = vsub.s32 0, %v6561_v24  ;;  %v1748_v27 = vsel %vm1738_vm14, %v1745_v56, %v1747_v17  ;;  %v3143_v63 = vsub.s32 4, %v3119_v4 }
 0x2e0   : > { %4533 = vsinq.f32 %v1481_v47  ;;  %v1750_v28 = vsel %vm1740_vm12, %v1736_v57, 1326507024  ;;  %v6578_v36 = vmul.u32.u64.low %v6550_v49, %v1748_v27  ;;  %v6579_v18 = vmul.u32.u64.high %v6550_v49, %v1748_v27, %v6578_v36 }
 0x2e1   : > { %v1487_v33 = vand.u32 3, %v1486_v29  ;;  %v4140_v20 = vmin.u32 %v3123_v13, %v6561_v24  ;;  %v1751_v11 = vsel %vm1739_vm13, %v1733_v51, %v1750_v28  ;;  %v1741_v3 = vsel %vm1737_vm11, %v1721_v59, %v1724_v42 }
 0x2e2   : > { %v1743_v60 = vsel %vm1739_vm13, %v1727_v6, %v1742_v8  ;;  %v1752_v7 = vsel %vm1738_vm14, %v1749_v58, %v1751_v11  ;;  %v6593_v0 = vadd.f32 %v6372_v55, %v6148_v37  ;;  %vm3059_vm15 = vcmp.lt.s32.totalorder %v6376_v12, 0 }
 0x2e3   : > { %v3125_v9 = vclz %v4140_v20  ;;  %v3144_v30 = vsel %vm3059_vm15, %v3143_v63, %v3119_v4  ;;  %v6601_v45 = vmul.u32.u64.low %v6550_v49, %v1752_v7  ;;  %v6602_v5 = vmul.u32.u64.high %v6550_v49, %v1752_v7, %v6601_v45 }
 0x2e4   : > { %vm1485_vm0 = vweird.f32 %v6216_v62  ;;  %v1744_v38 = vsel %vm1738_vm14, %v1741_v3, %v1743_v60  ;;  %v3372_v37 = vand.u32 2139095040, %v6593_v0  ;;  %v6610_v52 = vadd.f32 %v6372_v55, %v6199_v26 }
 0x2e5   : > { %v4141_v39 = vadd.s32 4294967294, %v3125_v9  ;;  %vm1489_vm1 = vcmp.eq.s32.totalorder %v1487_v33, 0  ;;  %vm1492_vm2 = vcmp.eq.s32.totalorder %v1487_v33, 2  ;;  %vm6614_vm3 = vcmp.le.f32.partialorder %v3057_v46, 0.7853982 }
 0x2e6   : > { %v1763_v42 = vadd.s32 1, %v6579_v18  ;;  %v3113_v43 = vadd.s32 %v6501_v16, %v6517_v2  ;;  %v3146_v6 = vsel %vm6614_vm3, 0, %v3144_v30  ;;  %v3373_v41 = vshrl.u32 %v3372_v37, 23 }
 0x2e7   : > { %vm4142_vm4 = vcmp.lt.s32.totalorder %v4141_v39, 0  ;;  %v1760_v51 = vmul.u32 %v6550_v49, %v1744_v38  ;;  %vm1762_vm5 = vc.u32 %v6602_v5, %v6578_v36  ;;  %v3369_v46 = vand.u32 2147483647, %v6593_v0 }
 0x2e8   : > { %v3128_v4 = vsel %vm4142_vm4, 0, %v4141_v39  ;;  %v1604_v16 = vand.u32 2139095040, %v6610_v52  ;;  %v1764_v53 = vsel %vm1762_vm5, %v1763_v42, %v6579_v18  ;;  %v4151_v57 = vadd.s32 4294967169, %v3373_v41 }
 0x2e9   : > { %v4532_v26 = vpop.eup %4531  ;;  %v3129_v48 = vsub.s32 32, %v3128_v4  ;;  %v3133_v61 = vsub.s32 4294967266, %v3128_v4  ;;  %v3130_v31 = vshll.u32 %v6561_v24, %v3128_v4  ;;  %v1765_v47 = vadd.s32 %v1764_v53, %v1760_v51 }
 0x2ea   : > { %v4534_v1 = vpop.eup %4533  ;;  %v1493_v29 = vxor.u32 2147483648, %v4532_v26  ;;  %vm1488_vm6 = vcmp.lt.s32.totalorder %v1487_v33, 2  ;;  %v3150_v8 = vadd.s32 3, %v3146_v6  ;;  %v3379_v17 = vadd.s32 1, %v4151_v57 }
 0x2eb   : > { %v1490_v2 = vxor.u32 2147483648, %v4534_v1  ;;  %v3131_v56 = vshrl.u32 %v3113_v43, %v3129_v48  ;;  %v3134_v34 = vadd.s32 127, %v3133_v61  ;;  %v1766_v63 = vadd.s32 536870912, %v1765_v47 }
 0x2ec   : > { %v1494_v49 = vsel %vm1492_vm2, %v1493_v29, %v4534_v1  ;;  %v3376_v28 = vand.u32 8388607, %v3369_v46  ;;  %vm3380_vm7 = vcmp.gt.s32.totalorder %v3379_v17, 0  ;;  %v1605_v3 = vshrl.u32 %v1604_v16, 23 }
 0x2ed   : > { %v1491_v59 = vsel %vm1489_vm1, %v4532_v26, %v1490_v2  ;;  %v3132_v27 = vor.u32 %v3131_v56, %v3130_v31  ;;  %v3135_v58 = vshll.u32 %v3134_v34, 23  ;;  %v1767_v20 = vshrl.u32 %v1766_v63, 30 }
 0x2ee   : > { %v1495_v13 = vsel %vm1488_vm6, %v1491_v59, %v1494_v49  ;;  %v3381_v11 = vsel %vm3380_vm7, %v3379_v17, 0  ;;  %v6637_v33 = vand.u32 3, %v3150_v8  ;;  %vm1707_vm8 = vcmp.lt.s32.totalorder %v6381_v10, 0 }
 0x2ef   : > { %v1496_v24 = vsel %vm1485_vm0, nan, %v1495_v13  ;;  %v3136_v18 = vor.u32 4788187, %v3135_v58  ;;  %v3383_v60 = vand.u32 31, %v3381_v11  ;;  %v3139_v9 = vcvt.s32.f32 %v3132_v27 }
 0x2f0   : > { %3897 = vst [vmem:[%s5140_s24 + $0x40] sm:$0xff] %v1496_v24  ;;  %v1768_v30 = vshll.u32 %v1767_v20, 30  ;;  %v6642_v62 = vadd.f32 %v6372_v55, %v6261_v22  ;;  %v1761_v45 = vadd.s32 %v6578_v36, %v6602_v5  ;;  %v3377_v39 = vor.u32 8388608, %v3376_v28 }
 0x2f1   : > { %v3137_v7 = vand.u32 2147483647, %v3136_v18  ;;  %v3384_v38 = vsub.s32 32, %v3383_v60  ;;  %v1601_v37 = vand.u32 2147483647, %v6610_v52  ;;  %v6649_v6 = vshrl.u32 %v3381_v11, 5 }
 0x2f2   : > { %v6647_v43 = vsub.s32 %v1765_v47, %v1768_v30  ;;  %v4083_v41 = vadd.s32 4294967169, %v1605_v3  ;;  %v1791_v26 = vsub.s32 4, %v1767_v20  ;;  %v3386_v4 = vshll.u32 %v4656_v15, %v3383_v60 }
 0x2f3   : > { %v3140_v42 = vmul.f32 %v3139_v9, %v3137_v7  ;;  %v3387_v51 = vshrl.u32 %v4657_v19, %v3384_v38  ;;  %v3390_v22 = vshrl.u32 %v4658_v21, %v3384_v38  ;;  %v3389_v5 = vshll.u32 %v4657_v19, %v3383_v60 }
 0x2f4   : > { %v1771_v36 = vsub.s32 0, %v6647_v43  ;;  %v3393_v29 = vshrl.u32 %v4659_v23, %v3384_v38  ;;  %v3392_v61 = vshll.u32 %v4658_v21, %v3383_v60  ;;  %v3395_v16 = vshll.u32 %v4659_v23, %v3383_v60 }
 0x2f5   : > { %v3141_v1 = vxor.u32 2147483648, %v3140_v42  ;;  %v3388_v48 = vor.u32 %v3387_v51, %v3386_v4  ;;  %v3396_v2 = vshrl.u32 %v4660_v25, %v3384_v38  ;;  %v3391_v57 = vor.u32 %v3390_v22, %v3389_v5 }
 0x2f6   : > { %v4088_v53 = vmin.u32 %v1771_v36, %v6647_v43  ;;  %v3398_v49 = vshll.u32 %v4660_v25, %v3383_v60  ;;  %v3394_v34 = vor.u32 %v3393_v29, %v3392_v61  ;;  %v3399_v59 = vshrl.u32 %v4661_v32, %v3384_v38  ;;  %v6705_v29 = vpop.f32.mrb[14].mxu0 }
 0x2f7   : > { %v3142_v31 = vsel %vm3059_vm15, %v3141_v1, %v3140_v42  ;;  %v3397_v47 = vor.u32 %v3396_v2, %v3395_v16  ;;  %v6668_v17 = vshll.u32 %v3377_v39, 8  ;;  %v1611_v13 = vadd.s32 1, %v4083_v41 }
 0x2f8   : > { %v3145_v56 = vsel %vm6614_vm3, %v6376_v12, %v3142_v31  ;;  %v1773_v8 = vclz %v4088_v53  ;;  %vm6672_vm9 = vcmp.le.f32.partialorder %v1705_v44, 0.7853982  ;;  %v1792_v50 = vsel %vm1707_vm8, %v1791_v26, %v1767_v20 }
 0x2f9   : > { %4535 = vcosq.f32 %v3145_v56  ;;  %v3385_v58 = vshrl.u32 %v4656_v15, %v3384_v38  ;;  %v3400_v63 = vor.u32 %v3399_v59, %v3398_v49  ;;  %vm3401_vm10 = vcmp.lt.s32.totalorder %v6649_v6, 1 }
 0x2fa   : > { %4537 = vsinq.f32 %v3145_v56  ;;  %v4089_v24 = vadd.s32 4294967294, %v1773_v8  ;;  %vm3403_vm11 = vcmp.lt.s32.totalorder %v6649_v6, 3  ;;  %vm3404_vm12 = vcmp.lt.s32.totalorder %v6649_v6, 4 }
 0x2fb   : > { %v3406_v28 = vsel %vm3404_vm12, %v3394_v34, 2102212464  ;;  %v3409_v18 = vsel %vm3401_vm10, %v3388_v48, %v3391_v57  ;;  %v3410_v11 = vsel %vm3404_vm12, %v3397_v47, 920167782  ;;  %v3413_v44 = vsel %vm3401_vm10, %v3391_v57, %v3394_v34 }
 0x2fc   : > { %vm4090_vm13 = vcmp.lt.s32.totalorder %v4089_v24, 0  ;;  %vm3402_vm14 = vcmp.lt.s32.totalorder %v6649_v6, 2  ;;  %v3411_v20 = vsel %vm3403_vm11, %v3394_v34, %v3410_v11  ;;  %v3414_v3 = vsel %vm3404_vm12, %v3400_v63, 1326507024 }
 0x2fd   : > { %v1776_v60 = vsel %vm4090_vm13, 0, %v4089_v24  ;;  %v3405_v7 = vsel %vm3401_vm10, %v3385_v58, %v3388_v48  ;;  %v3412_v9 = vsel %vm3402_vm14, %v3409_v18, %v3411_v20  ;;  %v3415_v30 = vsel %vm3403_vm11, %v3397_v47, %v3414_v3 }
 0x2fe   : > { %vm3152_vm15 = vcmp.lt.s32.totalorder %v6637_v33, 2  ;;  %v1777_v39 = vsub.s32 32, %v1776_v60  ;;  %v1781_v38 = vsub.s32 4294967266, %v1776_v60  ;;  %v3407_v42 = vsel %vm3403_vm11, %v3391_v57, %v3406_v28 }
 0x2ff   : > { %v3416_v41 = vsel %vm3402_vm14, %v3413_v44, %v3415_v30  ;;  %vm3149_vm0 = vweird.f32 %v6376_v12  ;;  %v6700_v51 = vmul.u32.u64.low %v6668_v17, %v3412_v9  ;;  %v6701_v22 = vmul.u32.u64.high %v6668_v17, %v3412_v9, %v6700_v51 }
 0x300   : > { %v6696_v26 = vmul.u32.u64.low %v6668_v17, %v3416_v41  ;;  %v6697_v4 = vmul.u32.u64.high %v6668_v17, %v3416_v41, %v6696_v26  ;;  %v1778_v1 = vshll.u32 %v6647_v43, %v1776_v60  ;;  %v1779_v36 = vshrl.u32 %v1761_v45, %v1777_v39 }
 0x301   : > { %v1782_v5 = vadd.s32 127, %v1781_v38  ;;  %vm1612_vm1 = vcmp.gt.s32.totalorder %v1611_v13, 0  ;;  %vm3153_vm2 = vcmp.eq.s32.totalorder %v6637_v33, 0  ;;  %v3408_v48 = vsel %vm3402_vm14, %v3405_v7, %v3407_v42 }
 0x302   : > { %v1608_v61 = vand.u32 8388607, %v1601_v37  ;;  %v1613_v16 = vsel %vm1612_vm1, %v1611_v13, 0  ;;  %v1780_v31 = vor.u32 %v1779_v36, %v1778_v1  ;;  %v1794_v43 = vsel %vm6672_vm9, 0, %v1792_v50 }
 0x303   : > { %v4536_v2 = vpop.eup %4535  ;;  %v1783_v53 = vshll.u32 %v1782_v5, 23  ;;  %v1615_v45 = vand.u32 31, %v1613_v16  ;;  %vm3156_vm3 = vcmp.eq.s32.totalorder %v6637_v33, 2  ;;  %vm3426_vm4 = vc.u32 %v6697_v4, %v6700_v51 }
 0x304   : > { %v4538_v57 = vpop.eup %4537  ;;  %v3157_v49 = vxor.u32 2147483648, %v4536_v2  ;;  %v3427_v6 = vadd.s32 1, %v6701_v22  ;;  %v3424_v47 = vmul.u32 %v6668_v17, %v3408_v48  ;;  %v1798_v13 = vadd.s32 3, %v1794_v43 }
 0x305   : > { %v3154_v56 = vxor.u32 2147483648, %v4538_v57  ;;  %v1784_v34 = vor.u32 4788187, %v1783_v53  ;;  %v1616_v59 = vsub.s32 32, %v1615_v45  ;;  %v1609_v58 = vor.u32 8388608, %v1608_v61 }
 0x306   : > { %v3158_v8 = vsel %vm3156_vm3, %v3157_v49, %v4538_v57  ;;  %v3428_v50 = vsel %vm3426_vm4, %v3427_v6, %v6701_v22  ;;  %v1787_v28 = vcvt.s32.f32 %v1780_v31  ;;  %v1618_v44 = vshll.u32 %v4656_v15, %v1615_v45 }
 0x307   : > { %v3155_v63 = vsel %vm3153_vm2, %v4536_v2, %v3154_v56  ;;  %v1785_v24 = vand.u32 2147483647, %v1784_v34  ;;  %v3429_v18 = vadd.s32 %v3428_v50, %v3424_v47  ;;  %v1619_v17 = vshrl.u32 %v4657_v19, %v1616_v59 }
 0x308   : > { %v3159_v11 = vsel %vm3152_vm15, %v3155_v63, %v3158_v8  ;;  %v1622_v20 = vshrl.u32 %v4658_v21, %v1616_v59  ;;  %v1625_v9 = vshrl.u32 %v4659_v23, %v1616_v59  ;;  %v1614_v30 = vshrl.u32 %v1613_v16, 5 }
 0x309   : > { %v3160_v3 = vsel %vm3149_vm0, nan, %v3159_v11  ;;  %v1788_v60 = vmul.f32 %v1787_v28, %v1785_v24  ;;  %v3430_v7 = vadd.s32 536870912, %v3429_v18  ;;  %v1621_v39 = vshll.u32 %v4657_v19, %v1615_v45 }
 0x30a   : > { %3913 = vst [vmem:[%s5140_s24 + $0xc0] sm:$0xff] %v3160_v3  ;;  %v1624_v33 = vshll.u32 %v4658_v21, %v1615_v45  ;;  %v1628_v38 = vshrl.u32 %v4660_v25, %v1616_v59  ;;  %v1620_v26 = vor.u32 %v1619_v17, %v1618_v44  ;;  %v1627_v22 = vshll.u32 %v4659_v23, %v1615_v45 }
 0x30b   : > { %v1789_v42 = vxor.u32 2147483648, %v1788_v60  ;;  %v3431_v41 = vshrl.u32 %v3430_v7, 30  ;;  %vm3371_vm5 = vcmp.lt.s32.totalorder %v6593_v0, 0  ;;  %v1623_v12 = vor.u32 %v1622_v20, %v1621_v39 }
 0x30c   : > { %v1626_v1 = vor.u32 %v1625_v9, %v1624_v33  ;;  %v1630_v36 = vshll.u32 %v4660_v25, %v1615_v45  ;;  %v1631_v5 = vshrl.u32 %v4661_v32, %v1616_v59  ;;  %v6740_v61 = vand.u32 3, %v1798_v13 }
 0x30d   : > { %v1790_v48 = vsel %vm1707_vm8, %v1789_v42, %v1788_v60  ;;  %v3432_v16 = vshll.u32 %v3431_v41, 30  ;;  %v1629_v2 = vor.u32 %v1628_v38, %v1627_v22  ;;  %v1617_v53 = vshrl.u32 %v4656_v15, %v1616_v59 }
 0x30e   : > { %v1793_v31 = vsel %vm6672_vm9, %v6381_v10, %v1790_v48  ;;  %v1632_v43 = vor.u32 %v1631_v5, %v1630_v36  ;;  %v6746_v57 = vshll.u32 %v1609_v58, 8  ;;  %vm1633_vm6 = vcmp.lt.s32.totalorder %v1614_v30, 1 }
 0x30f   : > { %4539 = vcosq.f32 %v1793_v31  ;;  %v6748_v45 = vsub.s32 %v3429_v18, %v3432_v16  ;;  %vm1636_vm7 = vcmp.lt.s32.totalorder %v1614_v30, 4  ;;  %vm1634_vm8 = vcmp.lt.s32.totalorder %v1614_v30, 2 }
 0x310   : > { %4541 = vsinq.f32 %v1793_v31  ;;  %v1638_v49 = vsel %vm1636_vm7, %v1626_v1, 2102212464  ;;  %v1641_v6 = vsel %vm1633_vm6, %v1620_v26, %v1623_v12  ;;  %v3455_v34 = vsub.s32 4, %v3431_v41 }
 0x311   : > { %v3435_v56 = vsub.s32 0, %v6748_v45  ;;  %vm1635_vm10 = vcmp.lt.s32.totalorder %v1614_v30, 3  ;;  %v1642_v27 = vsel %vm1636_vm7, %v1629_v2, 920167782  ;;  %v1637_v47 = vsel %vm1633_vm6, %v1617_v53, %v1620_v26  ;;  %v6778_v30 = vpop.f32.mrb[14].mxu1 }
 0x312   : > { %v1643_v8 = vsel %vm1635_vm10, %v1626_v1, %v1642_v27  ;;  %v1645_v59 = vsel %vm1633_vm6, %v1623_v12, %v1626_v1  ;;  %v1646_v13 = vsel %vm1636_vm7, %v1632_v43, 1326507024  ;;  %v1639_v58 = vsel %vm1635_vm10, %v1623_v12, %v1638_v49 }
 0x313   : > { %v4152_v50 = vmin.u32 %v3435_v56, %v6748_v45  ;;  %v1644_v63 = vsel %vm1634_vm8, %v1641_v6, %v1643_v8  ;;  %v1647_v24 = vsel %vm1635_vm10, %v1629_v2, %v1646_v13  ;;  %v3268_v44 = vand.u32 2139095040, %v6642_v62 }
 0x314   : > { %v1648_v28 = vsel %vm1634_vm8, %v1645_v59, %v1647_v24  ;;  %v6755_v18 = vmul.u32.u64.low %v6746_v57, %v1644_v63  ;;  %v6756_v11 = vmul.u32.u64.high %v6746_v57, %v1644_v63, %v6755_v18  ;;  %v3456_v20 = vsel %vm3371_vm5, %v3455_v34, %v3431_v41 }
 0x315   : > { %v3437_v17 = vclz %v4152_v50  ;;  %v3265_v3 = vand.u32 2147483647, %v6642_v62  ;;  %v1640_v60 = vsel %vm1634_vm8, %v1637_v47, %v1639_v58  ;;  %v3269_v39 = vshrl.u32 %v3268_v44, 23 }
 0x316   : > { %v6764_v7 = vmul.u32.u64.low %v6746_v57, %v1648_v28  ;;  %v6765_v9 = vmul.u32.u64.high %v6746_v57, %v1648_v28, %v6764_v7  ;;  %vm1800_vm9 = vcmp.lt.s32.totalorder %v6740_v61, 2  ;;  %vm6770_vm11 = vcmp.le.f32.partialorder %v3369_v46, 0.7853982 }
 0x317   : > { %v4153_v38 = vadd.s32 4294967294, %v3437_v17  ;;  %v6776_v42 = vadd.f32 %v6372_v55, %v6364_v14  ;;  %vm1801_vm12 = vcmp.eq.s32.totalorder %v6740_v61, 0  ;;  %vm1804_vm13 = vcmp.eq.s32.totalorder %v6740_v61, 2 }
 0x318   : > { %v1659_v41 = vadd.s32 1, %v6756_v11  ;;  %v4147_v26 = vadd.s32 4294967169, %v3269_v39  ;;  %v3425_v46 = vadd.s32 %v6700_v51, %v6697_v4  ;;  %v3458_v12 = vsel %vm6770_vm11, 0, %v3456_v20 }
 0x319   : > { %v4540_v22 = vpop.eup %4539  ;;  %vm4154_vm14 = vcmp.lt.s32.totalorder %v4153_v38, 0  ;;  %v1656_v14 = vmul.u32 %v6746_v57, %v1640_v60  ;;  %vm1658_vm15 = vc.u32 %v6765_v9, %v6755_v18  ;;  %v3272_v5 = vand.u32 8388607, %v3265_v3 }
 0x31a   : > { %v4542_v55 = vpop.eup %4541  ;;  %v1805_v1 = vxor.u32 2147483648, %v4540_v22  ;;  %v3440_v36 = vsel %vm4154_vm14, 0, %v4153_v38  ;;  %v1916_v31 = vand.u32 2139095040, %v6776_v42  ;;  %v1660_v53 = vsel %vm1658_vm15, %v1659_v41, %v6756_v11 }
 0x31b   : > { %v1802_v48 = vxor.u32 2147483648, %v4542_v55  ;;  %v3441_v16 = vsub.s32 32, %v3440_v36  ;;  %v3445_v2 = vsub.s32 4294967266, %v3440_v36  ;;  %v3442_v51 = vshll.u32 %v6748_v45, %v3440_v36 }
 0x31c   : > { %v1806_v4 = vsel %vm1804_vm13, %v1805_v1, %v4542_v55  ;;  %v3275_v43 = vadd.s32 1, %v4147_v26  ;;  %v1661_v56 = vadd.s32 %v1660_v53, %v1656_v14  ;;  %vm1797_vm0 = vweird.f32 %v6381_v10 }
 0x31d   : > { %v1803_v57 = vsel %vm1801_vm12, %v4540_v22, %v1802_v48  ;;  %v3443_v49 = vshrl.u32 %v3425_v46, %v3441_v16  ;;  %v3446_v6 = vadd.s32 127, %v3445_v2  ;;  %v3462_v27 = vadd.s32 3, %v3458_v12 }
 0x31e   : > { %v1807_v34 = vsel %vm1800_vm9, %v1803_v57, %v1806_v4  ;;  %vm3276_vm1 = vcmp.gt.s32.totalorder %v3275_v43, 0  ;;  %v1662_v45 = vadd.s32 536870912, %v1661_v56  ;;  %v3273_v13 = vor.u32 8388608, %v3272_v5 }
 0x31f   : > { %v1808_v47 = vsel %vm1797_vm0, nan, %v1807_v34  ;;  %v3444_v8 = vor.u32 %v3443_v49, %v3442_v51  ;;  %v3447_v59 = vshll.u32 %v3446_v6, 23  ;;  %v3277_v50 = vsel %vm3276_vm1, %v3275_v43, 0 }
 0x320   : > { %3900 = vst [vmem:[%s5140_s24 + $0x58] sm:$0xff] %v1808_v47  ;;  %v1663_v63 = vshrl.u32 %v1662_v45, 30  ;;  %v1917_v24 = vshrl.u32 %v1916_v31, 23  ;;  %v3279_v28 = vand.u32 31, %v3277_v50  ;;  %v6802_v17 = vand.u32 3, %v3462_v27 }
 0x321   : > { %v3448_v58 = vor.u32 4788187, %v3447_v59  ;;  %v3451_v44 = vcvt.s32.f32 %v3444_v8  ;;  %vm1603_vm2 = vcmp.lt.s32.totalorder %v6610_v52, 0  ;;  %v6806_v61 = vadd.s32 %v6755_v18, %v6765_v9 }
 0x322   : > { %v1664_v10 = vshll.u32 %v1663_v63, 30  ;;  %v3280_v20 = vsub.s32 32, %v3279_v28  ;;  %v6808_v60 = vshll.u32 %v3273_v13, 8  ;;  %v1913_v7 = vand.u32 2147483647, %v6776_v42 }
 0x323   : > { %v3449_v11 = vand.u32 2147483647, %v3448_v58  ;;  %v6813_v41 = vshrl.u32 %v3277_v50, 5  ;;  %v4095_v26 = vadd.s32 4294967169, %v1917_v24  ;;  %v1687_v22 = vsub.s32 4, %v1663_v63 }
 0x324   : > { %v6811_v38 = vsub.s32 %v1661_v56, %v1664_v10  ;;  %v3282_v46 = vshll.u32 %v4656_v15, %v3279_v28  ;;  %v3283_v12 = vshrl.u32 %v4657_v19, %v3280_v20  ;;  %v3286_v14 = vshrl.u32 %v4658_v21, %v3280_v20  ;;  %v6860_v10 = vpop.f32.mrb[15].mxu0 }
 0x325   : > { %v3452_v39 = vmul.f32 %v3451_v44, %v3449_v11  ;;  %vm6820_vm3 = vcmp.le.f32.partialorder %v1601_v37, 0.7853982  ;;  %v3285_v1 = vshll.u32 %v4657_v19, %v3279_v28  ;;  %v3289_v36 = vshrl.u32 %v4659_v23, %v3280_v20 }
 0x326   : > { %v1667_v55 = vsub.s32 0, %v6811_v38  ;;  %v3284_v5 = vor.u32 %v3283_v12, %v3282_v46  ;;  %v3288_v48 = vshll.u32 %v4658_v21, %v3279_v28  ;;  %v3291_v16 = vshll.u32 %v4659_v23, %v3279_v28 }
 0x327   : > { %v3453_v18 = vxor.u32 2147483648, %v3452_v39  ;;  %v3292_v2 = vshrl.u32 %v4660_v25, %v3280_v20  ;;  %v3287_v4 = vor.u32 %v3286_v14, %v3285_v1  ;;  %v3294_v51 = vshll.u32 %v4660_v25, %v3279_v28 }
 0x328   : > { %v4084_v37 = vmin.u32 %v1667_v55, %v6811_v38  ;;  %v3290_v43 = vor.u32 %v3289_v36, %v3288_v48  ;;  %v3295_v49 = vshrl.u32 %v4661_v32, %v3280_v20  ;;  %vm3297_vm4 = vcmp.lt.s32.totalorder %v6813_v41, 1 }
 0x329   : > { %v3454_v31 = vsel %vm3371_vm5, %v3453_v18, %v3452_v39  ;;  %v3293_v57 = vor.u32 %v3292_v2, %v3291_v16  ;;  %v1923_v56 = vadd.s32 1, %v4095_v26  ;;  %v1688_v34 = vsel %vm1603_vm2, %v1687_v22, %v1663_v63 }
 0x32a   : > { %v3457_v53 = vsel %vm6770_vm11, %v6593_v0, %v3454_v31  ;;  %v1669_v6 = vclz %v4084_v37  ;;  %v3281_v27 = vshrl.u32 %v4656_v15, %v3280_v20  ;;  %v3296_v47 = vor.u32 %v3295_v49, %v3294_v51 }
 0x32b   : > { %4543 = vcosq.f32 %v3457_v53  ;;  %vm3299_vm5 = vcmp.lt.s32.totalorder %v6813_v41, 3  ;;  %vm3300_vm6 = vcmp.lt.s32.totalorder %v6813_v41, 4  ;;  %v3305_v33 = vsel %vm3297_vm4, %v3284_v5, %v3287_v4 }
 0x32c   : > { %4545 = vsinq.f32 %v3457_v53  ;;  %v4085_v8 = vadd.s32 4294967294, %v1669_v6  ;;  %v3302_v59 = vsel %vm3300_vm6, %v3290_v43, 2102212464  ;;  %v3306_v45 = vsel %vm3300_vm6, %v3293_v57, 920167782 }
 0x32d   : > { %v3309_v13 = vsel %vm3297_vm4, %v3287_v4, %v3290_v43  ;;  %v3310_v50 = vsel %vm3300_vm6, %v3296_v47, 1326507024  ;;  %vm3298_vm8 = vcmp.lt.s32.totalorder %v6813_v41, 2  ;;  %v3307_v58 = vsel %vm3299_vm5, %v3290_v43, %v3306_v45  ;;  %v6890_v41 = vld [vmem:[%s7556_s2] ss:$0 sm:$0xff] }
 0x32e   : > { %vm4086_vm7 = vcmp.lt.s32.totalorder %v4085_v8, 0  ;;  %v3311_v63 = vsel %vm3299_vm5, %v3293_v57, %v3310_v50  ;;  %vm3465_vm10 = vcmp.eq.s32.totalorder %v6802_v17, 0  ;;  %v1690_v28 = vsel %vm6820_vm3, 0, %v1688_v34 }
 0x32f   : > { %v1672_v24 = vsel %vm4086_vm7, 0, %v4085_v8  ;;  %v3308_v11 = vsel %vm3298_vm8, %v3305_v33, %v3307_v58  ;;  %v3312_v44 = vsel %vm3298_vm8, %v3309_v13, %v3311_v63  ;;  %vm3464_vm9 = vcmp.lt.s32.totalorder %v6802_v17, 2 }
 0x330   : > { %v1673_v20 = vsub.s32 32, %v1672_v24  ;;  %v1677_v39 = vsub.s32 4294967266, %v1672_v24  ;;  %v3301_v26 = vsel %vm3297_vm4, %v3281_v27, %v3284_v5  ;;  %v3303_v22 = vsel %vm3299_vm5, %v3287_v4, %v3302_v59 }
 0x331   : > { %vm3461_vm11 = vweird.f32 %v6593_v0  ;;  %v6869_v46 = vmul.u32.u64.low %v6808_v60, %v3312_v44  ;;  %v6870_v12 = vmul.u32.u64.high %v6808_v60, %v3312_v44, %v6869_v46  ;;  %v1674_v55 = vshll.u32 %v6811_v38, %v1672_v24 }
 0x332   : > { %v6873_v14 = vmul.u32.u64.low %v6808_v60, %v3308_v11  ;;  %v6874_v18 = vmul.u32.u64.high %v6808_v60, %v3308_v11, %v6873_v14  ;;  %v1675_v1 = vshrl.u32 %v6806_v61, %v1673_v20  ;;  %v1678_v36 = vadd.s32 127, %v1677_v39 }
 0x333   : > { %vm1924_vm12 = vcmp.gt.s32.totalorder %v1923_v56, 0  ;;  %v1694_v5 = vadd.s32 3, %v1690_v28  ;;  %v3304_v48 = vsel %vm3298_vm8, %v3301_v26, %v3303_v22  ;;  %v1920_v16 = vand.u32 8388607, %v1913_v7 }
 0x334   : > { %v1925_v2 = vsel %vm1924_vm12, %v1923_v56, 0  ;;  %vm3468_vm13 = vcmp.eq.s32.totalorder %v6802_v17, 2  ;;  %v1676_v37 = vor.u32 %v1675_v1, %v1674_v55  ;;  %v1679_v4 = vshll.u32 %v1678_v36, 23 }
 0x335   : > { %v4544_v31 = vpop.eup %4543  ;;  %v1927_v51 = vand.u32 31, %v1925_v2  ;;  %vm3322_vm14 = vc.u32 %v6870_v12, %v6873_v14  ;;  %v3323_v61 = vadd.s32 1, %v6874_v18  ;;  %v6894_v43 = vadd.f32 %v6890_v41, %v6419_v40 }
 0x336   : > { %v4546_v53 = vpop.eup %4545  ;;  %v3469_v38 = vxor.u32 2147483648, %v4544_v31  ;;  %v1680_v49 = vor.u32 4788187, %v1679_v4  ;;  %v3320_v6 = vmul.u32 %v6808_v60, %v3304_v48  ;;  %v6897_v27 = vand.u32 3, %v1694_v5 }
 0x337   : > { %v3466_v57 = vxor.u32 2147483648, %v4546_v53  ;;  %v1928_v56 = vsub.s32 32, %v1927_v51  ;;  %v3324_v47 = vsel %vm3322_vm14, %v3323_v61, %v6874_v18  ;;  %v1921_v8 = vor.u32 8388608, %v1920_v16 }
 0x338   : > { %v3470_v34 = vsel %vm3468_vm13, %v3469_v38, %v4546_v53  ;;  %v1681_v59 = vand.u32 2147483647, %v1680_v49  ;;  %v1683_v45 = vcvt.s32.f32 %v1676_v37  ;;  %v3325_v13 = vadd.s32 %v3324_v47, %v3320_v6 }
 0x339   : > { %v3467_v33 = vsel %vm3465_vm10, %v4544_v31, %v3466_v57  ;;  %v1930_v50 = vshll.u32 %v4656_v15, %v1927_v51  ;;  %v1931_v60 = vshrl.u32 %v4657_v19, %v1928_v56  ;;  %v1934_v58 = vshrl.u32 %v4658_v21, %v1928_v56 }
 0x33a   : > { %v3471_v40 = vsel %vm3464_vm9, %v3467_v33, %v3470_v34  ;;  %v1684_v24 = vmul.f32 %v1683_v45, %v1681_v59  ;;  %v3326_v28 = vadd.s32 536870912, %v3325_v13  ;;  %v1937_v11 = vshrl.u32 %v4659_v23, %v1928_v56 }
 0x33b   : > { %v3472_v63 = vsel %vm3461_vm11, nan, %v3471_v40  ;;  %v1926_v44 = vshrl.u32 %v1925_v2, 5  ;;  %v1933_v20 = vshll.u32 %v4657_v19, %v1927_v51  ;;  %v1936_v17 = vshll.u32 %v4658_v21, %v1927_v51 }
 0x33c   : > { %3916 = vst [vmem:[%s5140_s24 + $0xd8] sm:$0xff] %v3472_v63  ;;  %v1940_v39 = vshrl.u32 %v4660_v25, %v1928_v56  ;;  %v1685_v26 = vxor.u32 2147483648, %v1684_v24  ;;  %v3327_v22 = vshrl.u32 %v3326_v28, 30  ;;  %v1932_v46 = vor.u32 %v1931_v60, %v1930_v50 }
 0x33d   : > { %v1939_v18 = vshll.u32 %v4659_v23, %v1927_v51  ;;  %v1935_v55 = vor.u32 %v1934_v58, %v1933_v20  ;;  %v1938_v0 = vor.u32 %v1937_v11, %v1936_v17  ;;  %v1942_v1 = vshll.u32 %v4660_v25, %v1927_v51  ;;  %v6936_v58 = vpop.f32.mrb[15].mxu1 }
 0x33e   : > { %v1943_v36 = vshrl.u32 %v4661_v32, %v1928_v56  ;;  %v1686_v5 = vsel %vm1603_vm2, %v1685_v26, %v1684_v24  ;;  %v3328_v48 = vshll.u32 %v3327_v22, 30  ;;  %v6919_v2 = vshll.u32 %v1921_v8, 8 }
 0x33f   : > { %v1941_v16 = vor.u32 %v1940_v39, %v1939_v18  ;;  %v1689_v31 = vsel %vm6820_vm3, %v6610_v52, %v1686_v5  ;;  %v1929_v37 = vshrl.u32 %v4656_v15, %v1928_v56  ;;  %v3580_v53 = vand.u32 2139095040, %v6894_v43 }
 0x340   : > { %v1944_v4 = vor.u32 %v1943_v36, %v1942_v1  ;;  %4547 = vcosq.f32 %v1689_v31  ;;  %v6926_v51 = vsub.s32 %v3325_v13, %v3328_v48  ;;  %vm1945_vm15 = vcmp.lt.s32.totalorder %v1926_v44, 1 }
 0x341   : > { %vm1948_vm0 = vcmp.lt.s32.totalorder %v1926_v44, 4  ;;  %4549 = vsinq.f32 %v1689_v31  ;;  %vm1946_vm1 = vcmp.lt.s32.totalorder %v1926_v44, 2  ;;  %v1953_v61 = vsel %vm1945_vm15, %v1932_v46, %v1935_v55 }
 0x342   : > { %v1950_v38 = vsel %vm1948_vm0, %v1938_v0, 2102212464  ;;  %v3331_v57 = vsub.s32 0, %v6926_v51  ;;  %v3351_v49 = vsub.s32 4, %v3327_v22  ;;  %vm1947_vm2 = vcmp.lt.s32.totalorder %v1926_v44, 3 }
 0x343   : > { %v1954_v9 = vsel %vm1948_vm0, %v1941_v16, 920167782  ;;  %v1949_v6 = vsel %vm1945_vm15, %v1929_v37, %v1932_v46  ;;  %v1957_v56 = vsel %vm1945_vm15, %v1935_v55, %v1938_v0  ;;  %v1958_v47 = vsel %vm1948_vm0, %v1944_v4, 1326507024 }
 0x344   : > { %v1955_v34 = vsel %vm1947_vm2, %v1938_v0, %v1954_v9  ;;  %v4148_v8 = vmin.u32 %v3331_v57, %v6926_v51  ;;  %v1951_v33 = vsel %vm1947_vm2, %v1935_v55, %v1950_v38  ;;  %v1959_v45 = vsel %vm1947_vm2, %v1941_v16, %v1958_v47 }
 0x345   : > { %v1956_v59 = vsel %vm1946_vm1, %v1953_v61, %v1955_v34  ;;  %v1960_v13 = vsel %vm1946_vm1, %v1957_v56, %v1959_v45  ;;  %v3581_v60 = vshrl.u32 %v3580_v53, 23  ;;  %vm6940_vm3 = vcmp.le.f32.partialorder %v3265_v3, 0.7853982 }
 0x346   : > { %v6933_v40 = vmul.u32.u64.low %v6919_v2, %v1956_v59  ;;  %v6934_v50 = vmul.u32.u64.high %v6919_v2, %v1956_v59, %v6933_v40  ;;  %vm3267_vm4 = vcmp.lt.s32.totalorder %v6642_v62, 0  ;;  %v3333_v24 = vclz %v4148_v8 }
 0x347   : > { %vm1693_vm5 = vweird.f32 %v6610_v52  ;;  %v3352_v28 = vsel %vm3267_vm4, %v3351_v49, %v3327_v22  ;;  %v6949_v11 = vmul.u32.u64.low %v6919_v2, %v1960_v13  ;;  %v6950_v20 = vmul.u32.u64.high %v6919_v2, %v1960_v13, %v6949_v11 }
 0x348   : > { %v4159_v17 = vadd.s32 4294967169, %v3581_v60  ;;  %v4149_v39 = vadd.s32 4294967294, %v3333_v24  ;;  %v1952_v26 = vsel %vm1946_vm1, %v1949_v6, %v1951_v33  ;;  %v3577_v3 = vand.u32 2147483647, %v6894_v43 }
 0x349   : > { %v6956_v46 = vadd.f32 %v6890_v41, %v6512_v54  ;;  %vm1696_vm6 = vcmp.lt.s32.totalorder %v6897_v27, 2  ;;  %vm1697_vm7 = vcmp.eq.s32.totalorder %v6897_v27, 0  ;;  %v1971_v22 = vadd.s32 1, %v6934_v50 }
 0x34a   : > { %v3587_v18 = vadd.s32 1, %v4159_v17  ;;  %v4548_v55 = vpop.eup %4547  ;;  %vm1700_vm8 = vcmp.eq.s32.totalorder %v6897_v27, 2  ;;  %v3321_v44 = vadd.s32 %v6873_v14, %v6870_v12  ;;  %vm4150_vm10 = vcmp.lt.s32.totalorder %v4149_v39, 0 }
 0x34b   : > { %v3354_v0 = vsel %vm6940_vm3, 0, %v3352_v28  ;;  %v4550_v1 = vpop.eup %4549  ;;  %v1701_v54 = vxor.u32 2147483648, %v4548_v55  ;;  %v3336_v36 = vsel %vm4150_vm10, 0, %v4149_v39  ;;  %v1968_v5 = vmul.u32 %v6919_v2, %v1952_v26 }
 0x34c   : > { %vm1970_vm9 = vc.u32 %v6950_v20, %v6933_v40  ;;  %v1698_v48 = vxor.u32 2147483648, %v4550_v1  ;;  %v3337_v16 = vsub.s32 32, %v3336_v36  ;;  %v3341_v31 = vsub.s32 4294967266, %v3336_v36 }
 0x34d   : > { %v3584_v37 = vand.u32 8388607, %v3577_v3  ;;  %v1702_v4 = vsel %vm1700_vm8, %v1701_v54, %v4550_v1  ;;  %v3338_v12 = vshll.u32 %v6926_v51, %v3336_v36  ;;  %v1972_v14 = vsel %vm1970_vm9, %v1971_v22, %v6934_v50 }
 0x34e   : > { %vm3588_vm11 = vcmp.gt.s32.totalorder %v3587_v18, 0  ;;  %v1699_v53 = vsel %vm1697_vm7, %v4548_v55, %v1698_v48  ;;  %v3339_v38 = vshrl.u32 %v3321_v44, %v3337_v16  ;;  %v3342_v2 = vadd.s32 127, %v3341_v31 }
 0x34f   : > { %v1973_v61 = vadd.s32 %v1972_v14, %v1968_v5  ;;  %v1703_v57 = vsel %vm1696_vm6, %v1699_v53, %v1702_v4  ;;  %v3358_v49 = vadd.s32 3, %v3354_v0  ;;  %v3589_v9 = vsel %vm3588_vm11, %v3587_v18, 0 }
 0x350   : > { %v1809_v6 = vand.u32 2147483647, %v6956_v46  ;;  %v1704_v34 = vsel %vm1693_vm5, nan, %v1703_v57  ;;  %v3340_v51 = vor.u32 %v3339_v38, %v3338_v12  ;;  %v3343_v56 = vshll.u32 %v3342_v2, 23 }
 0x351   : > { %v1974_v47 = vadd.s32 536870912, %v1973_v61  ;;  %3899 = vst [vmem:[%s5140_s24 + $0x50] sm:$0xff] %v1704_v34  ;;  %v3585_v8 = vor.u32 8388608, %v3584_v37  ;;  %v3591_v33 = vand.u32 31, %v3589_v9  ;;  %v6982_v13 = vand.u32 3, %v3358_v49 }
 0x352   : > { %v3344_v59 = vor.u32 4788187, %v3343_v56  ;;  %v1812_v50 = vand.u32 2139095040, %v6956_v46  ;;  %v6987_v60 = vand.u32 8388607, %v1809_v6  ;;  %v3347_v24 = vcvt.s32.f32 %v3340_v51 }
 0x353   : > { %v6980_v45 = vshrl.u32 %v1974_v47, 30  ;;  %v3592_v27 = vsub.s32 32, %v3591_v33  ;;  %v6990_v28 = vadd.s32 %v6933_v40, %v6950_v20  ;;  %v6996_v22 = vshll.u32 %v3585_v8, 8 }
 0x354   : > { %v3345_v52 = vand.u32 2147483647, %v3344_v59  ;;  %v3594_v44 = vshll.u32 %v4656_v15, %v3591_v33  ;;  %v3590_v1 = vshrl.u32 %v3589_v9, 5  ;;  %v3597_v40 = vshll.u32 %v4657_v19, %v3591_v33 }
 0x355   : > { %v1976_v11 = vshll.u32 %v6980_v45, 30  ;;  %v3595_v17 = vshrl.u32 %v4657_v19, %v3592_v27  ;;  %v3598_v39 = vshrl.u32 %v4658_v21, %v3592_v27  ;;  %v3601_v26 = vshrl.u32 %v4659_v23, %v3592_v27 }
 0x356   : > { %v3348_v18 = vmul.f32 %v3347_v24, %v3345_v52  ;;  %v3604_v0 = vshrl.u32 %v4660_v25, %v3592_v27  ;;  %v3600_v20 = vshll.u32 %v4658_v21, %v3591_v33  ;;  %v1813_v54 = vshrl.u32 %v1812_v50, 23 }
 0x357   : > { %v6998_v55 = vsub.s32 %v1973_v61, %v1976_v11  ;;  %v3596_v48 = vor.u32 %v3595_v17, %v3594_v44  ;;  %v3603_v16 = vshll.u32 %v4659_v23, %v3591_v33  ;;  %v3599_v31 = vor.u32 %v3598_v39, %v3597_v40 }
 0x358   : > { %v3349_v36 = vxor.u32 2147483648, %v3348_v18  ;;  %v3602_v37 = vor.u32 %v3601_v26, %v3600_v20  ;;  %v3606_v4 = vshll.u32 %v4660_v25, %v3591_v33  ;;  %v3607_v12 = vshrl.u32 %v4661_v32, %v3592_v27 }
 0x359   : > { %v1979_v5 = vsub.s32 0, %v6998_v55  ;;  %v3605_v38 = vor.u32 %v3604_v0, %v3603_v16  ;;  %v1817_v2 = vor.u32 8388608, %v6987_v60  ;;  %v3593_v57 = vshrl.u32 %v4656_v15, %v3592_v27 }
 0x35a   : > { %v3350_v14 = vsel %vm3267_vm4, %v3349_v36, %v3348_v18  ;;  %v3608_v49 = vor.u32 %v3607_v12, %v3606_v4  ;;  %v4091_v9 = vadd.s32 4294967169, %v1813_v54  ;;  %vm3609_vm12 = vcmp.lt.s32.totalorder %v3590_v1, 1 }
 0x35b   : > { %v4096_v53 = vmin.u32 %v1979_v5, %v6998_v55  ;;  %v3353_v61 = vsel %vm6940_vm3, %v6642_v62, %v3350_v14  ;;  %vm3612_vm13 = vcmp.lt.s32.totalorder %v3590_v1, 4  ;;  %vm1915_vm14 = vcmp.lt.s32.totalorder %v6776_v42, 0 }
 0x35c   : > { %4551 = vcosq.f32 %v3353_v61  ;;  %vm3610_vm15 = vcmp.lt.s32.totalorder %v3590_v1, 2  ;;  %v3614_v51 = vsel %vm3612_vm13, %v3602_v37, 2102212464  ;;  %v3617_v56 = vsel %vm3609_vm12, %v3596_v48, %v3599_v31 }
 0x35d   : > { %v1981_v34 = vclz %v4096_v53  ;;  %4553 = vsinq.f32 %v3353_v61  ;;  %vm3611_vm0 = vcmp.lt.s32.totalorder %v3590_v1, 3  ;;  %v3618_v8 = vsel %vm3612_vm13, %v3605_v38, 920167782 }
 0x35e   : > { %v3621_v33 = vsel %vm3609_vm12, %v3599_v31, %v3602_v37  ;;  %v3613_v63 = vsel %vm3609_vm12, %v3593_v57, %v3596_v48  ;;  %v3619_v59 = vsel %vm3611_vm0, %v3602_v37, %v3618_v8  ;;  %v3622_v50 = vsel %vm3612_vm13, %v3608_v49, 1326507024 }
 0x35f   : > { %v4097_v47 = vadd.s32 4294967294, %v1981_v34  ;;  %v1819_v27 = vadd.s32 1, %v4091_v9  ;;  %v3615_v60 = vsel %vm3611_vm0, %v3599_v31, %v3614_v51  ;;  %v3620_v52 = vsel %vm3610_vm15, %v3617_v56, %v3619_v59 }
 0x360   : > { %v3623_v24 = vsel %vm3611_vm0, %v3605_v38, %v3622_v50  ;;  %v7020_v39 = vmul.u32.u64.low %v6996_v22, %v3620_v52  ;;  %v7021_v26 = vmul.u32.u64.high %v6996_v22, %v3620_v52, %v7020_v39  ;;  %v1999_v0 = vsub.s32 4, %v6980_v45 }
 0x361   : > { %vm4098_vm1 = vcmp.lt.s32.totalorder %v4097_v47, 0  ;;  %v3624_v17 = vsel %vm3610_vm15, %v3621_v33, %v3623_v24  ;;  %vm1820_vm2 = vcmp.gt.s32.totalorder %v1819_v27, 0  ;;  %vm3357_vm3 = vweird.f32 %v6642_v62 }
 0x362   : > { %v1984_v11 = vsel %vm4098_vm1, 0, %v4097_v47  ;;  %v3616_v40 = vsel %vm3610_vm15, %v3613_v63, %v3615_v60  ;;  %v7028_v20 = vmul.u32.u64.low %v6996_v22, %v3624_v17  ;;  %v7029_v54 = vmul.u32.u64.high %v6996_v22, %v3624_v17, %v7028_v20 }
 0x363   : > { %v1985_v18 = vsub.s32 32, %v1984_v11  ;;  %v1989_v44 = vsub.s32 4294967266, %v1984_v11  ;;  %v1821_v36 = vsel %vm1820_vm2, %v1819_v27, 0  ;;  %v1986_v5 = vshll.u32 %v6998_v55, %v1984_v11 }
 0x364   : > { %v1823_v31 = vand.u32 31, %v1821_v36  ;;  %vm3360_vm4 = vcmp.lt.s32.totalorder %v6982_v13, 2  ;;  %vm3361_vm5 = vcmp.eq.s32.totalorder %v6982_v13, 0  ;;  %vm7037_vm6 = vcmp.le.f32.partialorder %v1913_v7, 0.7853982 }
 0x365   : > { %v1987_v48 = vshrl.u32 %v6990_v28, %v1985_v18  ;;  %v1990_v16 = vadd.s32 127, %v1989_v44  ;;  %v3635_v37 = vadd.s32 1, %v7021_v26  ;;  %vm3364_vm7 = vcmp.eq.s32.totalorder %v6982_v13, 2 }
 0x366   : > { %v4552_v4 = vpop.eup %4551  ;;  %v2000_v28 = vsel %vm1915_vm14, %v1999_v0, %v6980_v45  ;;  %v3632_v38 = vmul.u32 %v6996_v22, %v3616_v40  ;;  %vm3634_vm8 = vc.u32 %v7029_v54, %v7020_v39  ;;  %v1824_v7 = vsub.s32 32, %v1823_v31 }
 0x367   : > { %v1988_v55 = vor.u32 %v1987_v48, %v1986_v5  ;;  %v1991_v12 = vshll.u32 %v1990_v16, 23  ;;  %v4554_v14 = vpop.eup %4553  ;;  %v3365_v53 = vxor.u32 2147483648, %v4552_v4  ;;  %v3636_v49 = vsel %vm3634_vm8, %v3635_v37, %v7021_v26 }
 0x368   : > { %v3362_v61 = vxor.u32 2147483648, %v4554_v14  ;;  %v7050_v9 = vshll.u32 %v1817_v2, 8  ;;  %v2002_v51 = vsel %vm7037_vm6, 0, %v2000_v28  ;;  %v3637_v45 = vadd.s32 %v3636_v49, %v3632_v38 }
 0x369   : > { %v1992_v57 = vor.u32 4788187, %v1991_v12  ;;  %v3366_v34 = vsel %vm3364_vm7, %v3365_v53, %v4554_v14  ;;  %v7056_v56 = vadd.f32 %v6890_v41, %v6595_v35  ;;  %v1995_v8 = vcvt.s32.f32 %v1988_v55 }
 0x36a   : > { %v3363_v22 = vsel %vm3361_vm5, %v4552_v4, %v3362_v61  ;;  %v7060_v33 = vshrl.u32 %v1821_v36, 5  ;;  %v3638_v63 = vadd.s32 536870912, %v3637_v45  ;;  %v1827_v59 = vshrl.u32 %v4657_v19, %v1824_v7 }
 0x36b   : > { %v1993_v47 = vand.u32 2147483647, %v1992_v57  ;;  %v3367_v2 = vsel %vm3360_vm4, %v3363_v22, %v3366_v34  ;;  %v1830_v50 = vshrl.u32 %v4658_v21, %v1824_v7  ;;  %v1826_v60 = vshll.u32 %v4656_v15, %v1823_v31 }
 0x36c   : > { %v3368_v27 = vsel %vm3357_vm3, nan, %v3367_v2  ;;  %v1833_v52 = vshrl.u32 %v4659_v23, %v1824_v7  ;;  %v3639_v24 = vshrl.u32 %v3638_v63, 30  ;;  %v1829_v11 = vshll.u32 %v4657_v19, %v1823_v31 }
 0x36d   : > { %v1996_v35 = vmul.f32 %v1995_v8, %v1993_v47  ;;  %3915 = vst [vmem:[%s5140_s24 + $0xd0] sm:$0xff] %v3368_v27  ;;  %v1832_v13 = vshll.u32 %v4658_v21, %v1823_v31  ;;  %v1836_v17 = vshrl.u32 %v4660_v25, %v1824_v7  ;;  %v1835_v18 = vshll.u32 %v4659_v23, %v1823_v31 }
 0x36e   : > { %v1838_v44 = vshll.u32 %v4660_v25, %v1823_v31  ;;  %v1839_v62 = vshrl.u32 %v4661_v32, %v1824_v7  ;;  %v2006_v0 = vadd.s32 3, %v2002_v51  ;;  %v3640_v40 = vshll.u32 %v3639_v24, 30 }
 0x36f   : > { %v1997_v26 = vxor.u32 2147483648, %v1996_v35  ;;  %v1828_v20 = vor.u32 %v1827_v59, %v1826_v60  ;;  %v1831_v36 = vor.u32 %v1830_v50, %v1829_v11  ;;  %v1834_v48 = vor.u32 %v1833_v52, %v1832_v13 }
 0x370   : > { %v1837_v16 = vor.u32 %v1836_v17, %v1835_v18  ;;  %v1840_v37 = vor.u32 %v1839_v62, %v1838_v44  ;;  %v7082_v55 = vsub.s32 %v3637_v45, %v3640_v40  ;;  %v1825_v31 = vshrl.u32 %v4656_v15, %v1824_v7 }
 0x371   : > { %v1998_v5 = vsel %vm1915_vm14, %v1997_v26, %v1996_v35  ;;  %v3476_v12 = vand.u32 2139095040, %v7056_v56  ;;  %vm1841_vm10 = vcmp.lt.s32.totalorder %v7060_v33, 1  ;;  %vm1842_vm9 = vcmp.lt.s32.totalorder %v7060_v33, 2 }
 0x372   : > { %v2001_v4 = vsel %vm7037_vm6, %v6776_v42, %v1998_v5  ;;  %vm1843_vm11 = vcmp.lt.s32.totalorder %v7060_v33, 3  ;;  %v3643_v28 = vsub.s32 0, %v7082_v55  ;;  %vm1844_vm12 = vcmp.lt.s32.totalorder %v7060_v33, 4 }
 0x373   : > { %4555 = vcosq.f32 %v2001_v4  ;;  %v1849_v1 = vsel %vm1841_vm10, %v1828_v20, %v1831_v36  ;;  %v1846_v14 = vsel %vm1844_vm12, %v1834_v48, 2102212464  ;;  %v1850_v53 = vsel %vm1844_vm12, %v1837_v16, 920167782 }
 0x374   : > { %4557 = vsinq.f32 %v2001_v4  ;;  %v1853_v38 = vsel %vm1841_vm10, %v1831_v36, %v1834_v48  ;;  %v1854_v7 = vsel %vm1844_vm12, %v1840_v37, 1326507024  ;;  %v4160_v61 = vmin.u32 %v3643_v28, %v7082_v55 }
 0x375   : > { %v3663_v57 = vsub.s32 4, %v3639_v24  ;;  %v1851_v49 = vsel %vm1843_vm11, %v1834_v48, %v1850_v53  ;;  %v1855_v34 = vsel %vm1843_vm11, %v1837_v16, %v1854_v7  ;;  %v2007_v51 = vand.u32 3, %v2006_v0 }
 0x376   : > { %v1852_v45 = vsel %vm1842_vm9, %v1849_v1, %v1851_v49  ;;  %v1856_v22 = vsel %vm1842_vm9, %v1853_v38, %v1855_v34  ;;  %v3477_v47 = vshrl.u32 %v3476_v12, 23  ;;  %vm3579_vm13 = vcmp.lt.s32.totalorder %v6894_v43, 0 }
 0x377   : > { %v3645_v8 = vclz %v4160_v61  ;;  %v1845_v2 = vsel %vm1841_vm10, %v1825_v31, %v1828_v20  ;;  %v1847_v63 = vsel %vm1843_vm11, %v1831_v36, %v1846_v14  ;;  %vm2005_vm14 = vweird.f32 %v6776_v42 }
 0x378   : > { %v7110_v59 = vmul.u32.u64.low %v7050_v9, %v1856_v22  ;;  %v7111_v50 = vmul.u32.u64.high %v7050_v9, %v1856_v22, %v7110_v59  ;;  %v7114_v27 = vmul.u32.u64.low %v7050_v9, %v1852_v45  ;;  %v7115_v35 = vmul.u32.u64.high %v7050_v9, %v1852_v45, %v7114_v27 }
 0x379   : > { %vm7121_vm15 = vcmp.le.f32.partialorder %v3577_v3, 0.7853982  ;;  %v4161_v52 = vadd.s32 4294967294, %v3645_v8  ;;  %v3664_v11 = vsel %vm3579_vm13, %v3663_v57, %v3639_v24  ;;  %v4155_v13 = vadd.s32 4294967169, %v3477_v47 }
 0x37a   : > { %vm2008_vm0 = vcmp.lt.s32.totalorder %v2007_v51, 2  ;;  %vm2009_vm1 = vcmp.eq.s32.totalorder %v2007_v51, 0  ;;  %vm2012_vm2 = vcmp.eq.s32.totalorder %v2007_v51, 2  ;;  %v1848_v17 = vsel %vm1842_vm9, %v1845_v2, %v1847_v63 }
 0x37b   : > { %v3633_v26 = vadd.s32 %v7020_v39, %v7029_v54  ;;  %vm4162_vm3 = vcmp.lt.s32.totalorder %v4161_v52, 0  ;;  %v3473_v3 = vand.u32 2147483647, %v7056_v56  ;;  %v3483_v18 = vadd.s32 1, %v4155_v13 }
 0x37c   : > { %v3648_v62 = vsel %vm4162_vm3, 0, %v4161_v52  ;;  %v3666_v0 = vsel %vm7121_vm15, 0, %v3664_v11  ;;  %vm1866_vm4 = vc.u32 %v7111_v50, %v7114_v27  ;;  %v1867_v24 = vadd.s32 1, %v7115_v35 }
 0x37d   : > { %v4556_v44 = vpop.eup %4555  ;;  %v3649_v20 = vsub.s32 32, %v3648_v62  ;;  %v3653_v36 = vsub.s32 4294967266, %v3648_v62  ;;  %v1864_v39 = vmul.u32 %v7050_v9, %v1848_v17  ;;  %v3650_v5 = vshll.u32 %v7082_v55, %v3648_v62 }
 0x37e   : > { %v4558_v40 = vpop.eup %4557  ;;  %v2013_v33 = vxor.u32 2147483648, %v4556_v44  ;;  %v1868_v48 = vsel %vm1866_vm4, %v1867_v24, %v7115_v35  ;;  %vm3484_vm5 = vcmp.gt.s32.totalorder %v3483_v18, 0  ;;  %v3670_v28 = vadd.s32 3, %v3666_v0 }
 0x37f   : > { %v2010_v54 = vxor.u32 2147483648, %v4558_v40  ;;  %v3651_v37 = vshrl.u32 %v3633_v26, %v3649_v20  ;;  %v3654_v4 = vadd.s32 127, %v3653_v36  ;;  %v1869_v31 = vadd.s32 %v1868_v48, %v1864_v39 }
 0x380   : > { %v2014_v16 = vsel %vm2012_vm2, %v2013_v33, %v4558_v40  ;;  %v3480_v1 = vand.u32 8388607, %v3473_v3  ;;  %v3485_v14 = vsel %vm3484_vm5, %v3483_v18, 0  ;;  %v7150_v8 = vand.u32 3, %v3670_v28 }
 0x381   : > { %v2011_v12 = vsel %vm2009_vm1, %v4556_v44, %v2010_v54  ;;  %v3652_v53 = vor.u32 %v3651_v37, %v3650_v5  ;;  %v3655_v55 = vshll.u32 %v3654_v4, 23  ;;  %v1870_v38 = vadd.s32 536870912, %v1869_v31 }
 0x382   : > { %v2015_v9 = vsel %vm2008_vm0, %v2011_v12, %v2014_v16  ;;  %v3487_v61 = vand.u32 31, %v3485_v14  ;;  %v3481_v34 = vor.u32 8388608, %v3480_v1  ;;  %v7158_v59 = vadd.f32 %v6890_v41, %v6705_v29 }
 0x383   : > { %v2016_v7 = vsel %vm2005_vm14, nan, %v2015_v9  ;;  %v3656_v57 = vor.u32 4788187, %v3655_v55  ;;  %v7148_v49 = vshrl.u32 %v1870_v38, 30  ;;  %v3659_v47 = vcvt.s32.f32 %v3652_v53 }
 0x384   : > { %3902 = vst [vmem:[%s5140_s24 + $0x68] sm:$0xff] %v2016_v7  ;;  %v3488_v45 = vsub.s32 32, %v3487_v61  ;;  %v3490_v11 = vshll.u32 %v4656_v15, %v3487_v61  ;;  %v3486_v17 = vshrl.u32 %v3485_v14, 5  ;;  %v3493_v26 = vshll.u32 %v4657_v19, %v3487_v61 }
 0x385   : > { %v3657_v22 = vand.u32 2147483647, %v3656_v57  ;;  %v1872_v51 = vshll.u32 %v7148_v49, 30  ;;  %v3496_v18 = vshll.u32 %v4658_v21, %v3487_v61  ;;  %v7166_v44 = vshll.u32 %v3481_v34, 8 }
 0x386   : > { %v3491_v2 = vshrl.u32 %v4657_v19, %v3488_v45  ;;  %v3494_v63 = vshrl.u32 %v4658_v21, %v3488_v45  ;;  %v3497_v42 = vshrl.u32 %v4659_v23, %v3488_v45  ;;  %v3500_v13 = vshrl.u32 %v4660_v25, %v3488_v45 }
 0x387   : > { %v3660_v35 = vmul.f32 %v3659_v47, %v3657_v22  ;;  %v7160_v52 = vsub.s32 %v1869_v31, %v1872_v51  ;;  %v3499_v29 = vshll.u32 %v4659_v23, %v3487_v61  ;;  %v3502_v20 = vshll.u32 %v4660_v25, %v3487_v61 }
 0x388   : > { %v3492_v24 = vor.u32 %v3491_v2, %v3490_v11  ;;  %v3495_v40 = vor.u32 %v3494_v63, %v3493_v26  ;;  %v3498_v33 = vor.u32 %v3497_v42, %v3496_v18  ;;  %v3503_v36 = vshrl.u32 %v4661_v32, %v3488_v45 }
 0x389   : > { %v3661_v62 = vxor.u32 2147483648, %v3660_v35  ;;  %v1875_v0 = vsub.s32 0, %v7160_v52  ;;  %v3501_v5 = vor.u32 %v3500_v13, %v3499_v29  ;;  %v2124_v48 = vand.u32 2139095040, %v7158_v59 }
 0x38a   : > { %v1895_v37 = vsub.s32 4, %v7148_v49  ;;  %v3489_v4 = vshrl.u32 %v4656_v15, %v3488_v45  ;;  %v3504_v31 = vor.u32 %v3503_v36, %v3502_v20  ;;  %vm1811_vm6 = vcmp.lt.s32.totalorder %v6956_v46, 0 }
 0x38b   : > { %v3662_v39 = vsel %vm3579_vm13, %v3661_v62, %v3660_v35  ;;  %v4092_v54 = vmin.u32 %v1875_v0, %v7160_v52  ;;  %vm3505_vm7 = vcmp.lt.s32.totalorder %v3486_v17, 1  ;;  %vm3508_vm8 = vcmp.lt.s32.totalorder %v3486_v17, 4 }
 0x38c   : > { %v3665_v16 = vsel %vm7121_vm15, %v6894_v43, %v3662_v39  ;;  %vm3506_vm10 = vcmp.lt.s32.totalorder %v3486_v17, 2  ;;  %v3510_v28 = vsel %vm3508_vm8, %v3498_v33, 2102212464  ;;  %v3513_v1 = vsel %vm3505_vm7, %v3492_v24, %v3495_v40 }
 0x38d   : > { %4559 = vcosq.f32 %v3665_v16  ;;  %v1877_v12 = vclz %v4092_v54  ;;  %vm3507_vm9 = vcmp.lt.s32.totalorder %v3486_v17, 3  ;;  %v3514_v9 = vsel %vm3508_vm8, %v3501_v5, 920167782 }
 0x38e   : > { %4561 = vsinq.f32 %v3665_v16  ;;  %v3517_v60 = vsel %vm3505_vm7, %v3495_v40, %v3498_v33  ;;  %vm7184_vm11 = vcmp.le.f32.partialorder %v1809_v6, 0.7853982  ;;  %v3509_v55 = vsel %vm3505_vm7, %v3489_v4, %v3492_v24 }
 0x38f   : > { %v4093_v14 = vadd.s32 4294967294, %v1877_v12  ;;  %v3515_v38 = vsel %vm3507_vm9, %v3498_v33, %v3514_v9  ;;  %v3518_v7 = vsel %vm3508_vm8, %v3504_v31, 1326507024  ;;  %v2125_v61 = vshrl.u32 %v2124_v48, 23 }
 0x390   : > { %v3511_v57 = vsel %vm3507_vm9, %v3495_v40, %v3510_v28  ;;  %v3516_v34 = vsel %vm3506_vm10, %v3513_v1, %v3515_v38  ;;  %v3519_v45 = vsel %vm3507_vm9, %v3501_v5, %v3518_v7  ;;  %vm3672_vm13 = vcmp.lt.s32.totalorder %v7150_v8, 2 }
 0x391   : > { %vm4094_vm12 = vcmp.lt.s32.totalorder %v4093_v14, 0  ;;  %v3520_v47 = vsel %vm3506_vm10, %v3517_v60, %v3519_v45  ;;  %v7191_v51 = vmul.u32.u64.low %v7166_v44, %v3516_v34  ;;  %v7192_v2 = vmul.u32.u64.high %v7166_v44, %v3516_v34, %v7191_v51 }
 0x392   : > { %v1880_v22 = vsel %vm4094_vm12, 0, %v4093_v14  ;;  %v1865_v6 = vadd.s32 %v7114_v27, %v7111_v50  ;;  %v4103_v35 = vadd.s32 4294967169, %v2125_v61  ;;  %vm3669_vm14 = vweird.f32 %v6894_v43 }
 0x393   : > { %v1881_v63 = vsub.s32 32, %v1880_v22  ;;  %v1885_v42 = vsub.s32 4294967266, %v1880_v22  ;;  %vm3673_vm15 = vcmp.eq.s32.totalorder %v7150_v8, 0  ;;  %v3512_v11 = vsel %vm3506_vm10, %v3509_v55, %v3511_v57 }
 0x394   : > { %v7202_v13 = vmul.u32.u64.low %v7166_v44, %v3520_v47  ;;  %v7203_v26 = vmul.u32.u64.high %v7166_v44, %v3520_v47, %v7202_v13  ;;  %v1882_v18 = vshll.u32 %v7160_v52, %v1880_v22  ;;  %v2131_v24 = vadd.s32 1, %v4103_v35 }
 0x395   : > { %v1883_v62 = vshrl.u32 %v1865_v6, %v1881_v63  ;;  %v1886_v0 = vadd.s32 127, %v1885_v42  ;;  %vm3676_vm0 = vcmp.eq.s32.totalorder %v7150_v8, 2  ;;  %v1896_v50 = vsel %vm1811_vm6, %v1895_v37, %v7148_v49 }
 0x396   : > { %v3531_v27 = vadd.s32 1, %v7192_v2  ;;  %v7213_v17 = vadd.f32 %v6890_v41, %v6778_v30  ;;  %v2121_v52 = vand.u32 2147483647, %v7158_v59  ;;  %vm2132_vm1 = vcmp.gt.s32.totalorder %v2131_v24, 0 }
 0x397   : > { %v4560_v29 = vpop.eup %4559  ;;  %v1884_v40 = vor.u32 %v1883_v62, %v1882_v18  ;;  %v1887_v33 = vshll.u32 %v1886_v0, 23  ;;  %v3528_v39 = vmul.u32 %v7166_v44, %v3512_v11  ;;  %vm3530_vm2 = vc.u32 %v7203_v26, %v7191_v51 }
 0x398   : > { %v4562_v20 = vpop.eup %4561  ;;  %v3677_v36 = vxor.u32 2147483648, %v4560_v29  ;;  %v2133_v49 = vsel %vm2132_vm1, %v2131_v24, 0  ;;  %v1898_v30 = vsel %vm7184_vm11, 0, %v1896_v50  ;;  %v3532_v48 = vsel %vm3530_vm2, %v3531_v27, %v7192_v2 }
 0x399   : > { %v3674_v54 = vxor.u32 2147483648, %v4562_v20  ;;  %v1888_v5 = vor.u32 4788187, %v1887_v33  ;;  %v3533_v37 = vadd.s32 %v3532_v48, %v3528_v39  ;;  %v2135_v4 = vand.u32 31, %v2133_v49 }
 0x39a   : > { %v3678_v16 = vsel %vm3676_vm0, %v3677_v36, %v4562_v20  ;;  %v7226_v44 = vadd.f32 %v6890_v41, %v6860_v10  ;;  %v1891_v28 = vcvt.s32.f32 %v1884_v40  ;;  %v2128_v1 = vand.u32 8388607, %v2121_v52 }
 0x39b   : > { %v3675_v31 = vsel %vm3673_vm15, %v4560_v29, %v3674_v54  ;;  %v1889_v12 = vand.u32 2147483647, %v1888_v5  ;;  %v1902_v9 = vadd.s32 3, %v1898_v30  ;;  %v3534_v60 = vadd.s32 536870912, %v3533_v37 }
 0x39c   : > { %v3679_v14 = vsel %vm3672_vm13, %v3675_v31, %v3678_v16  ;;  %v2136_v55 = vsub.s32 32, %v2135_v4  ;;  %v2138_v10 = vshll.u32 %v4656_v15, %v2135_v4  ;;  %v2141_v41 = vshll.u32 %v4657_v19, %v2135_v4 }
 0x39d   : > { %v3680_v38 = vsel %vm3669_vm14, nan, %v3679_v14  ;;  %v1892_v7 = vmul.f32 %v1891_v28, %v1889_v12  ;;  %v7239_v61 = vshrl.u32 %v3534_v60, 30  ;;  %v2144_v8 = vshll.u32 %v4658_v21, %v2135_v4 }
 0x39e   : > { %3918 = vst [vmem:[%s5140_s24 + $0xe8] sm:$0xff] %v3680_v38  ;;  %v2139_v57 = vshrl.u32 %v4657_v19, %v2136_v55  ;;  %v2142_v34 = vshrl.u32 %v4658_v21, %v2136_v55  ;;  %v2145_v22 = vshrl.u32 %v4659_v23, %v2136_v55  ;;  %v2147_v43 = vshll.u32 %v4659_v23, %v2135_v4 }
 0x39f   : > { %v1893_v45 = vxor.u32 2147483648, %v1892_v7  ;;  %v2148_v47 = vshrl.u32 %v4660_v25, %v2136_v55  ;;  %v3536_v2 = vshll.u32 %v7239_v61, 30  ;;  %v2134_v6 = vshrl.u32 %v2133_v49, 5 }
 0x3a0   : > { %v2140_v63 = vor.u32 %v2139_v57, %v2138_v10  ;;  %v3788_v42 = vand.u32 2139095040, %v7213_v17  ;;  %v2143_v11 = vor.u32 %v2142_v34, %v2141_v41  ;;  %v2146_v13 = vor.u32 %v2145_v22, %v2144_v8 }
 0x3a1   : > { %v1894_v35 = vsel %vm1811_vm6, %v1893_v45, %v1892_v7  ;;  %v2149_v18 = vor.u32 %v2148_v47, %v2147_v43  ;;  %v7254_v0 = vsub.s32 %v3533_v37, %v3536_v2  ;;  %v2150_v24 = vshll.u32 %v4660_v25, %v2135_v4 }
 0x3a2   : > { %v1897_v62 = vsel %vm7184_vm11, %v6956_v46, %v1894_v35  ;;  %v2151_v50 = vshrl.u32 %v4661_v32, %v2136_v55  ;;  %v7258_v27 = vand.u32 3, %v1902_v9  ;;  %v2129_v29 = vor.u32 8388608, %v2128_v1 }
 0x3a3   : > { %4563 = vcosq.f32 %v1897_v62  ;;  %v3785_v40 = vand.u32 2147483647, %v7213_v17  ;;  %vm3475_vm3 = vcmp.lt.s32.totalorder %v7056_v56, 0  ;;  %v3539_v33 = vsub.s32 0, %v7254_v0 }
 0x3a4   : > { %4565 = vsinq.f32 %v1897_v62  ;;  %v2152_v20 = vor.u32 %v2151_v50, %v2150_v24  ;;  %v3789_v53 = vshrl.u32 %v3788_v42, 23  ;;  %v2137_v36 = vshrl.u32 %v4656_v15, %v2136_v55 }
 0x3a5   : > { %vm2153_vm4 = vcmp.lt.s32.totalorder %v2134_v6, 1  ;;  %vm2155_vm5 = vcmp.lt.s32.totalorder %v2134_v6, 3  ;;  %vm2156_vm6 = vcmp.lt.s32.totalorder %v2134_v6, 4  ;;  %v4156_v39 = vmin.u32 %v3539_v33, %v7254_v0 }
 0x3a6   : > { %v2158_v49 = vsel %vm2156_vm6, %v2146_v13, 2102212464  ;;  %v2161_v54 = vsel %vm2153_vm4, %v2140_v63, %v2143_v11  ;;  %v2162_v5 = vsel %vm2156_vm6, %v2149_v18, 920167782  ;;  %v2165_v48 = vsel %vm2153_vm4, %v2143_v11, %v2146_v13 }
 0x3a7   : > { %v2163_v30 = vsel %vm2155_vm5, %v2146_v13, %v2162_v5  ;;  %v2166_v16 = vsel %vm2156_vm6, %v2152_v20, 1326507024  ;;  %v2169_v37 = vshll.u32 %v2129_v29, 8  ;;  %vm7268_vm7 = vcmp.le.f32.partialorder %v3473_v3, 0.7853982 }
 0x3a8   : > { %v3541_v31 = vclz %v4156_v39  ;;  %vm2154_vm8 = vcmp.lt.s32.totalorder %v2134_v6, 2  ;;  %v2157_v12 = vsel %vm2153_vm4, %v2137_v36, %v2140_v63  ;;  %v2159_v28 = vsel %vm2155_vm5, %v2143_v11, %v2158_v49 }
 0x3a9   : > { %v3559_v1 = vsub.s32 4, %v7239_v61  ;;  %v2164_v14 = vsel %vm2154_vm8, %v2161_v54, %v2163_v30  ;;  %v2167_v9 = vsel %vm2155_vm5, %v2149_v18, %v2166_v16  ;;  %v4167_v60 = vadd.s32 4294967169, %v3789_v53 }
 0x3aa   : > { %vm1901_vm10 = vweird.f32 %v6956_v46  ;;  %v4157_v55 = vadd.s32 4294967294, %v3541_v31  ;;  %v2168_v38 = vsel %vm2154_vm8, %v2165_v48, %v2167_v9  ;;  %vm1904_vm9 = vcmp.lt.s32.totalorder %v7258_v27, 2 }
 0x3ab   : > { %v7276_v7 = vmul.u32.u64.low %v2169_v37, %v2164_v14  ;;  %v7277_v3 = vmul.u32.u64.high %v2169_v37, %v2164_v14, %v7276_v7  ;;  %v2160_v10 = vsel %vm2154_vm8, %v2157_v12, %v2159_v28  ;;  %vm1905_vm11 = vcmp.eq.s32.totalorder %v7258_v27, 0 }
 0x3ac   : > { %v7281_v41 = vmul.u32.u64.low %v2169_v37, %v2168_v38  ;;  %v7282_v57 = vmul.u32.u64.high %v2169_v37, %v2168_v38, %v7281_v41  ;;  %vm1908_vm12 = vcmp.eq.s32.totalorder %v7258_v27, 2  ;;  %vm4158_vm13 = vcmp.lt.s32.totalorder %v4157_v55, 0 }
 0x3ad   : > { %v3795_v34 = vadd.s32 1, %v4167_v60  ;;  %v4564_v8 = vpop.eup %4563  ;;  %v3529_v45 = vadd.s32 %v7191_v51, %v7203_v26  ;;  %v3544_v22 = vsel %vm4158_vm13, 0, %v4157_v55  ;;  %v3560_v43 = vsel %vm3475_vm3, %v3559_v1, %v7239_v61 }
 0x3ae   : > { %v3792_v47 = vand.u32 8388607, %v3785_v40  ;;  %v4566_v2 = vpop.eup %4565  ;;  %v1909_v6 = vxor.u32 2147483648, %v4564_v8  ;;  %v3545_v63 = vsub.s32 32, %v3544_v22  ;;  %v3549_v42 = vsub.s32 4294967266, %v3544_v22 }
 0x3af   : > { %v2176_v35 = vmul.u32 %v2169_v37, %v2160_v10  ;;  %v1906_v11 = vxor.u32 2147483648, %v4566_v2  ;;  %v3546_v13 = vshll.u32 %v7254_v0, %v3544_v22  ;;  %vm2178_vm14 = vc.u32 %v7282_v57, %v7276_v7 }
 0x3b0   : > { %v2179_v51 = vadd.s32 1, %v7277_v3  ;;  %v1910_v26 = vsel %vm1908_vm12, %v1909_v6, %v4566_v2  ;;  %v3547_v61 = vshrl.u32 %v3529_v45, %v3545_v63  ;;  %v3550_v18 = vadd.s32 127, %v3549_v42 }
 0x3b1   : > { %vm3796_vm15 = vcmp.gt.s32.totalorder %v3795_v34, 0  ;;  %v1907_v62 = vsel %vm1905_vm11, %v4564_v8, %v1906_v11  ;;  %v3562_v24 = vsel %vm7268_vm7, 0, %v3560_v43  ;;  %v3793_v30 = vor.u32 8388608, %v3792_v47 }
 0x3b2   : > { %v2180_v0 = vsel %vm2178_vm14, %v2179_v51, %v7277_v3  ;;  %v3797_v50 = vsel %vm3796_vm15, %v3795_v34, 0  ;;  %v1911_v29 = vsel %vm1904_vm9, %v1907_v62, %v1910_v26  ;;  %v3548_v33 = vor.u32 %v3547_v61, %v3546_v13 }
 0x3b3   : > { %v3551_v20 = vshll.u32 %v3550_v18, 23  ;;  %v2181_v53 = vadd.s32 %v2180_v0, %v2176_v35  ;;  %v1912_v36 = vsel %vm1901_vm10, nan, %v1911_v29  ;;  %v3799_v39 = vand.u32 31, %v3797_v50 }
 0x3b4   : > { %3901 = vst [vmem:[%s5140_s24 + $0x60] sm:$0xff] %v1912_v36  ;;  %v3566_v5 = vadd.s32 3, %v3562_v24  ;;  %v3555_v37 = vcvt.s32.f32 %v3548_v33  ;;  %v2020_v27 = vand.u32 2139095040, %v7226_v44  ;;  %v3798_v12 = vshrl.u32 %v3797_v50, 5 }
 0x3b5   : > { %v3552_v49 = vor.u32 4788187, %v3551_v20  ;;  %v2182_v54 = vadd.s32 536870912, %v2181_v53  ;;  %v3800_v48 = vsub.s32 32, %v3799_v39  ;;  %v3808_v60 = vshll.u32 %v4658_v21, %v3799_v39 }
 0x3b6   : > { %v3802_v38 = vshll.u32 %v4656_v15, %v3799_v39  ;;  %v3805_v3 = vshll.u32 %v4657_v19, %v3799_v39  ;;  %v3811_v10 = vshll.u32 %v4659_v23, %v3799_v39  ;;  %v7322_v8 = vand.u32 3, %v3566_v5 }
 0x3b7   : > { %v3553_v16 = vand.u32 2147483647, %v3552_v49  ;;  %v7309_v31 = vshrl.u32 %v2182_v54, 30  ;;  %v3803_v28 = vshrl.u32 %v4657_v19, %v3800_v48  ;;  %v3806_v1 = vshrl.u32 %v4658_v21, %v3800_v48 }
 0x3b8   : > { %v3809_v46 = vshrl.u32 %v4659_v23, %v3800_v48  ;;  %v3812_v55 = vshrl.u32 %v4660_v25, %v3800_v48  ;;  %v3815_v41 = vshrl.u32 %v4661_v32, %v3800_v48  ;;  %v3814_v6 = vshll.u32 %v4660_v25, %v3799_v39 }
 0x3b9   : > { %v3556_v14 = vmul.f32 %v3555_v37, %v3553_v16  ;;  %v2184_v9 = vshll.u32 %v7309_v31, 30  ;;  %v3804_v43 = vor.u32 %v3803_v28, %v3802_v38  ;;  %v3807_v47 = vor.u32 %v3806_v1, %v3805_v3 }
 0x3ba   : > { %v3810_v22 = vor.u32 %v3809_v46, %v3808_v60  ;;  %v3813_v2 = vor.u32 %v3812_v55, %v3811_v10  ;;  %v3833_v35 = vshll.u32 %v3793_v30, 8  ;;  %v2021_v11 = vshrl.u32 %v2020_v27, 23 }
 0x3bb   : > { %v3557_v34 = vxor.u32 2147483648, %v3556_v14  ;;  %v7324_v45 = vsub.s32 %v2181_v53, %v2184_v9  ;;  %v3801_v51 = vshrl.u32 %v4656_v15, %v3800_v48  ;;  %v3816_v26 = vor.u32 %v3815_v41, %v3814_v6 }
 0x3bc   : > { %vm3820_vm0 = vcmp.lt.s32.totalorder %v3798_v12, 4  ;;  %vm3817_vm1 = vcmp.lt.s32.totalorder %v3798_v12, 1  ;;  %vm3819_vm2 = vcmp.lt.s32.totalorder %v3798_v12, 3  ;;  %v4099_v53 = vadd.s32 4294967169, %v2021_v11 }
 0x3bd   : > { %v3558_v63 = vsel %vm3475_vm3, %v3557_v34, %v3556_v14  ;;  %v2187_v42 = vsub.s32 0, %v7324_v45  ;;  %v3822_v18 = vsel %vm3820_vm0, %v3810_v22, 2102212464  ;;  %v3825_v62 = vsel %vm3817_vm1, %v3804_v43, %v3807_v47 }
 0x3be   : > { %v3561_v13 = vsel %vm7268_vm7, %v7056_v56, %v3558_v63  ;;  %v3826_v24 = vsel %vm3820_vm0, %v3813_v2, 920167782  ;;  %v3821_v50 = vsel %vm3817_vm1, %v3801_v51, %v3804_v43  ;;  %v3823_v29 = vsel %vm3819_vm2, %v3807_v47, %v3822_v18 }
 0x3bf   : > { %4567 = vcosq.f32 %v3561_v13  ;;  %v4104_v61 = vmin.u32 %v2187_v42, %v7324_v45  ;;  %v3829_v33 = vsel %vm3817_vm1, %v3807_v47, %v3810_v22  ;;  %vm3818_vm3 = vcmp.lt.s32.totalorder %v3798_v12, 2 }
 0x3c0   : > { %4569 = vsinq.f32 %v3561_v13  ;;  %v3827_v4 = vsel %vm3819_vm2, %v3810_v22, %v3826_v24  ;;  %v3830_v20 = vsel %vm3820_vm0, %v3816_v26, 1326507024  ;;  %v2017_v54 = vand.u32 2147483647, %v7226_v44 }
 0x3c1   : > { %v2189_v0 = vclz %v4104_v61  ;;  %v3828_v39 = vsel %vm3818_vm3, %v3825_v62, %v3827_v4  ;;  %v3831_v49 = vsel %vm3819_vm2, %v3813_v2, %v3830_v20  ;;  %v3824_v5 = vsel %vm3818_vm3, %v3821_v50, %v3823_v29 }
 0x3c2   : > { %v3832_v30 = vsel %vm3818_vm3, %v3829_v33, %v3831_v49  ;;  %v7336_v48 = vmul.u32.u64.low %v3833_v35, %v3828_v39  ;;  %v7337_v16 = vmul.u32.u64.high %v3833_v35, %v3828_v39, %v7336_v48  ;;  %v2027_v28 = vadd.s32 1, %v4099_v53 }
 0x3c3   : > { %v4105_v36 = vadd.s32 4294967294, %v2189_v0  ;;  %v7340_v37 = vmul.u32.u64.low %v3833_v35, %v3832_v30  ;;  %v7341_v27 = vmul.u32.u64.high %v3833_v35, %v3832_v30, %v7340_v37  ;;  %vm3572_vm5 = vcmp.eq.s32.totalorder %v7322_v8, 2 }
 0x3c4   : > { %vm2123_vm6 = vcmp.lt.s32.totalorder %v7158_v59, 0  ;;  %v2207_v1 = vsub.s32 4, %v7309_v31  ;;  %v2177_v46 = vadd.s32 %v7276_v7, %v7282_v57  ;;  %vm2028_vm7 = vcmp.gt.s32.totalorder %v2027_v28, 0 }
 0x3c5   : > { %vm4106_vm4 = vcmp.lt.s32.totalorder %v4105_v36, 0  ;;  %v3840_v60 = vmul.u32 %v3833_v35, %v3824_v5  ;;  %v3843_v55 = vadd.s32 1, %v7337_v16  ;;  %v2024_v38 = vand.u32 8388607, %v2017_v54 }
 0x3c6   : > { %v2192_v12 = vsel %vm4106_vm4, 0, %v4105_v36  ;;  %v2029_v3 = vsel %vm2028_vm7, %v2027_v28, 0  ;;  %vm3842_vm8 = vc.u32 %v7341_v27, %v7336_v48  ;;  %v2208_v57 = vsel %vm2123_vm6, %v2207_v1, %v7309_v31 }
 0x3c7   : > { %v2193_v14 = vsub.s32 32, %v2192_v12  ;;  %v2197_v9 = vsub.s32 4294967266, %v2192_v12  ;;  %v2194_v41 = vshll.u32 %v7324_v45, %v2192_v12  ;;  %v3844_v47 = vsel %vm3842_vm8, %v3843_v55, %v7337_v16  ;;  %v4591_v12 = vld [vmem:[%s7556_s2] ss:$0 sm:$0xff] }
 0x3c8   : > { %v2031_v2 = vand.u32 31, %v2029_v3  ;;  %v3845_v35 = vadd.s32 %v3844_v47, %v3840_v60  ;;  %vm3569_vm10 = vcmp.eq.s32.totalorder %v7322_v8, 0  ;;  %vm7363_vm9 = vcmp.le.f32.partialorder %v2121_v52, 0.7853982 }
 0x3c9   : > { %v4568_v10 = vpop.eup %4567  ;;  %v2195_v34 = vshrl.u32 %v2177_v46, %v2193_v14  ;;  %v2198_v22 = vadd.s32 127, %v2197_v9  ;;  %vm3568_vm11 = vcmp.lt.s32.totalorder %v7322_v8, 2  ;;  %vm3565_vm12 = vweird.f32 %v7056_v56 }
 0x3ca   : > { %v4570_v43 = vpop.eup %4569  ;;  %v3573_v7 = vxor.u32 2147483648, %v4568_v10  ;;  %v2032_v31 = vsub.s32 32, %v2031_v2  ;;  %v3846_v26 = vadd.s32 536870912, %v3845_v35  ;;  %v2210_v18 = vsel %vm7363_vm9, 0, %v2208_v57 }
 0x3cb   : > { %v3570_v6 = vxor.u32 2147483648, %v4570_v43  ;;  %v2196_v63 = vor.u32 %v2195_v34, %v2194_v41  ;;  %v2199_v42 = vshll.u32 %v2198_v22, 23  ;;  %v2025_v62 = vor.u32 8388608, %v2024_v38 }
 0x3cc   : > { %v3574_v45 = vsel %vm3572_vm5, %v3573_v7, %v4570_v43  ;;  %v7371_v52 = vshrl.u32 %v3846_v26, 30  ;;  %v2030_v29 = vshrl.u32 %v2029_v3, 5  ;;  %v2035_v33 = vshrl.u32 %v4657_v19, %v2032_v31 }
 0x3cd   : > { %v3571_v13 = vsel %vm3569_vm10, %v4568_v10, %v3570_v6  ;;  %v2200_v51 = vor.u32 4788187, %v2199_v42  ;;  %v2203_v50 = vcvt.s32.f32 %v2196_v63  ;;  %v2038_v8 = vshrl.u32 %v4658_v21, %v2032_v31 }
 0x3ce   : > { %v3575_v61 = vsel %vm3568_vm11, %v3571_v13, %v3574_v45  ;;  %v2041_v4 = vshrl.u32 %v4659_v23, %v2032_v31  ;;  %v3848_v56 = vshll.u32 %v7371_v52, 30  ;;  %v2040_v53 = vshll.u32 %v4658_v21, %v2031_v2 }
 0x3cf   : > { %v3576_v24 = vsel %vm3565_vm12, nan, %v3575_v61  ;;  %v2201_v0 = vand.u32 2147483647, %v2200_v51  ;;  %v2044_v36 = vshrl.u32 %v4660_v25, %v2032_v31  ;;  %v2034_v39 = vshll.u32 %v4656_v15, %v2031_v2 }
 0x3d0   : > { %3917 = vst [vmem:[%s5140_s24 + $0xe0] sm:$0xff] %v3576_v24  ;;  %v2037_v49 = vshll.u32 %v4657_v19, %v2031_v2  ;;  %v2043_v5 = vshll.u32 %v4659_v23, %v2031_v2  ;;  %v2047_v30 = vshrl.u32 %v4661_v32, %v2032_v31  ;;  %v7384_v37 = vsub.s32 %v3845_v35, %v3848_v56 }
 0x3d1   : > { %v2204_v20 = vmul.f32 %v2203_v50, %v2201_v0  ;;  %v2042_v28 = vor.u32 %v2041_v4, %v2040_v53  ;;  %v7390_v1 = vadd.f32 %v4591_v12, %v6936_v58  ;;  %v2036_v46 = vor.u32 %v2035_v33, %v2034_v39 }
 0x3d2   : > { %v2039_v14 = vor.u32 %v2038_v8, %v2037_v49  ;;  %v2045_v9 = vor.u32 %v2044_v36, %v2043_v5  ;;  %v2046_v60 = vshll.u32 %v4660_v25, %v2031_v2  ;;  %v2214_v38 = vadd.s32 3, %v2210_v18 }
 0x3d3   : > { %v2205_v16 = vxor.u32 2147483648, %v2204_v20  ;;  %v3851_v3 = vsub.s32 0, %v7384_v37  ;;  %v2065_v10 = vshll.u32 %v2025_v62, 8  ;;  %v2033_v34 = vshrl.u32 %v4656_v15, %v2032_v31 }
 0x3d4   : > { %v2048_v58 = vor.u32 %v2047_v30, %v2046_v60  ;;  %vm2052_vm13 = vcmp.lt.s32.totalorder %v2030_v29, 4  ;;  %vm2049_vm14 = vcmp.lt.s32.totalorder %v2030_v29, 1  ;;  %vm2050_vm15 = vcmp.lt.s32.totalorder %v2030_v29, 2 }
 0x3d5   : > { %v2206_v55 = vsel %vm2123_vm6, %v2205_v16, %v2204_v20  ;;  %v4168_v22 = vmin.u32 %v3851_v3, %v7384_v37  ;;  %v2054_v43 = vsel %vm2052_vm13, %v2042_v28, 2102212464  ;;  %v2057_v7 = vsel %vm2049_vm14, %v2036_v46, %v2039_v14 }
 0x3d6   : > { %v2209_v41 = vsel %vm7363_vm9, %v7158_v59, %v2206_v55  ;;  %v2058_v57 = vsel %vm2052_vm13, %v2045_v9, 920167782  ;;  %vm2051_vm0 = vcmp.lt.s32.totalorder %v2030_v29, 3  ;;  %v2053_v2 = vsel %vm2049_vm14, %v2033_v34, %v2036_v46 }
 0x3d7   : > { %4571 = vcosq.f32 %v2209_v41  ;;  %v3853_v47 = vclz %v4168_v22  ;;  %v2061_v6 = vsel %vm2049_vm14, %v2039_v14, %v2042_v28  ;;  %v2055_v63 = vsel %vm2051_vm0, %v2039_v14, %v2054_v43 }
 0x3d8   : > { %4573 = vsinq.f32 %v2209_v41  ;;  %v2059_v42 = vsel %vm2051_vm0, %v2042_v28, %v2058_v57  ;;  %v2062_v35 = vsel %vm2052_vm13, %v2048_v58, 1326507024  ;;  %v3684_v45 = vand.u32 2139095040, %v7390_v1 }
 0x3d9   : > { %v2215_v11 = vand.u32 3, %v2214_v38  ;;  %v4169_v31 = vadd.s32 4294967294, %v3853_v47  ;;  %v2060_v13 = vsel %vm2050_vm15, %v2057_v7, %v2059_v42  ;;  %v2063_v51 = vsel %vm2051_vm0, %v2045_v9, %v2062_v35 }
 0x3da   : > { %v2064_v26 = vsel %vm2050_vm15, %v2061_v6, %v2063_v51  ;;  %v7404_v61 = vmul.u32.u64.low %v2065_v10, %v2060_v13  ;;  %v7405_v18 = vmul.u32.u64.high %v2065_v10, %v2060_v13, %v7404_v61  ;;  %v3685_v62 = vshrl.u32 %v3684_v45, 23 }
 0x3db   : > { %vm4170_vm1 = vcmp.lt.s32.totalorder %v4169_v31, 0  ;;  %v2056_v24 = vsel %vm2050_vm15, %v2053_v2, %v2055_v63  ;;  %v7409_v0 = vmul.u32.u64.low %v2065_v10, %v2064_v26  ;;  %v7410_v50 = vmul.u32.u64.high %v2065_v10, %v2064_v26, %v7409_v0 }
 0x3dc   : > { %v3856_v33 = vsel %vm4170_vm1, 0, %v4169_v31  ;;  %v4163_v8 = vadd.s32 4294967169, %v3685_v62  ;;  %vm3787_vm2 = vcmp.lt.s32.totalorder %v7213_v17, 0  ;;  %v3841_v4 = vadd.s32 %v7336_v48, %v7341_v27 }
 0x3dd   : > { %v3857_v20 = vsub.s32 32, %v3856_v33  ;;  %v3861_v56 = vsub.s32 4294967266, %v3856_v33  ;;  %vm2220_vm3 = vcmp.eq.s32.totalorder %v2215_v11, 2  ;;  %v2072_v53 = vmul.u32 %v2065_v10, %v2056_v24 }
 0x3de   : > { %v2075_v36 = vadd.s32 1, %v7405_v18  ;;  %v3691_v39 = vadd.s32 1, %v4163_v8  ;;  %v3858_v29 = vshll.u32 %v7384_v37, %v3856_v33  ;;  %vm2074_vm4 = vc.u32 %v7410_v50, %v7404_v61 }
 0x3df   : > { %v3859_v5 = vshrl.u32 %v3841_v4, %v3857_v20  ;;  %v3862_v30 = vadd.s32 127, %v3861_v56  ;;  %v3871_v12 = vsub.s32 4, %v7371_v52  ;;  %vm2217_vm6 = vcmp.eq.s32.totalorder %v2215_v11, 0 }
 0x3e0   : > { %v2076_v48 = vsel %vm2074_vm4, %v2075_v36, %v7405_v18  ;;  %vm3692_vm5 = vcmp.gt.s32.totalorder %v3691_v39, 0  ;;  %v3681_v60 = vand.u32 2147483647, %v7390_v1  ;;  %vm2216_vm7 = vcmp.lt.s32.totalorder %v2215_v11, 2 }
 0x3e1   : > { %v4572_v49 = vpop.eup %4571  ;;  %v3860_v46 = vor.u32 %v3859_v5, %v3858_v29  ;;  %v3863_v14 = vshll.u32 %v3862_v30, 23  ;;  %v2077_v9 = vadd.s32 %v2076_v48, %v2072_v53  ;;  %v3693_v55 = vsel %vm3692_vm5, %v3691_v39, 0 }
 0x3e2   : > { %v4574_v16 = vpop.eup %4573  ;;  %v2221_v28 = vxor.u32 2147483648, %v4572_v49  ;;  %vm2213_vm8 = vweird.f32 %v7158_v59  ;;  %v3872_v34 = vsel %vm3787_vm2, %v3871_v12, %v7371_v52  ;;  %v3695_v58 = vand.u32 31, %v3693_v55 }
 0x3e3   : > { %v2218_v27 = vxor.u32 2147483648, %v4574_v16  ;;  %v3864_v3 = vor.u32 4788187, %v3863_v14  ;;  %v2078_v10 = vadd.s32 536870912, %v2077_v9  ;;  %v3867_v7 = vcvt.s32.f32 %v3860_v46 }
 0x3e4   : > { %v2222_v37 = vsel %vm2220_vm3, %v2221_v28, %v4574_v16  ;;  %vm7432_vm10 = vcmp.le.f32.partialorder %v3785_v40, 0.7853982  ;;  %v3688_v59 = vand.u32 8388607, %v3681_v60  ;;  %v3696_v2 = vsub.s32 32, %v3695_v58 }
 0x3e5   : > { %v2219_v38 = vsel %vm2217_vm6, %v4572_v49, %v2218_v27  ;;  %v3865_v43 = vand.u32 2147483647, %v3864_v3  ;;  %v7427_v57 = vshrl.u32 %v2078_v10, 30  ;;  %v3874_v52 = vsel %vm7432_vm10, 0, %v3872_v34 }
 0x3e6   : > { %v2223_v41 = vsel %vm2216_vm7, %v2219_v38, %v2222_v37  ;;  %v3698_v42 = vshll.u32 %v4656_v15, %v3695_v58  ;;  %v3699_v35 = vshrl.u32 %v4657_v19, %v3696_v2  ;;  %v3701_v45 = vshll.u32 %v4657_v19, %v3695_v58 }
 0x3e7   : > { %v2224_v22 = vsel %vm2213_vm8, nan, %v2223_v41  ;;  %v3868_v6 = vmul.f32 %v3867_v7, %v3865_v43  ;;  %v2080_v63 = vshll.u32 %v7427_v57, 30  ;;  %v3702_v40 = vshrl.u32 %v4658_v21, %v3696_v2 }
 0x3e8   : > { %3904 = vst [vmem:[%s5140_s24 + $0x78] sm:$0xff] %v2224_v22  ;;  %v3705_v11 = vshrl.u32 %v4659_v23, %v3696_v2  ;;  %v3704_v51 = vshll.u32 %v4658_v21, %v3695_v58  ;;  %v3708_v26 = vshrl.u32 %v4660_v25, %v3696_v2  ;;  %v3689_v18 = vor.u32 8388608, %v3688_v59 }
 0x3e9   : > { %v3869_v31 = vxor.u32 2147483648, %v3868_v6  ;;  %v2081_v13 = vsub.s32 %v2077_v9, %v2080_v63  ;;  %v3694_v62 = vshrl.u32 %v3693_v55, 5  ;;  %v3700_v24 = vor.u32 %v3699_v35, %v3698_v42 }
 0x3ea   : > { %v3707_v0 = vshll.u32 %v4659_v23, %v3695_v58  ;;  %v3703_v19 = vor.u32 %v3702_v40, %v3701_v45  ;;  %v3706_v4 = vor.u32 %v3705_v11, %v3704_v51  ;;  %v3710_v21 = vshll.u32 %v4660_v25, %v3695_v58 }
 0x3eb   : > { %v3870_v33 = vsel %vm3787_vm2, %v3869_v31, %v3868_v6  ;;  %v2083_v8 = vsub.s32 0, %v2081_v13  ;;  %v3711_v53 = vshrl.u32 %v4661_v32, %v3696_v2  ;;  %v3878_v39 = vadd.s32 3, %v3874_v52 }
 0x3ec   : > { %v3873_v20 = vsel %vm7432_vm10, %v7213_v17, %v3870_v33  ;;  %v3709_v56 = vor.u32 %v3708_v26, %v3707_v0  ;;  %v3729_v49 = vshll.u32 %v3689_v18, 8  ;;  %v3697_v5 = vshrl.u32 %v4656_v15, %v3696_v2 }
 0x3ed   : > { %4575 = vcosq.f32 %v3873_v20  ;;  %v4100_v36 = vmin.u32 %v2083_v8, %v2081_v13  ;;  %v3712_v23 = vor.u32 %v3711_v53, %v3710_v21  ;;  %vm3713_vm9 = vcmp.lt.s32.totalorder %v3694_v62, 1 }
 0x3ee   : > { %4577 = vsinq.f32 %v3873_v20  ;;  %vm3716_vm11 = vcmp.lt.s32.totalorder %v3694_v62, 4  ;;  %vm3715_vm12 = vcmp.lt.s32.totalorder %v3694_v62, 3  ;;  %v3721_v16 = vsel %vm3713_vm9, %v3700_v24, %v3703_v19 }
 0x3ef   : > { %v2085_v29 = vclz %v4100_v36  ;;  %v3718_v30 = vsel %vm3716_vm11, %v3706_v4, 2102212464  ;;  %v3722_v28 = vsel %vm3716_vm11, %v3709_v56, 920167782  ;;  %vm3714_vm13 = vcmp.lt.s32.totalorder %v3694_v62, 2 }
 0x3f0   : > { %v3723_v25 = vsel %vm3715_vm12, %v3706_v4, %v3722_v28  ;;  %v3725_v48 = vsel %vm3713_vm9, %v3703_v19, %v3706_v4  ;;  %v3717_v32 = vsel %vm3713_vm9, %v3697_v5, %v3700_v24  ;;  %v3719_v27 = vsel %vm3715_vm12, %v3703_v19, %v3718_v30 }
 0x3f1   : > { %v4101_v12 = vadd.s32 4294967294, %v2085_v29  ;;  %v3724_v46 = vsel %vm3714_vm13, %v3721_v16, %v3723_v25  ;;  %v3726_v14 = vsel %vm3716_vm11, %v3712_v23, 1326507024  ;;  %v3879_v3 = vand.u32 3, %v3878_v39 }
 0x3f2   : > { %v3727_v9 = vsel %vm3715_vm12, %v3709_v56, %v3726_v14  ;;  %v7458_v37 = vmul.u32.u64.low %v3729_v49, %v3724_v46  ;;  %v7459_v55 = vmul.u32.u64.high %v3729_v49, %v3724_v46, %v7458_v37  ;;  %v2073_v10 = vadd.s32 %v7404_v61, %v7410_v50 }
 0x3f3   : > { %vm4102_vm14 = vcmp.lt.s32.totalorder %v4101_v12, 0  ;;  %v3728_v38 = vsel %vm3714_vm13, %v3725_v48, %v3727_v9  ;;  %v3720_v58 = vsel %vm3714_vm13, %v3717_v32, %v3719_v27  ;;  %vm3884_vm15 = vcmp.eq.s32.totalorder %v3879_v3, 2 }
 0x3f4   : > { %v2088_v15 = vsel %vm4102_vm14, 0, %v4101_v12  ;;  %v7466_v22 = vmul.u32.u64.low %v3729_v49, %v3728_v38  ;;  %v7467_v43 = vmul.u32.u64.high %v3729_v49, %v3728_v38, %v7466_v22  ;;  %v3739_v6 = vadd.s32 1, %v7459_v55 }
 0x3f5   : > { %v2089_v41 = vsub.s32 32, %v2088_v15  ;;  %v2093_v34 = vsub.s32 4294967266, %v2088_v15  ;;  %v2090_v47 = vshll.u32 %v2081_v13, %v2088_v15  ;;  %vm3881_vm0 = vcmp.eq.s32.totalorder %v3879_v3, 0 }
 0x3f6   : > { %v3736_v45 = vmul.u32 %v3729_v49, %v3720_v58  ;;  %vm3738_vm1 = vc.u32 %v7467_v43, %v7458_v37  ;;  %vm3880_vm2 = vcmp.lt.s32.totalorder %v3879_v3, 2  ;;  %vm3877_vm3 = vweird.f32 %v7213_v17 }
 0x3f7   : > { %v4576_v7 = vpop.eup %4575  ;;  %v2091_v59 = vshrl.u32 %v2073_v10, %v2089_v41  ;;  %v2094_v2 = vadd.s32 127, %v2093_v34  ;;  %v3740_v31 = vsel %vm3738_vm1, %v3739_v6, %v7459_v55  ;;  %v2103_v33 = vsub.s32 4, %v7427_v57 }
 0x3f8   : > { %v4578_v52 = vpop.eup %4577  ;;  %v3885_v63 = vxor.u32 2147483648, %v4576_v7  ;;  %v3741_v51 = vadd.s32 %v3740_v31, %v3736_v45  ;;  %vm2019_vm4 = vcmp.lt.s32.totalorder %v7226_v44, 0  ;;  %vm2018_vm5 = vcmp.le.f32.partialorder %v2017_v54, 0.7853982 }
 0x3f9   : > { %v3882_v42 = vxor.u32 2147483648, %v4578_v52  ;;  %v2092_v35 = vor.u32 %v2091_v59, %v2090_v47  ;;  %v2095_v61 = vshll.u32 %v2094_v2, 23  ;;  %v2104_v17 = vsel %vm2019_vm4, %v2103_v33, %v7427_v57 }
 0x3fa   : > { %v3886_v50 = vsel %vm3884_vm15, %v3885_v63, %v4578_v52  ;;  %v3742_v24 = vadd.s32 536870912, %v3741_v51  ;;  %v2106_v53 = vsel %vm2018_vm5, 0, %v2104_v17  ;;  %v3737_v57 = vadd.s32 %v7458_v37, %v7467_v43 }
 0x3fb   : > { %v3883_v40 = vsel %vm3881_vm0, %v4576_v7, %v3882_v42  ;;  %v2096_v11 = vor.u32 4788187, %v2095_v61  ;;  %v2099_v62 = vcvt.s32.f32 %v2092_v35  ;;  %v2110_v23 = vadd.s32 3, %v2106_v53 }
 0x3fc   : > { %v3887_v13 = vsel %vm3880_vm2, %v3883_v40, %v3886_v50  ;;  %v3743_v8 = vshrl.u32 %v3742_v24, 30  ;;  %vm2109_vm9 = vweird.f32 %v7226_v44  ;;  %vm3683_vm11 = vcmp.lt.s32.totalorder %v7390_v1, 0 }
 0x3fd   : > { %v3888_v26 = vsel %vm3877_vm3, nan, %v3887_v13  ;;  %v2097_v18 = vand.u32 2147483647, %v2096_v11  ;;  %v2111_v5 = vand.u32 3, %v2110_v23  ;;  %vm3682_vm12 = vcmp.le.f32.partialorder %v3681_v60, 0.7853982 }
 0x3fe   : > { %3920 = vst [vmem:[%s5140_s24 + $0xf8] sm:$0xff] %v3888_v26  ;;  %v3744_v4 = vshll.u32 %v3743_v8, 30  ;;  %v3767_v58 = vsub.s32 4, %v3743_v8  ;;  %vm3773_vm0 = vweird.f32 %v7390_v1 }
 0x3ff   : > { %v2100_v0 = vmul.f32 %v2099_v62, %v2097_v18  ;;  %vm2113_vm7 = vcmp.eq.s32.totalorder %v2111_v5, 0  ;;  %vm2116_vm8 = vcmp.eq.s32.totalorder %v2111_v5, 2  ;;  %vm2112_vm10 = vcmp.lt.s32.totalorder %v2111_v5, 2 }
 0x400   : > { %v3745_v21 = vsub.s32 %v3741_v51, %v3744_v4  ;;  %v3768_v7 = vsel %vm3683_vm11, %v3767_v58, %v3743_v8 }
 0x401   : > { %v2101_v19 = vxor.u32 2147483648, %v2100_v0  ;;  %v3770_v47 = vsel %vm3682_vm12, 0, %v3768_v7 }
 0x402   : > { %v3747_v36 = vsub.s32 0, %v3745_v21  ;;  %v3774_v59 = vadd.s32 3, %v3770_v47 }
 0x403   : > { %v2102_v20 = vsel %vm2019_vm4, %v2101_v19, %v2100_v0 }
 0x404   : > { %v2105_v56 = vsel %vm2018_vm5, %v7226_v44, %v2102_v20  ;;  %v4164_v39 = vmin.u32 %v3747_v36, %v3745_v21  ;;  %v3775_v2 = vand.u32 3, %v3774_v59 }
 0x405   : > { %4579 = vcosq.f32 %v2105_v56 }
 0x406   : > { %4581 = vsinq.f32 %v2105_v56  ;;  %v3749_v49 = vclz %v4164_v39  ;;  %vm3780_vm13 = vcmp.eq.s32.totalorder %v3775_v2, 2  ;;  %vm3777_vm14 = vcmp.eq.s32.totalorder %v3775_v2, 0 }
 0x407   : > { %vm3776_vm15 = vcmp.lt.s32.totalorder %v3775_v2, 2 }
 0x408   : > { %v4165_v29 = vadd.s32 4294967294, %v3749_v49 }
 0x40a   : > { %vm4166_vm6 = vcmp.lt.s32.totalorder %v4165_v29, 0 }
 0x40b   : > { %v3752_v16 = vsel %vm4166_vm6, 0, %v4165_v29 }
 0x40c   : > { %v3753_v12 = vsub.s32 32, %v3752_v16  ;;  %v3757_v25 = vsub.s32 4294967266, %v3752_v16  ;;  %v3754_v27 = vshll.u32 %v3745_v21, %v3752_v16 }
 0x40e   : > { %v3755_v46 = vshrl.u32 %v3737_v57, %v3753_v12  ;;  %v3758_v14 = vadd.s32 127, %v3757_v25 }
 0x40f   : > { %v4580_v30 = vpop.eup %4579 }
 0x410   : > { %v4582_v28 = vpop.eup %4581  ;;  %v2117_v54 = vxor.u32 2147483648, %v4580_v30  ;;  %v3756_v15 = vor.u32 %v3755_v46, %v3754_v27  ;;  %v3759_v38 = vshll.u32 %v3758_v14, 23 }
 0x411   : > { %v2114_v48 = vxor.u32 2147483648, %v4582_v28 }
 0x412   : > { %v2118_v32 = vsel %vm2116_vm8, %v2117_v54, %v4582_v28  ;;  %v3760_v37 = vor.u32 4788187, %v3759_v38  ;;  %v3763_v41 = vcvt.s32.f32 %v3756_v15 }
 0x413   : > { %v2115_v9 = vsel %vm2113_vm7, %v4580_v30, %v2114_v48 }
 0x414   : > { %v2119_v55 = vsel %vm2112_vm10, %v2115_v9, %v2118_v32  ;;  %v3761_v10 = vand.u32 2147483647, %v3760_v37 }
 0x415   : > { %v2120_v3 = vsel %vm2109_vm9, nan, %v2119_v55 }
 0x416   : > { %3903 = vst [vmem:[%s5140_s24 + $0x70] sm:$0xff] %v2120_v3  ;;  %v3764_v34 = vmul.f32 %v3763_v41, %v3761_v10 }
 0x418   : > { %v3765_v22 = vxor.u32 2147483648, %v3764_v34 }
 0x41a   : > { %v3766_v43 = vsel %vm3683_vm11, %v3765_v22, %v3764_v34 }
 0x41b   : > { %v3769_v44 = vsel %vm3682_vm12, %v7390_v1, %v3766_v43 }
 0x41c   : > { %4583 = vcosq.f32 %v3769_v44 }
 0x41d   : > { %4585 = vsinq.f32 %v3769_v44 }
 0x426   : > { %v4584_v6 = vpop.eup %4583 }
 0x427   : > { %v4586_v52 = vpop.eup %4585  ;;  %v3781_v63 = vxor.u32 2147483648, %v4584_v6  ;;  %3928 = sbr.rel (!%p4723_p5) target bundleno = 1098 (0x44a), region = 36 }
 0x428   : > { %v3778_v42 = vxor.u32 2147483648, %v4586_v52 }
 0x429   : > { %v3782_v35 = vsel %vm3780_vm13, %v3781_v63, %v4586_v52 }
 0x42a   : > { %v3779_v60 = vsel %vm3777_vm14, %v4584_v6, %v3778_v42 }
 0x42b   : > { %v3783_v61 = vsel %vm3776_vm15, %v3779_v60, %v3782_v35 }
 0x42c   : > { %v3784_v50 = vsel %vm3773_vm0, nan, %v3783_v61 }
 0x42d   : > { %3919 = vst [vmem:[%s5140_s24 + $0xf0] sm:$0xff] %v3784_v50 }
 0x42e   : > { %s7625_s10 = smov (!%p3931_p11, %s3930_s10), 32 }
 0x42f   : > { %s7498_s17 = sshll.u32 %s7625_s10, 7 }
 0x430   : > { %s3935_s19 = ssub.s32 4096, %s7498_s17 }
 0x431   : > { %3936 = vsyncadd %s7493_s9, %s3935_s19  ;;  %p4174_p12 = scmp.ne.s32.totalorder %s7498_s17, 0  ;;  %s4180_s11 = sshll.u32 %s4706_s16, 12 }
 0x432   : > { %s7507_s25 = scalar_lea.hbm %s7557_s3, %s4180_s11  ;;  %s3941_s30 = sshll.u32 %s5140_s24, 4  ;;  %s7510_s30 = int_to_ptr.vmem [resolvable:$true] %s3941_s30 }
 0x433   : > { %s4592_s26 = scalar_lea.vmem %s7510_s30, %s7498_s17  ;;  %s4662_s27 = smov [#allocation2]  }
 0x434   : > { %p4593_p13 = scmp.ne.s32.totalorder %s7510_s30, %s4592_s26  ;;  %s4596_s28 = sshll.u32 %s4662_s27, 4  ;;  %s4597_s28 = int_to_ptr.vmem [resolvable:$false] %s4596_s28 }
 0x435   : > { %s4598_s16 = scalar_lea.vmem %s4597_s28, 8192  ;;  %p4599_p2 = scmp.lt.s32.totalorder %s7510_s30, %s4597_s28 }
 0x436   : > { %p4594_p0 = pnand %p4593_p13, %p4174_p12  ;;  %p4600_p3 = scmp.lt.s32.totalorder %s4598_s16, %s4592_s26 }
 0x438   : > { %p4595_p1 = pneg %p4594_p0  ;;  %p4601_p4 = por %p4600_p3, %p4599_p2 }
 0x43a   : > { %p4602_p5 = pnand %p4601_p4, %p4595_p1 }
 0x43c   : > { %4605 = shalt.err (!%p4602_p5)
}
 0x43d   : > { %s4606_s24 = scalar_lea.hbm %s7507_s25, %s7498_s17  ;;  %s4610_s5 = scalar_lea.hbm %s7557_s3, 8320 }
 0x43e   : > { %p4607_p7 = scmp.ne.s32.totalorder %s7507_s25, %s4606_s24  ;;  %p4611_p10 = scmp.lt.u32.totalorder %s7507_s25, %s7557_s3 }
 0x43f   : > { %p4612_p11 = scmp.lt.u32.totalorder %s4610_s5, %s4606_s24  ;;  %p4614_p0 = scmp.lt.u32.totalorder %s4606_s24, %s7507_s25 }
 0x440   : > { %p4608_p8 = pnand %p4607_p7, %p4174_p12 }
 0x441   : > { %p4613_p13 = por %p4612_p11, %p4611_p10 }
 0x442   : > { %p4609_p9 = pneg %p4608_p8 }
 0x443   : > { %p4615_p1 = por %p4614_p0, %p4613_p13 }
 0x445   : > { %p4616_p2 = pnand %p4615_p1, %p4609_p9 }
 0x447   : > { %4619 = shalt.err (!%p4616_p2)
}
 0x448   : > { %s4663_s8 = smov 128   ;;  %s4664_s10 = smov 8  }
 0x449   : > { %3947 = dma.vmem_to_hbm [thread:$0]  (%p4174_p12), %s7510_s30, %s7498_s17, %s7507_s25, %s7493_s9, %s4663_s8, %s4663_s8, %s4664_s10  }
 0x44a PF: > { %p4418_p3 = scmp.ge.s32.totalorder %s4654_s15, 2  ;;  %s3956_s19 = sand.u32 1, %s4642_s12  }
 0x44b   : > { %s3957_s11 = scalar_lea.sflag [#allocation3], %s3956_s19 }
 0x44c   : > { %p4415_p4 = pnand %p4418_p3, %p4727_p6 }
 0x44e   : > { %4637 = dma.done.wait (!%p4415_p4), %s3957_s11, 4096  }
 0x44f   : > { %4639 = vsyncadd (!%p4415_p4), %s3957_s11, 4294963200  ;;  %p13_p5 = scmp.ge.s32.totalorder %s4710_s18, 5   ;;  %s7620_s12 = smov %s4646_s13 }
 0x450   : > { %s7621_s13 = smov %s4650_s14  ;;  %s7622_s14 = smov %s4721_s21 }
 0x451   : > { %s7623_s15 = smov %s4710_s18  ;;  %15 = sbr.rel (!%p13_p5) target bundleno = 3 (0x3), region = 67 }
 0x458   :  { %3962 = vsyncpa [#allocation3], 1 }
 0x459   :  { %3964 = vsyncpa [#allocation3 + $0x1], 1 }

</bundles_post_ra>
